<compile_context>
chip_gen: v7x
topology: tpu7x:2x2x1
jax: 0.10.0
libtpu: 0.0.40
codegen_flags: <defaults>
</compile_context>

<pallas_src>
import functools

import jax
import jax.numpy as jnp
from jax.experimental import pallas as pl
from jax.experimental.pallas import tpu as pltpu


# ----------------------------------------------------------------------------
# Kernel 1: decoder head  --  start_fc + ReLU + start_conv(1x1, bias), fused.
# ----------------------------------------------------------------------------
def _head_kernel(z_ref, fcw_ref, fcb_ref, scw_ref, scb_ref, o_ref):
    h = jnp.maximum(
        jnp.dot(z_ref[...], fcw_ref[...], preferred_element_type=jnp.float32)
        + fcb_ref[...], 0.0)
    o_ref[...] = (jnp.dot(h, scw_ref[...], preferred_element_type=jnp.float32)
                  + scb_ref[...]).astype(o_ref.dtype)


def decoder_head(z, fc_w, fc_b, sc_w, sc_b, *, hs, ws, latent):
    """z -> Linear -> ReLU -> (NCHW reshape) -> Conv2d(1x1) ; returns NHWC."""
    B = z.shape[0]
    P = hs * ws
    Cs = sc_w.shape[1]

    # Permute fc weight/bias columns from NCHW-flat (c,h,w) to NHWC-flat (h,w,c)
    # so the fc output is already pixel-major; apply the 1x1 start_conv as a
    # block-diagonal matmul so fc + ReLU + conv fuse into a single kernel.
    fcw = fc_w.reshape(latent, latent, hs, ws).transpose(0, 2, 3, 1)
    fcw = fcw.reshape(latent, P * latent)
    fcb = fc_b.reshape(latent, hs, ws).transpose(1, 2, 0).reshape(1, P * latent)
    scw_bd = jnp.kron(jnp.eye(P, dtype=jnp.float32), sc_w)        # (P*L, P*Cs)
    scb_t = jnp.tile(sc_b, P).reshape(1, P * Cs)

    out = pl.pallas_call(
        _head_kernel,
        out_shape=jax.ShapeDtypeStruct((B, P * Cs), jnp.float32),
        grid=(1,),
        in_specs=[
            pl.BlockSpec((B, latent), lambda i: (0, 0)),
            pl.BlockSpec((latent, P * latent), lambda i: (0, 0)),
            pl.BlockSpec((1, P * latent), lambda i: (0, 0)),
            pl.BlockSpec((P * latent, P * Cs), lambda i: (0, 0)),
            pl.BlockSpec((1, P * Cs), lambda i: (0, 0)),
        ],
        out_specs=pl.BlockSpec((B, P * Cs), lambda i: (0, 0)),
        compiler_params=pltpu.CompilerParams(dimension_semantics=("arbitrary",)),
    )(z, fcw, fcb, scw_bd, scb_t)
    return out.reshape(B, hs, ws, Cs)                             # NHWC


# ----------------------------------------------------------------------------
# Kernel 2: sub-pixel ConvTranspose2d(4,2,1,no bias) as ONE im2col matmul,
#           fused with BatchNorm(affine=False, batch stats) + ReLU.
#           The "tail" variant additionally fuses end_conv(1x1) + tanh.
# ----------------------------------------------------------------------------
def _bn_relu_phase_blocked(y, p2c, c2p, inv_count):
    # y: (M, 4C) f32, columns are phase-blocked (phase*C + channel).
    # p2c: (4C, C) sums the 4 phase groups per channel; c2p: (C, 4C) tiles back.
    s1 = jnp.sum(y, axis=0, keepdims=True)                              # (1, 4C)
    mean_c = jnp.dot(s1, p2c, preferred_element_type=jnp.float32) * inv_count
    mean_f = jnp.dot(mean_c, c2p, preferred_element_type=jnp.float32)   # (1, 4C)
    d = y - mean_f
    s2 = jnp.sum(d * d, axis=0, keepdims=True)
    var_c = jnp.dot(s2, p2c, preferred_element_type=jnp.float32) * inv_count
    inv_c = jax.lax.rsqrt(var_c + 1e-5)                                 # biased var, eps=1e-5
    inv_f = jnp.dot(inv_c, c2p, preferred_element_type=jnp.float32)
    return jnp.maximum(d * inv_f, 0.0)


def _upblock_kernel(cols_ref, w_ref, p2c_ref, c2p_ref, o_ref, *, inv_count):
    y = jnp.dot(cols_ref[...], w_ref[...], preferred_element_type=jnp.float32)
    o_ref[...] = _bn_relu_phase_blocked(
        y, p2c_ref[...], c2p_ref[...], inv_count).astype(o_ref.dtype)


def _upblock_tail_kernel(cols_ref, w_ref, p2c_ref, c2p_ref, e_ref, o_ref, *,
                         inv_count):
    y = jnp.dot(cols_ref[...], w_ref[...], preferred_element_type=jnp.float32)
    act = _bn_relu_phase_blocked(y, p2c_ref[...], c2p_ref[...], inv_count)
    o_ref[...] = jnp.tanh(
        jnp.dot(act, e_ref[...], preferred_element_type=jnp.float32)
    ).astype(o_ref.dtype)


def _pack_subpixel_weight(w_t):
    """(Cin, Cout, 4, 4) ConvTranspose2d weight -> (9*Cin, 4*Cout) phase-blocked.

    Output phase (a, b) (row/col parity) at pixel (p, q) uses input tap
    (p-1+a+dh, q-1+b+dw), dh,dw in {0,1}, i.e. padded 3x3-neighbourhood tap
    t9 = (a+dh)*3 + (b+dw), with kernel element (3-a-2dh, 3-b-2dw)."""
    Cin, Cout = w_t.shape[0], w_t.shape[1]
    Wb = jnp.zeros((9 * Cin, 4 * Cout), jnp.float32)
    for a in range(2):
        for b in range(2):
            ph = 2 * a + b
            for dh in range(2):
                for dw in range(2):
                    t9 = (a + dh) * 3 + (b + dw)
                    Wb = Wb.at[t9 * Cin:(t9 + 1) * Cin,
                               ph * Cout:(ph + 1) * Cout].set(
                        w_t[:, :, 3 - a - 2 * dh, 3 - b - 2 * dw])
    return Wb


def upsample_block(x, w_t, end_w=None):
    """ConvTranspose2d(4,2,1,no bias) -> BN(affine=False, batch stats) -> ReLU.
    If `end_w` is given, also applies the 1x1 end conv (no bias) + tanh.

    x:   (B, H, W, Cin) NHWC float32
    w_t: (Cin, Cout, 4, 4)  (PyTorch ConvTranspose2d layout)
    returns (B, 2H, 2W, Cout or 3) NHWC float32
    """
    B, H, W, Cin = x.shape
    Cout = w_t.shape[1]
    M = B * H * W

    # im2col over the 3x3 neighbourhood of the 1-pixel zero-padded input
    # (tap-major, channel-minor columns).  bf16 operands, f32 accumulation.
    xp = jnp.pad(x, ((0, 0), (1, 1), (1, 1), (0, 0)))
    cols = jnp.concatenate(
        [xp[:, dh:dh + H, dw:dw + W, :] for dh in range(3) for dw in range(3)],
        axis=-1).reshape(M, 9 * Cin).astype(jnp.bfloat16)
    Wb = _pack_subpixel_weight(w_t).astype(jnp.bfloat16)

    eye = jnp.eye(Cout, dtype=jnp.float32)
    p2c = jnp.concatenate([eye] * 4, axis=0)      # (4C, C)
    c2p = jnp.concatenate([eye] * 4, axis=1)      # (C, 4C)
    inv_count = 1.0 / (4.0 * M)                   # BN over B*(2H)*(2W) per channel

    if end_w is None:
        out = pl.pallas_call(
            functools.partial(_upblock_kernel, inv_count=inv_count),
            out_shape=jax.ShapeDtypeStruct((M, 4 * Cout), jnp.float32),
            grid=(1,),
            in_specs=[
                pl.BlockSpec((M, 9 * Cin), lambda i: (0, 0)),
                pl.BlockSpec((9 * Cin, 4 * Cout), lambda i: (0, 0)),
                pl.BlockSpec((4 * Cout, Cout), lambda i: (0, 0)),
                pl.BlockSpec((Cout, 4 * Cout), lambda i: (0, 0)),
            ],
            out_specs=pl.BlockSpec((M, 4 * Cout), lambda i: (0, 0)),
            compiler_params=pltpu.CompilerParams(
                dimension_semantics=("arbitrary",)),
        )(cols, Wb, p2c, c2p)
        c_final = Cout
    else:
        c_final = end_w.shape[1]                  # 3
        Eb = jnp.kron(jnp.eye(4, dtype=jnp.float32), end_w)   # (4C, 4*3) block-diag
        out = pl.pallas_call(
            functools.partial(_upblock_tail_kernel, inv_count=inv_count),
            out_shape=jax.ShapeDtypeStruct((M, 4 * c_final), jnp.float32),
            grid=(1,),
            in_specs=[
                pl.BlockSpec((M, 9 * Cin), lambda i: (0, 0)),
                pl.BlockSpec((9 * Cin, 4 * Cout), lambda i: (0, 0)),
                pl.BlockSpec((4 * Cout, Cout), lambda i: (0, 0)),
                pl.BlockSpec((Cout, 4 * Cout), lambda i: (0, 0)),
                pl.BlockSpec((4 * Cout, 4 * c_final), lambda i: (0, 0)),
            ],
            out_specs=pl.BlockSpec((M, 4 * c_final), lambda i: (0, 0)),
            compiler_params=pltpu.CompilerParams(
                dimension_semantics=("arbitrary",)),
        )(cols, Wb, p2c, c2p, Eb)

    # De-interleave phase-blocked columns into spatial (pure XLA glue).
    out = out.reshape(B, H, W, 2, 2, c_final).transpose(0, 1, 3, 2, 4, 5)
    return out.reshape(B, 2 * H, 2 * W, c_final)


# ----------------------------------------------------------------------------
# Parameters (deterministic, in-script) and forward pass
# ----------------------------------------------------------------------------
def init_decoder_params(key, h, w, upsamplings, start_channels, latent_size):
    hs, ws = h // 2 ** upsamplings, w // 2 ** upsamplings
    ks = jax.random.split(key, 5 + upsamplings)
    fc_out = latent_size * hs * ws
    params = {
        "fc_w": 0.05 * jax.random.normal(ks[0], (latent_size, fc_out), jnp.float32),
        "fc_b": 0.05 * jax.random.normal(ks[1], (fc_out,), jnp.float32),
        "sc_w": 0.05 * jax.random.normal(ks[2], (latent_size, start_channels), jnp.float32),
        "sc_b": 0.05 * jax.random.normal(ks[3], (start_channels,), jnp.float32),
        "up_w": [],
    }
    for i in range(upsamplings):
        cin = start_channels // 2 ** i
        cout = cin // 2
        params["up_w"].append(
            0.05 * jax.random.normal(ks[4 + i], (cin, cout, 4, 4), jnp.float32))
    cend = start_channels // 2 ** upsamplings
    params["end_w"] = 0.05 * jax.random.normal(ks[-1], (cend, 3), jnp.float32)
    return params


def decoder_forward(params, z, *, h, w, upsamplings, start_channels, latent_size):
    assert upsamplings >= 1
    hs, ws = h // 2 ** upsamplings, w // 2 ** upsamplings

    # start_fc + ReLU + start_conv(1x1)  (one fused kernel) -> NHWC
    x = decoder_head(z, params["fc_w"], params["fc_b"],
                     params["sc_w"], params["sc_b"],
                     hs=hs, ws=ws, latent=latent_size)      # (B, hs, ws, Cstart)

    # upsampling blocks; the last one also fuses end_conv(1x1, no bias) + tanh
    for i in range(upsamplings):
        end_w = params["end_w"] if i == upsamplings - 1 else None
        x = upsample_block(x, params["up_w"][i], end_w=end_w)

    # NHWC -> NCHW to match the PyTorch module.
    return x.transpose(0, 3, 1, 2)


if __name__ == "__main__":
    # Small config consistent with the module: h=w=32, 3 upsamplings,
    # start_channels=32, latent_size=32, batch=2.
    H = W = 32
    UPS = 3
    START_CH = 32
    LATENT = 32
    B = 2

    key = jax.random.PRNGKey(0)
    kp, kz = jax.random.split(key)
    params = init_decoder_params(kp, H, W, UPS, START_CH, LATENT)
    z = jax.random.normal(kz, (B, LATENT), dtype=jnp.float32)

    fwd = jax.jit(functools.partial(decoder_forward, h=H, w=W, upsamplings=UPS,
                                    start_channels=START_CH, latent_size=LATENT))
    out = jax.block_until_ready(fwd(params, z))

    assert out.shape == (B, 3, H, W), out.shape
    assert bool(jnp.all(jnp.isfinite(out)))
    assert bool(jnp.all(jnp.abs(out) <= 1.0))  # tanh range
    print("KERNEL_OK")
</pallas_src>

<mosaic_0001>
module attributes {stable_mosaic.version = 11 : i64} {
  func.func @_head_kernel(%arg0: i32, %arg1: memref<2x32xf32, #tpu.memory_space<vmem>>, %arg2: memref<32x512xf32, #tpu.memory_space<vmem>>, %arg3: memref<1x512xf32, #tpu.memory_space<vmem>>, %arg4: memref<512x512xf32, #tpu.memory_space<vmem>>, %arg5: memref<1x512xf32, #tpu.memory_space<vmem>>, %arg6: memref<2x512xf32, #tpu.memory_space<vmem>>) attributes {dimension_semantics = [#tpu.dimension_semantics<arbitrary>], iteration_bounds = array<i64: 1>, scalar_prefetch = 0 : i64, scratch_operands = 0 : i64, tpu.core_type = #tpu.core_type<tc>, window_params = [{pipeline_mode = #tpu.pipeline_mode<synchronous>, transform_indices = @transform_0, window_bounds = array<i64: 2, 32>}, {pipeline_mode = #tpu.pipeline_mode<synchronous>, transform_indices = @transform_1, window_bounds = array<i64: 32, 512>}, {pipeline_mode = #tpu.pipeline_mode<synchronous>, transform_indices = @transform_2, window_bounds = array<i64: 1, 512>}, {pipeline_mode = #tpu.pipeline_mode<synchronous>, transform_indices = @transform_3, window_bounds = array<i64: 512, 512>}, {pipeline_mode = #tpu.pipeline_mode<synchronous>, transform_indices = @transform_4, window_bounds = array<i64: 1, 512>}, {pipeline_mode = #tpu.pipeline_mode<synchronous>, transform_indices = @transform_5, window_bounds = array<i64: 2, 512>}]} {
    %c0 = arith.constant 0 : index
    %c0_0 = arith.constant 0 : index
    %0 = vector.load %arg1[%c0, %c0_0] : memref<2x32xf32, #tpu.memory_space<vmem>>, vector<2x32xf32>
    %c0_1 = arith.constant 0 : index
    %c0_2 = arith.constant 0 : index
    %1 = vector.load %arg2[%c0_1, %c0_2] : memref<32x512xf32, #tpu.memory_space<vmem>>, vector<32x512xf32>
    %cst = arith.constant dense<0.000000e+00> : vector<2x512xf32>
    %2 = tpu.matmul %0, %1, %cst {dimension_numbers = #tpu.dot_dimension_numbers<[1], [0], [0], [1], [0, 0, 1, 1], [], []>} : vector<2x32xf32>, vector<32x512xf32>, vector<2x512xf32> -> vector<2x512xf32>
    %c0_3 = arith.constant 0 : index
    %c0_4 = arith.constant 0 : index
    %3 = vector.load %arg3[%c0_3, %c0_4] : memref<1x512xf32, #tpu.memory_space<vmem>>, vector<1x512xf32>
    %4 = vector.broadcast %3 : vector<1x512xf32> to vector<2x512xf32>
    %5 = arith.addf %2, %4 : vector<2x512xf32>
    %cst_5 = arith.constant 0.000000e+00 : f32
    %6 = vector.broadcast %cst_5 : f32 to vector<2x512xf32>
    %7 = arith.maximumf %5, %6 : vector<2x512xf32>
    %c0_6 = arith.constant 0 : index
    %c0_7 = arith.constant 0 : index
    %8 = vector.load %arg4[%c0_6, %c0_7] : memref<512x512xf32, #tpu.memory_space<vmem>>, vector<512x512xf32>
    %cst_8 = arith.constant dense<0.000000e+00> : vector<2x512xf32>
    %9 = tpu.matmul %7, %8, %cst_8 {dimension_numbers = #tpu.dot_dimension_numbers<[1], [0], [0], [1], [0, 0, 1, 1], [], []>} : vector<2x512xf32>, vector<512x512xf32>, vector<2x512xf32> -> vector<2x512xf32>
    %c0_9 = arith.constant 0 : index
    %c0_10 = arith.constant 0 : index
    %10 = vector.load %arg5[%c0_9, %c0_10] : memref<1x512xf32, #tpu.memory_space<vmem>>, vector<1x512xf32>
    %11 = vector.broadcast %10 : vector<1x512xf32> to vector<2x512xf32>
    %12 = arith.addf %9, %11 : vector<2x512xf32>
    %c0_11 = arith.constant 0 : index
    %c0_12 = arith.constant 0 : index
    %13 = vector.load %arg6[%c0_11, %c0_12] : memref<2x512xf32, #tpu.memory_space<vmem>>, vector<2x512xf32>
    tpu.vector_store %arg6[%c0_11, %c0_12], %12 {strides = array<i32>} : memref<2x512xf32, #tpu.memory_space<vmem>>, vector<2x512xf32>,
    return
  }
  func.func @transform_0(%arg0: i32) -> (i32, i32) {
    %c0_i32 = arith.constant 0 : i32
    %c0_i32_0 = arith.constant 0 : i32
    %c0_i32_1 = arith.constant 0 : i32
    return %c0_i32, %c0_i32_0 : i32, i32
  }
  func.func @transform_1(%arg0: i32) -> (i32, i32) {
    %c0_i32 = arith.constant 0 : i32
    %c0_i32_0 = arith.constant 0 : i32
    %c0_i32_1 = arith.constant 0 : i32
    return %c0_i32, %c0_i32_0 : i32, i32
  }
  func.func @transform_2(%arg0: i32) -> (i32, i32) {
    %c0_i32 = arith.constant 0 : i32
    %c0_i32_0 = arith.constant 0 : i32
    %c0_i32_1 = arith.constant 0 : i32
    return %c0_i32, %c0_i32_0 : i32, i32
  }
  func.func @transform_3(%arg0: i32) -> (i32, i32) {
    %c0_i32 = arith.constant 0 : i32
    %c0_i32_0 = arith.constant 0 : i32
    %c0_i32_1 = arith.constant 0 : i32
    return %c0_i32, %c0_i32_0 : i32, i32
  }
  func.func @transform_4(%arg0: i32) -> (i32, i32) {
    %c0_i32 = arith.constant 0 : i32
    %c0_i32_0 = arith.constant 0 : i32
    %c0_i32_1 = arith.constant 0 : i32
    return %c0_i32, %c0_i32_0 : i32, i32
  }
  func.func @transform_5(%arg0: i32) -> (i32, i32) {
    %c0_i32 = arith.constant 0 : i32
    %c0_i32_0 = arith.constant 0 : i32
    %c0_i32_1 = arith.constant 0 : i32
    return %c0_i32, %c0_i32_0 : i32, i32
  }
}

module attributes {stable_mosaic.version = 11 : i64} {
  func.func @_upblock_kernel(%arg0: i32, %arg1: memref<32x288xbf16, #tpu.memory_space<vmem>>, %arg2: memref<288x64xbf16, #tpu.memory_space<vmem>>, %arg3: memref<64x16xf32, #tpu.memory_space<vmem>>, %arg4: memref<16x64xf32, #tpu.memory_space<vmem>>, %arg5: memref<32x64xf32, #tpu.memory_space<vmem>>) attributes {dimension_semantics = [#tpu.dimension_semantics<arbitrary>], iteration_bounds = array<i64: 1>, scalar_prefetch = 0 : i64, scratch_operands = 0 : i64, tpu.core_type = #tpu.core_type<tc>, window_params = [{pipeline_mode = #tpu.pipeline_mode<synchronous>, transform_indices = @transform_0, window_bounds = array<i64: 32, 288>}, {pipeline_mode = #tpu.pipeline_mode<synchronous>, transform_indices = @transform_1, window_bounds = array<i64: 288, 64>}, {pipeline_mode = #tpu.pipeline_mode<synchronous>, transform_indices = @transform_2, window_bounds = array<i64: 64, 16>}, {pipeline_mode = #tpu.pipeline_mode<synchronous>, transform_indices = @transform_3, window_bounds = array<i64: 16, 64>}, {pipeline_mode = #tpu.pipeline_mode<synchronous>, transform_indices = @transform_4, window_bounds = array<i64: 32, 64>}]} {
    %c0 = arith.constant 0 : index
    %c0_0 = arith.constant 0 : index
    %0 = vector.load %arg1[%c0, %c0_0] : memref<32x288xbf16, #tpu.memory_space<vmem>>, vector<32x288xbf16>
    %c0_1 = arith.constant 0 : index
    %c0_2 = arith.constant 0 : index
    %1 = vector.load %arg2[%c0_1, %c0_2] : memref<288x64xbf16, #tpu.memory_space<vmem>>, vector<288x64xbf16>
    %cst = arith.constant dense<0.000000e+00> : vector<32x64xf32>
    %2 = tpu.matmul %0, %1, %cst {dimension_numbers = #tpu.dot_dimension_numbers<[1], [0], [0], [1], [0, 0, 1, 1], [], []>} : vector<32x288xbf16>, vector<288x64xbf16>, vector<32x64xf32> -> vector<32x64xf32>
    %c0_3 = arith.constant 0 : index
    %c0_4 = arith.constant 0 : index
    %3 = vector.load %arg3[%c0_3, %c0_4] : memref<64x16xf32, #tpu.memory_space<vmem>>, vector<64x16xf32>
    %c0_5 = arith.constant 0 : index
    %c0_6 = arith.constant 0 : index
    %4 = vector.load %arg4[%c0_5, %c0_6] : memref<16x64xf32, #tpu.memory_space<vmem>>, vector<16x64xf32>
    %cst_7 = arith.constant dense<0.000000e+00> : vector<64xf32>
    %5 = vector.multi_reduction <add>, %2, %cst_7 [0] : vector<32x64xf32> to vector<64xf32>
    %6 = vector.shape_cast %5 : vector<64xf32> to vector<1x64xf32>
    %cst_8 = arith.constant dense<0.000000e+00> : vector<1x16xf32>
    %7 = tpu.matmul %6, %3, %cst_8 {dimension_numbers = #tpu.dot_dimension_numbers<[1], [0], [0], [1], [0, 0, 1, 1], [], []>} : vector<1x64xf32>, vector<64x16xf32>, vector<1x16xf32> -> vector<1x16xf32>
    %cst_9 = arith.constant 7.812500e-03 : f32
    %8 = vector.broadcast %cst_9 : f32 to vector<1x16xf32>
    %9 = arith.mulf %7, %8 : vector<1x16xf32>
    %cst_10 = arith.constant dense<0.000000e+00> : vector<1x64xf32>
    %10 = tpu.matmul %9, %4, %cst_10 {dimension_numbers = #tpu.dot_dimension_numbers<[1], [0], [0], [1], [0, 0, 1, 1], [], []>} : vector<1x16xf32>, vector<16x64xf32>, vector<1x64xf32> -> vector<1x64xf32>
    %11 = vector.broadcast %10 : vector<1x64xf32> to vector<32x64xf32>
    %12 = arith.subf %2, %11 : vector<32x64xf32>
    %13 = arith.mulf %12, %12 : vector<32x64xf32>
    %cst_11 = arith.constant dense<0.000000e+00> : vector<64xf32>
    %14 = vector.multi_reduction <add>, %13, %cst_11 [0] : vector<32x64xf32> to vector<64xf32>
    %15 = vector.shape_cast %14 : vector<64xf32> to vector<1x64xf32>
    %cst_12 = arith.constant dense<0.000000e+00> : vector<1x16xf32>
    %16 = tpu.matmul %15, %3, %cst_12 {dimension_numbers = #tpu.dot_dimension_numbers<[1], [0], [0], [1], [0, 0, 1, 1], [], []>} : vector<1x64xf32>, vector<64x16xf32>, vector<1x16xf32> -> vector<1x16xf32>
    %cst_13 = arith.constant 7.812500e-03 : f32
    %17 = vector.broadcast %cst_13 : f32 to vector<1x16xf32>
    %18 = arith.mulf %16, %17 : vector<1x16xf32>
    %cst_14 = arith.constant 9.99999974E-6 : f32
    %19 = vector.broadcast %cst_14 : f32 to vector<1x16xf32>
    %20 = arith.addf %18, %19 : vector<1x16xf32>
    %21 = math.rsqrt %20 : vector<1x16xf32>
    %cst_15 = arith.constant dense<0.000000e+00> : vector<1x64xf32>
    %22 = tpu.matmul %21, %4, %cst_15 {dimension_numbers = #tpu.dot_dimension_numbers<[1], [0], [0], [1], [0, 0, 1, 1], [], []>} : vector<1x16xf32>, vector<16x64xf32>, vector<1x64xf32> -> vector<1x64xf32>
    %23 = vector.broadcast %22 : vector<1x64xf32> to vector<32x64xf32>
    %24 = arith.mulf %12, %23 : vector<32x64xf32>
    %cst_16 = arith.constant 0.000000e+00 : f32
    %25 = vector.broadcast %cst_16 : f32 to vector<32x64xf32>
    %26 = arith.maximumf %24, %25 : vector<32x64xf32>
    %c0_17 = arith.constant 0 : index
    %c0_18 = arith.constant 0 : index
    %27 = vector.load %arg5[%c0_17, %c0_18] : memref<32x64xf32, #tpu.memory_space<vmem>>, vector<32x64xf32>
    tpu.vector_store %arg5[%c0_17, %c0_18], %26 {strides = array<i32>} : memref<32x64xf32, #tpu.memory_space<vmem>>, vector<32x64xf32>,
    return
  }
  func.func @transform_0(%arg0: i32) -> (i32, i32) {
    %c0_i32 = arith.constant 0 : i32
    %c0_i32_0 = arith.constant 0 : i32
    %c0_i32_1 = arith.constant 0 : i32
    return %c0_i32, %c0_i32_0 : i32, i32
  }
  func.func @transform_1(%arg0: i32) -> (i32, i32) {
    %c0_i32 = arith.constant 0 : i32
    %c0_i32_0 = arith.constant 0 : i32
    %c0_i32_1 = arith.constant 0 : i32
    return %c0_i32, %c0_i32_0 : i32, i32
  }
  func.func @transform_2(%arg0: i32) -> (i32, i32) {
    %c0_i32 = arith.constant 0 : i32
    %c0_i32_0 = arith.constant 0 : i32
    %c0_i32_1 = arith.constant 0 : i32
    return %c0_i32, %c0_i32_0 : i32, i32
  }
  func.func @transform_3(%arg0: i32) -> (i32, i32) {
    %c0_i32 = arith.constant 0 : i32
    %c0_i32_0 = arith.constant 0 : i32
    %c0_i32_1 = arith.constant 0 : i32
    return %c0_i32, %c0_i32_0 : i32, i32
  }
  func.func @transform_4(%arg0: i32) -> (i32, i32) {
    %c0_i32 = arith.constant 0 : i32
    %c0_i32_0 = arith.constant 0 : i32
    %c0_i32_1 = arith.constant 0 : i32
    return %c0_i32, %c0_i32_0 : i32, i32
  }
}

module attributes {stable_mosaic.version = 11 : i64} {
  func.func @_upblock_kernel(%arg0: i32, %arg1: memref<128x144xbf16, #tpu.memory_space<vmem>>, %arg2: memref<144x32xbf16, #tpu.memory_space<vmem>>, %arg3: memref<32x8xf32, #tpu.memory_space<vmem>>, %arg4: memref<8x32xf32, #tpu.memory_space<vmem>>, %arg5: memref<128x32xf32, #tpu.memory_space<vmem>>) attributes {dimension_semantics = [#tpu.dimension_semantics<arbitrary>], iteration_bounds = array<i64: 1>, scalar_prefetch = 0 : i64, scratch_operands = 0 : i64, tpu.core_type = #tpu.core_type<tc>, window_params = [{pipeline_mode = #tpu.pipeline_mode<synchronous>, transform_indices = @transform_0, window_bounds = array<i64: 128, 144>}, {pipeline_mode = #tpu.pipeline_mode<synchronous>, transform_indices = @transform_1, window_bounds = array<i64: 144, 32>}, {pipeline_mode = #tpu.pipeline_mode<synchronous>, transform_indices = @transform_2, window_bounds = array<i64: 32, 8>}, {pipeline_mode = #tpu.pipeline_mode<synchronous>, transform_indices = @transform_3, window_bounds = array<i64: 8, 32>}, {pipeline_mode = #tpu.pipeline_mode<synchronous>, transform_indices = @transform_4, window_bounds = array<i64: 128, 32>}]} {
    %c0 = arith.constant 0 : index
    %c0_0 = arith.constant 0 : index
    %0 = vector.load %arg1[%c0, %c0_0] : memref<128x144xbf16, #tpu.memory_space<vmem>>, vector<128x144xbf16>
    %c0_1 = arith.constant 0 : index
    %c0_2 = arith.constant 0 : index
    %1 = vector.load %arg2[%c0_1, %c0_2] : memref<144x32xbf16, #tpu.memory_space<vmem>>, vector<144x32xbf16>
    %cst = arith.constant dense<0.000000e+00> : vector<128x32xf32>
    %2 = tpu.matmul %0, %1, %cst {dimension_numbers = #tpu.dot_dimension_numbers<[1], [0], [0], [1], [0, 0, 1, 1], [], []>} : vector<128x144xbf16>, vector<144x32xbf16>, vector<128x32xf32> -> vector<128x32xf32>
    %c0_3 = arith.constant 0 : index
    %c0_4 = arith.constant 0 : index
    %3 = vector.load %arg3[%c0_3, %c0_4] : memref<32x8xf32, #tpu.memory_space<vmem>>, vector<32x8xf32>
    %c0_5 = arith.constant 0 : index
    %c0_6 = arith.constant 0 : index
    %4 = vector.load %arg4[%c0_5, %c0_6] : memref<8x32xf32, #tpu.memory_space<vmem>>, vector<8x32xf32>
    %cst_7 = arith.constant dense<0.000000e+00> : vector<32xf32>
    %5 = vector.multi_reduction <add>, %2, %cst_7 [0] : vector<128x32xf32> to vector<32xf32>
    %6 = vector.shape_cast %5 : vector<32xf32> to vector<1x32xf32>
    %cst_8 = arith.constant dense<0.000000e+00> : vector<1x8xf32>
    %7 = tpu.matmul %6, %3, %cst_8 {dimension_numbers = #tpu.dot_dimension_numbers<[1], [0], [0], [1], [0, 0, 1, 1], [], []>} : vector<1x32xf32>, vector<32x8xf32>, vector<1x8xf32> -> vector<1x8xf32>
    %cst_9 = arith.constant 0.001953125 : f32
    %8 = vector.broadcast %cst_9 : f32 to vector<1x8xf32>
    %9 = arith.mulf %7, %8 : vector<1x8xf32>
    %cst_10 = arith.constant dense<0.000000e+00> : vector<1x32xf32>
    %10 = tpu.matmul %9, %4, %cst_10 {dimension_numbers = #tpu.dot_dimension_numbers<[1], [0], [0], [1], [0, 0, 1, 1], [], []>} : vector<1x8xf32>, vector<8x32xf32>, vector<1x32xf32> -> vector<1x32xf32>
    %11 = vector.broadcast %10 : vector<1x32xf32> to vector<128x32xf32>
    %12 = arith.subf %2, %11 : vector<128x32xf32>
    %13 = arith.mulf %12, %12 : vector<128x32xf32>
    %cst_11 = arith.constant dense<0.000000e+00> : vector<32xf32>
    %14 = vector.multi_reduction <add>, %13, %cst_11 [0] : vector<128x32xf32> to vector<32xf32>
    %15 = vector.shape_cast %14 : vector<32xf32> to vector<1x32xf32>
    %cst_12 = arith.constant dense<0.000000e+00> : vector<1x8xf32>
    %16 = tpu.matmul %15, %3, %cst_12 {dimension_numbers = #tpu.dot_dimension_numbers<[1], [0], [0], [1], [0, 0, 1, 1], [], []>} : vector<1x32xf32>, vector<32x8xf32>, vector<1x8xf32> -> vector<1x8xf32>
    %cst_13 = arith.constant 0.001953125 : f32
    %17 = vector.broadcast %cst_13 : f32 to vector<1x8xf32>
    %18 = arith.mulf %16, %17 : vector<1x8xf32>
    %cst_14 = arith.constant 9.99999974E-6 : f32
    %19 = vector.broadcast %cst_14 : f32 to vector<1x8xf32>
    %20 = arith.addf %18, %19 : vector<1x8xf32>
    %21 = math.rsqrt %20 : vector<1x8xf32>
    %cst_15 = arith.constant dense<0.000000e+00> : vector<1x32xf32>
    %22 = tpu.matmul %21, %4, %cst_15 {dimension_numbers = #tpu.dot_dimension_numbers<[1], [0], [0], [1], [0, 0, 1, 1], [], []>} : vector<1x8xf32>, vector<8x32xf32>, vector<1x32xf32> -> vector<1x32xf32>
    %23 = vector.broadcast %22 : vector<1x32xf32> to vector<128x32xf32>
    %24 = arith.mulf %12, %23 : vector<128x32xf32>
    %cst_16 = arith.constant 0.000000e+00 : f32
    %25 = vector.broadcast %cst_16 : f32 to vector<128x32xf32>
    %26 = arith.maximumf %24, %25 : vector<128x32xf32>
    %c0_17 = arith.constant 0 : index
    %c0_18 = arith.constant 0 : index
    %27 = vector.load %arg5[%c0_17, %c0_18] : memref<128x32xf32, #tpu.memory_space<vmem>>, vector<128x32xf32>
    tpu.vector_store %arg5[%c0_17, %c0_18], %26 {strides = array<i32>} : memref<128x32xf32, #tpu.memory_space<vmem>>, vector<128x32xf32>,
    return
  }
  func.func @transform_0(%arg0: i32) -> (i32, i32) {
    %c0_i32 = arith.constant 0 : i32
    %c0_i32_0 = arith.constant 0 : i32
    %c0_i32_1 = arith.constant 0 : i32
    return %c0_i32, %c0_i32_0 : i32, i32
  }
  func.func @transform_1(%arg0: i32) -> (i32, i32) {
    %c0_i32 = arith.constant 0 : i32
    %c0_i32_0 = arith.constant 0 : i32
    %c0_i32_1 = arith.constant 0 : i32
    return %c0_i32, %c0_i32_0 : i32, i32
  }
  func.func @transform_2(%arg0: i32) -> (i32, i32) {
    %c0_i32 = arith.constant 0 : i32
    %c0_i32_0 = arith.constant 0 : i32
    %c0_i32_1 = arith.constant 0 : i32
    return %c0_i32, %c0_i32_0 : i32, i32
  }
  func.func @transform_3(%arg0: i32) -> (i32, i32) {
    %c0_i32 = arith.constant 0 : i32
    %c0_i32_0 = arith.constant 0 : i32
    %c0_i32_1 = arith.constant 0 : i32
    return %c0_i32, %c0_i32_0 : i32, i32
  }
  func.func @transform_4(%arg0: i32) -> (i32, i32) {
    %c0_i32 = arith.constant 0 : i32
    %c0_i32_0 = arith.constant 0 : i32
    %c0_i32_1 = arith.constant 0 : i32
    return %c0_i32, %c0_i32_0 : i32, i32
  }
}

module attributes {stable_mosaic.version = 11 : i64} {
  func.func @_upblock_tail_kernel(%arg0: i32, %arg1: memref<512x72xbf16, #tpu.memory_space<vmem>>, %arg2: memref<72x16xbf16, #tpu.memory_space<vmem>>, %arg3: memref<16x4xf32, #tpu.memory_space<vmem>>, %arg4: memref<4x16xf32, #tpu.memory_space<vmem>>, %arg5: memref<16x12xf32, #tpu.memory_space<vmem>>, %arg6: memref<512x12xf32, #tpu.memory_space<vmem>>) attributes {dimension_semantics = [#tpu.dimension_semantics<arbitrary>], iteration_bounds = array<i64: 1>, scalar_prefetch = 0 : i64, scratch_operands = 0 : i64, tpu.core_type = #tpu.core_type<tc>, window_params = [{pipeline_mode = #tpu.pipeline_mode<synchronous>, transform_indices = @transform_0, window_bounds = array<i64: 512, 72>}, {pipeline_mode = #tpu.pipeline_mode<synchronous>, transform_indices = @transform_1, window_bounds = array<i64: 72, 16>}, {pipeline_mode = #tpu.pipeline_mode<synchronous>, transform_indices = @transform_2, window_bounds = array<i64: 16, 4>}, {pipeline_mode = #tpu.pipeline_mode<synchronous>, transform_indices = @transform_3, window_bounds = array<i64: 4, 16>}, {pipeline_mode = #tpu.pipeline_mode<synchronous>, transform_indices = @transform_4, window_bounds = array<i64: 16, 12>}, {pipeline_mode = #tpu.pipeline_mode<synchronous>, transform_indices = @transform_5, window_bounds = array<i64: 512, 12>}]} {
    %c0 = arith.constant 0 : index
    %c0_0 = arith.constant 0 : index
    %0 = vector.load %arg1[%c0, %c0_0] : memref<512x72xbf16, #tpu.memory_space<vmem>>, vector<512x72xbf16>
    %c0_1 = arith.constant 0 : index
    %c0_2 = arith.constant 0 : index
    %1 = vector.load %arg2[%c0_1, %c0_2] : memref<72x16xbf16, #tpu.memory_space<vmem>>, vector<72x16xbf16>
    %cst = arith.constant dense<0.000000e+00> : vector<512x16xf32>
    %2 = tpu.matmul %0, %1, %cst {dimension_numbers = #tpu.dot_dimension_numbers<[1], [0], [0], [1], [0, 0, 1, 1], [], []>} : vector<512x72xbf16>, vector<72x16xbf16>, vector<512x16xf32> -> vector<512x16xf32>
    %c0_3 = arith.constant 0 : index
    %c0_4 = arith.constant 0 : index
    %3 = vector.load %arg3[%c0_3, %c0_4] : memref<16x4xf32, #tpu.memory_space<vmem>>, vector<16x4xf32>
    %c0_5 = arith.constant 0 : index
    %c0_6 = arith.constant 0 : index
    %4 = vector.load %arg4[%c0_5, %c0_6] : memref<4x16xf32, #tpu.memory_space<vmem>>, vector<4x16xf32>
    %cst_7 = arith.constant dense<0.000000e+00> : vector<16xf32>
    %5 = vector.multi_reduction <add>, %2, %cst_7 [0] : vector<512x16xf32> to vector<16xf32>
    %6 = vector.shape_cast %5 : vector<16xf32> to vector<1x16xf32>
    %cst_8 = arith.constant dense<0.000000e+00> : vector<1x4xf32>
    %7 = tpu.matmul %6, %3, %cst_8 {dimension_numbers = #tpu.dot_dimension_numbers<[1], [0], [0], [1], [0, 0, 1, 1], [], []>} : vector<1x16xf32>, vector<16x4xf32>, vector<1x4xf32> -> vector<1x4xf32>
    %cst_9 = arith.constant 4.8828125E-4 : f32
    %8 = vector.broadcast %cst_9 : f32 to vector<1x4xf32>
    %9 = arith.mulf %7, %8 : vector<1x4xf32>
    %cst_10 = arith.constant dense<0.000000e+00> : vector<1x16xf32>
    %10 = tpu.matmul %9, %4, %cst_10 {dimension_numbers = #tpu.dot_dimension_numbers<[1], [0], [0], [1], [0, 0, 1, 1], [], []>} : vector<1x4xf32>, vector<4x16xf32>, vector<1x16xf32> -> vector<1x16xf32>
    %11 = vector.broadcast %10 : vector<1x16xf32> to vector<512x16xf32>
    %12 = arith.subf %2, %11 : vector<512x16xf32>
    %13 = arith.mulf %12, %12 : vector<512x16xf32>
    %cst_11 = arith.constant dense<0.000000e+00> : vector<16xf32>
    %14 = vector.multi_reduction <add>, %13, %cst_11 [0] : vector<512x16xf32> to vector<16xf32>
    %15 = vector.shape_cast %14 : vector<16xf32> to vector<1x16xf32>
    %cst_12 = arith.constant dense<0.000000e+00> : vector<1x4xf32>
    %16 = tpu.matmul %15, %3, %cst_12 {dimension_numbers = #tpu.dot_dimension_numbers<[1], [0], [0], [1], [0, 0, 1, 1], [], []>} : vector<1x16xf32>, vector<16x4xf32>, vector<1x4xf32> -> vector<1x4xf32>
    %cst_13 = arith.constant 4.8828125E-4 : f32
    %17 = vector.broadcast %cst_13 : f32 to vector<1x4xf32>
    %18 = arith.mulf %16, %17 : vector<1x4xf32>
    %cst_14 = arith.constant 9.99999974E-6 : f32
    %19 = vector.broadcast %cst_14 : f32 to vector<1x4xf32>
    %20 = arith.addf %18, %19 : vector<1x4xf32>
    %21 = math.rsqrt %20 : vector<1x4xf32>
    %cst_15 = arith.constant dense<0.000000e+00> : vector<1x16xf32>
    %22 = tpu.matmul %21, %4, %cst_15 {dimension_numbers = #tpu.dot_dimension_numbers<[1], [0], [0], [1], [0, 0, 1, 1], [], []>} : vector<1x4xf32>, vector<4x16xf32>, vector<1x16xf32> -> vector<1x16xf32>
    %23 = vector.broadcast %22 : vector<1x16xf32> to vector<512x16xf32>
    %24 = arith.mulf %12, %23 : vector<512x16xf32>
    %cst_16 = arith.constant 0.000000e+00 : f32
    %25 = vector.broadcast %cst_16 : f32 to vector<512x16xf32>
    %26 = arith.maximumf %24, %25 : vector<512x16xf32>
    %c0_17 = arith.constant 0 : index
    %c0_18 = arith.constant 0 : index
    %27 = vector.load %arg5[%c0_17, %c0_18] : memref<16x12xf32, #tpu.memory_space<vmem>>, vector<16x12xf32>
    %cst_19 = arith.constant dense<0.000000e+00> : vector<512x12xf32>
    %28 = tpu.matmul %26, %27, %cst_19 {dimension_numbers = #tpu.dot_dimension_numbers<[1], [0], [0], [1], [0, 0, 1, 1], [], []>} : vector<512x16xf32>, vector<16x12xf32>, vector<512x12xf32> -> vector<512x12xf32>
    %29 = math.tanh %28 : vector<512x12xf32>
    %c0_20 = arith.constant 0 : index
    %c0_21 = arith.constant 0 : index
    %30 = vector.load %arg6[%c0_20, %c0_21] : memref<512x12xf32, #tpu.memory_space<vmem>>, vector<512x12xf32>
    tpu.vector_store %arg6[%c0_20, %c0_21], %29 {strides = array<i32>} : memref<512x12xf32, #tpu.memory_space<vmem>>, vector<512x12xf32>,
    return
  }
  func.func @transform_0(%arg0: i32) -> (i32, i32) {
    %c0_i32 = arith.constant 0 : i32
    %c0_i32_0 = arith.constant 0 : i32
    %c0_i32_1 = arith.constant 0 : i32
    return %c0_i32, %c0_i32_0 : i32, i32
  }
  func.func @transform_1(%arg0: i32) -> (i32, i32) {
    %c0_i32 = arith.constant 0 : i32
    %c0_i32_0 = arith.constant 0 : i32
    %c0_i32_1 = arith.constant 0 : i32
    return %c0_i32, %c0_i32_0 : i32, i32
  }
  func.func @transform_2(%arg0: i32) -> (i32, i32) {
    %c0_i32 = arith.constant 0 : i32
    %c0_i32_0 = arith.constant 0 : i32
    %c0_i32_1 = arith.constant 0 : i32
    return %c0_i32, %c0_i32_0 : i32, i32
  }
  func.func @transform_3(%arg0: i32) -> (i32, i32) {
    %c0_i32 = arith.constant 0 : i32
    %c0_i32_0 = arith.constant 0 : i32
    %c0_i32_1 = arith.constant 0 : i32
    return %c0_i32, %c0_i32_0 : i32, i32
  }
  func.func @transform_4(%arg0: i32) -> (i32, i32) {
    %c0_i32 = arith.constant 0 : i32
    %c0_i32_0 = arith.constant 0 : i32
    %c0_i32_1 = arith.constant 0 : i32
    return %c0_i32, %c0_i32_0 : i32, i32
  }
  func.func @transform_5(%arg0: i32) -> (i32, i32) {
    %c0_i32 = arith.constant 0 : i32
    %c0_i32_0 = arith.constant 0 : i32
    %c0_i32_1 = arith.constant 0 : i32
    return %c0_i32, %c0_i32_0 : i32, i32
  }
}

</mosaic_0001>

<bundles_post_ra>
// kernel: tile.8
= control target key start
LH: loop header
LB: loop body
LE: loop exit
PB: predicated region body
PF: predicated region fallthrough
CT: control target
= control target key end

     0   :  { %s28_s0 = inlined_call_operand.vmem [shape: f32[32], index: 0, kind: input, shape index: {}]   ;;  %s29_s1 = inlined_call_operand.vmem [shape: f32[16,32], index: 1, kind: output, shape index: {}]  }
   0x1   :  { %v4_v0 = vld [vmem:[%s28_s0] ss:$0 sm:$0xff] }
   0x2   :  { %5 = vst [vmem:[%s29_s1] sm:$0xff] %v4_v0  ;;  %8 = vst [vmem:[%s29_s1 + $0x8] sm:$0xff] %v4_v0 }

// kernel: tile.9
= control target key start
LH: loop header
LB: loop body
LE: loop exit
PB: predicated region body
PF: predicated region fallthrough
CT: control target
= control target key end

     0   :  { %s57_s8 = smov 96   ;;  %vm3_vm0 = vcmask 261120   ;;  %s59_s15 = smov 64   ;;  %vm9_vm1 = vcmask 1048320   ;;  %vm15_vm2 = vcmask 785920   ;;  %vm21_vm3 = vcmask 523520   ;;  %s94_s0 = inlined_call_operand.vmem [shape: f32[16,32], index: 0, kind: input, shape index: {}]   ;;  %s95_s1 = inlined_call_operand.vmem [shape: f32[1,512], index: 1, kind: output, shape index: {}]  }
   0x1   :  { %v48_v0 = vld [vmem:[%s94_s0 + $0x3] ss:$4 sm:$0xf]   ;;  %v49_v1 = vld [vmem:[%s94_s0 + $0x2] ss:$4 sm:$0xf]  }
   0x2   :  { %7 = vrot.lane.b32.xlu0 %v48_v0, %s57_s8  ;;  %v50_v2 = vld [vmem:[%s94_s0 + $0x1] ss:$4 sm:$0xf]   ;;  %v2_v3 = vld [vmem:[%s94_s0] ss:$4 sm:$0xf]  }
   0x3   :  { %s58_s0 = smov 32   ;;  %4 = vst.msk [vmem:[#allocation0] ss:$8 sm:$0xf] %vm3_vm0, %v2_v3  }
   0x4   :  { %19 = vrot.lane.b32.xlu1 %v50_v2, %s58_s0 }
   0x6   :  { %13 = vrot.lane.b32.xlu0 %v49_v1, %s59_s15 }
  0x74   :  { %v8_v4 = vpop.permute.xlu0 %7  }
  0x75   :  { %10 = vst.msk [vmem:[#allocation0] ss:$8 sm:$0xf] %vm9_vm1, %v8_v4  }
  0x76   :  { %v20_v5 = vpop.permute.xlu1 %19  }
  0x78   :  { %v14_v6 = vpop.permute.xlu0 %13  }
  0x79   :  { %16 = vst.msk [vmem:[#allocation0] ss:$8 sm:$0xf] %vm15_vm2, %v14_v6  }
  0x7a   :  { %22 = vst.msk [vmem:[#allocation0] ss:$8 sm:$0xf] %vm21_vm3, %v20_v5  }
  0x81   :  { %v26_v7 = vld [vmem:[#allocation0] sm:$0x1]  ;;  %v30_v8 = vld [vmem:[#allocation0 + $0x8] sm:$0x1]  ;;  %v35_v9 = vld [vmem:[#allocation0 + $0x10] sm:$0x1] }
  0x82   :  { %28 = vst [vmem:[%s95_s1] sm:$0x1] %v26_v7  ;;  %51 = vst [vmem:[%s95_s1 + $0x1] sm:$0x1] %v30_v8  ;;  %v41_v10 = vld [vmem:[#allocation0 + $0x18] sm:$0x1] }
  0x83   :  { %52 = vst [vmem:[%s95_s1 + $0x2] sm:$0x1] %v35_v9  ;;  %53 = vst [vmem:[%s95_s1 + $0x3] sm:$0x1] %v41_v10 }

// kernel: decoder_forward.4
= control target key start
LH: loop header
LB: loop body
LE: loop exit
PB: predicated region body
PF: predicated region fallthrough
CT: control target
= control target key end

     0   :  { %v1082_v3 = vmov 0.0   ;;  %vm59_vm0 = vcmask 261120   ;;  %s1972_s1 = inlined_call_operand.vmem [shape: f32[32,512], index: 1, kind: input, shape index: {}]   ;;  %s1973_s3 = inlined_call_operand.vmem [shape: f32[512,512], index: 3, kind: input, shape index: {}]   ;;  %s1974_s0 = inlined_call_operand.vmem [shape: f32[2,32], index: 0, kind: input, shape index: {}]   ;;  %s1975_s2 = inlined_call_operand.vmem [shape: f32[1,512], index: 2, kind: input, shape index: {}]   ;;  %s1976_s4 = inlined_call_operand.vmem [shape: f32[1,512], index: 4, kind: input, shape index: {}]   ;;  %s1977_s5 = inlined_call_operand.vmem [shape: f32[2,512], index: 5, kind: output, shape index: {}]  }
   0x1   :  { %v22_v0 = vld [vmem:[%s1972_s1 + $0x8] sm:$0xff]  ;;  %v21_v2 = vld [vmem:[%s1972_s1] sm:$0xff]  ;;  %127 = vmatprep.mubr.f32.mxu0 %v1082_v3  ;;  %198 = vmatprep.mubr.f32.mxu1 %v1082_v3  ;;  %v24_v12 = vld [vmem:[%s1972_s1 + $0x18] sm:$0xff] }
   0x2   :  { %v26_v1 = vld [vmem:[%s1972_s1 + $0x28] sm:$0xff]  ;;  %v25_v5 = vld [vmem:[%s1972_s1 + $0x20] sm:$0xff]  ;;  %v28_v13 = vld [vmem:[%s1972_s1 + $0x38] sm:$0xff] }
   0x3   :  { %v800_v4 = vpack.c.bf16 %v26_v1, %v22_v0  ;;  %v30_v6 = vld [vmem:[%s1972_s1 + $0x48] sm:$0xff]  ;;  %v802_v8 = vpack.c.bf16 %v25_v5, %v21_v2  ;;  %v29_v10 = vld [vmem:[%s1972_s1 + $0x40] sm:$0xff]  ;;  %v23_v14 = vld [vmem:[%s1972_s1 + $0x10] sm:$0xff]  ;;  %v808_v16 = vpack.c.bf16 %v28_v13, %v24_v12 }
   0x4   :  { %v34_v7 = vld [vmem:[%s1972_s1 + $0x68] sm:$0xff]  ;;  %v33_v11 = vld [vmem:[%s1972_s1 + $0x60] sm:$0xff]  ;;  %v27_v17 = vld [vmem:[%s1972_s1 + $0x30] sm:$0xff] }
   0x5   :  { %v804_v9 = vpack.c.bf16 %v34_v7, %v30_v6  ;;  %801 = vmatprep.subr.bf16.mxu0 %v800_v4  ;;  %v806_v15 = vpack.c.bf16 %v33_v11, %v29_v10  ;;  %v32_v18 = vld [vmem:[%s1972_s1 + $0x58] sm:$0xff]  ;;  %v810_v20 = vpack.c.bf16 %v27_v17, %v23_v14  ;;  %v31_v22 = vld [vmem:[%s1972_s1 + $0x50] sm:$0xff]  ;;  %v210_v24 = vld [vmem:[%s1973_s3 + $0x8] sm:$0xff]  ;;  %809 = vmatprep.subr.bf16.mxu1 %v808_v16 }
   0x6   :  { %803 = vmatpush1.bf16.msra.mxu0 %v802_v8  ;;  %v36_v19 = vld [vmem:[%s1972_s1 + $0x78] sm:$0xff]  ;;  %v35_v23 = vld [vmem:[%s1972_s1 + $0x70] sm:$0xff]  ;;  %v20_v25 = vld [vmem:[%s1974_s0] sm:$0x3] }
   0x7   :  { %805 = vmatprep.subr.bf16.mxu0 %v804_v9  ;;  %v812_v21 = vpack.c.bf16 %v36_v19, %v32_v18  ;;  %v214_v26 = vld [vmem:[%s1973_s3 + $0x28] sm:$0xff]  ;;  %v212_v27 = vld [vmem:[%s1973_s3 + $0x18] sm:$0xff]  ;;  %811 = vmatpush1.bf16.msra.mxu1 %v810_v20  ;;  %v814_v29 = vpack.c.bf16 %v35_v23, %v31_v22  ;;  %v209_v31 = vld [vmem:[%s1973_s3] sm:$0xff] }
   0x8   :  { %v216_v28 = vld [vmem:[%s1973_s3 + $0x38] sm:$0xff]  ;;  %v816_v30 = vpack.c.bf16 %v214_v26, %v210_v24  ;;  %v213_v32 = vld [vmem:[%s1973_s3 + $0x20] sm:$0xff]  ;;  %v211_v33 = vld [vmem:[%s1973_s3 + $0x10] sm:$0xff] }
   0x9   :  { %813 = vmatprep.subr.bf16.mxu1 %v812_v21  ;;  %v944_v34 = vpack.c.bf16 %v216_v28, %v212_v27  ;;  %v818_v35 = vpack.c.bf16 %v213_v32, %v209_v31  ;;  %v215_v36 = vld [vmem:[%s1973_s3 + $0x30] sm:$0xff]  ;;  %v218_v37 = vld [vmem:[%s1973_s3 + $0x48] sm:$0xff]  ;;  %v220_v40 = vld [vmem:[%s1973_s3 + $0x58] sm:$0xff] }
   0xa   :  { %807 = vmatpush1.bf16.msra.mxu0 %v806_v15  ;;  %v222_v38 = vld [vmem:[%s1973_s3 + $0x68] sm:$0xff]  ;;  %v224_v41 = vld [vmem:[%s1973_s3 + $0x78] sm:$0xff]  ;;  %v217_v42 = vld [vmem:[%s1973_s3 + $0x40] sm:$0xff]  ;;  %v946_v44 = vpack.c.bf16 %v215_v36, %v211_v33 }
   0xb   :  { %817 = vmatprep.subr.bf16.mxu0 %v816_v30  ;;  %v820_v39 = vpack.c.bf16 %v222_v38, %v218_v37  ;;  %v221_v43 = vld [vmem:[%s1973_s3 + $0x60] sm:$0xff]  ;;  %815 = vmatpush1.bf16.msra.mxu1 %v814_v29  ;;  %v226_v45 = vld [vmem:[%s1973_s3 + $0x88] sm:$0xff]  ;;  %v948_v47 = vpack.c.bf16 %v224_v41, %v220_v40  ;;  %v219_v49 = vld [vmem:[%s1973_s3 + $0x50] sm:$0xff] }
   0xc   :  { %v230_v46 = vld [vmem:[%s1973_s3 + $0xa8] sm:$0xff]  ;;  %945 = vmatprep.subr.bf16.mxu1 %v944_v34  ;;  %v822_v48 = vpack.c.bf16 %v221_v43, %v217_v42  ;;  %v223_v50 = vld [vmem:[%s1973_s3 + $0x70] sm:$0xff]  ;;  %v228_v51 = vld [vmem:[%s1973_s3 + $0x98] sm:$0xff] }
   0xd   :  { %798 = vmatmul.mubr.msk.f32.vlgmr.msra.gmra.mrb[0].mxu0 %vm59_vm0, %v20_v25  ;;  %v824_v52 = vpack.c.bf16 %v230_v46, %v226_v45  ;;  %v232_v53 = vld [vmem:[%s1973_s3 + $0xb8] sm:$0xff]  ;;  %v225_v54 = vld [vmem:[%s1973_s3 + $0x80] sm:$0xff]  ;;  %v234_v56 = vld [vmem:[%s1973_s3 + $0xc8] sm:$0xff]  ;;  %v950_v58 = vpack.c.bf16 %v223_v50, %v219_v49 }
   0xe   :  { %819 = vmatpush1.bf16.msra.mxu0 %v818_v35  ;;  %v229_v55 = vld [vmem:[%s1973_s3 + $0xa0] sm:$0xff]  ;;  %799 = vmatmul.mubr.msk.f32.vlgmr.msra.gmra.mrb[0].mxu1 %vm59_vm0, %v20_v25  ;;  %v238_v57 = vld [vmem:[%s1973_s3 + $0xe8] sm:$0xff]  ;;  %v952_v59 = vpack.c.bf16 %v232_v53, %v228_v51  ;;  %v227_v61 = vld [vmem:[%s1973_s3 + $0x90] sm:$0xff] }
   0xf   :  { %821 = vmatprep.subr.bf16.mxu0 %v820_v39  ;;  %947 = vmatpush1.bf16.msra.mxu1 %v946_v44  ;;  %v826_v60 = vpack.c.bf16 %v229_v55, %v225_v54  ;;  %v231_v62 = vld [vmem:[%s1973_s3 + $0xb0] sm:$0xff]  ;;  %v236_v63 = vld [vmem:[%s1973_s3 + $0xd8] sm:$0xff]  ;;  %v828_v0 = vpack.c.bf16 %v238_v57, %v234_v56  ;;  %v233_v2 = vld [vmem:[%s1973_s3 + $0xc0] sm:$0xff] }
  0x10   :  { %949 = vmatprep.subr.bf16.mxu1 %v948_v47  ;;  %v240_v1 = vld [vmem:[%s1973_s3 + $0xf8] sm:$0xff]  ;;  %v237_v3 = vld [vmem:[%s1973_s3 + $0xe0] sm:$0xff]  ;;  %v242_v4 = vld [vmem:[%s1973_s3 + $0x108] sm:$0xff]  ;;  %v954_v6 = vpack.c.bf16 %v231_v62, %v227_v61 }
  0x11   :  { %v246_v5 = vld [vmem:[%s1973_s3 + $0x128] sm:$0xff]  ;;  %v956_v7 = vpack.c.bf16 %v240_v1, %v236_v63  ;;  %v830_v8 = vpack.c.bf16 %v237_v3, %v233_v2  ;;  %v235_v9 = vld [vmem:[%s1973_s3 + $0xd0] sm:$0xff]  ;;  %v244_v11 = vld [vmem:[%s1973_s3 + $0x118] sm:$0xff] }
  0x12   :  { %823 = vmatpush1.bf16.msra.mxu0 %v822_v48  ;;  %v239_v10 = vld [vmem:[%s1973_s3 + $0xf0] sm:$0xff]  ;;  %v832_v12 = vpack.c.bf16 %v246_v5, %v242_v4  ;;  %v248_v13 = vld [vmem:[%s1973_s3 + $0x138] sm:$0xff]  ;;  %v241_v14 = vld [vmem:[%s1973_s3 + $0x100] sm:$0xff] }
  0x13   :  { %825 = vmatprep.subr.bf16.mxu0 %v824_v52  ;;  %951 = vmatpush1.bf16.msra.mxu1 %v950_v58  ;;  %v245_v15 = vld [vmem:[%s1973_s3 + $0x120] sm:$0xff]  ;;  %v250_v16 = vld [vmem:[%s1973_s3 + $0x148] sm:$0xff]  ;;  %v958_v18 = vpack.c.bf16 %v239_v10, %v235_v9  ;;  %v960_v19 = vpack.c.bf16 %v248_v13, %v244_v11  ;;  %v243_v21 = vld [vmem:[%s1973_s3 + $0x110] sm:$0xff] }
  0x14   :  { %953 = vmatprep.subr.bf16.mxu1 %v952_v59  ;;  %v254_v17 = vld [vmem:[%s1973_s3 + $0x168] sm:$0xff]  ;;  %v834_v20 = vpack.c.bf16 %v245_v15, %v241_v14  ;;  %v247_v22 = vld [vmem:[%s1973_s3 + $0x130] sm:$0xff]  ;;  %v252_v23 = vld [vmem:[%s1973_s3 + $0x158] sm:$0xff] }
  0x15   :  { %v836_v24 = vpack.c.bf16 %v254_v17, %v250_v16  ;;  %v256_v25 = vld [vmem:[%s1973_s3 + $0x178] sm:$0xff]  ;;  %v249_v26 = vld [vmem:[%s1973_s3 + $0x140] sm:$0xff]  ;;  %v258_v28 = vld [vmem:[%s1973_s3 + $0x188] sm:$0xff]  ;;  %v962_v30 = vpack.c.bf16 %v247_v22, %v243_v21 }
  0x16   :  { %827 = vmatpush1.bf16.msra.mxu0 %v826_v60  ;;  %v253_v27 = vld [vmem:[%s1973_s3 + $0x160] sm:$0xff]  ;;  %v262_v29 = vld [vmem:[%s1973_s3 + $0x1a8] sm:$0xff]  ;;  %v964_v31 = vpack.c.bf16 %v256_v25, %v252_v23  ;;  %v251_v33 = vld [vmem:[%s1973_s3 + $0x150] sm:$0xff] }
  0x17   :  { %829 = vmatprep.subr.bf16.mxu0 %v828_v0  ;;  %955 = vmatpush1.bf16.msra.mxu1 %v954_v6  ;;  %v838_v32 = vpack.c.bf16 %v253_v27, %v249_v26  ;;  %v255_v34 = vld [vmem:[%s1973_s3 + $0x170] sm:$0xff]  ;;  %v260_v35 = vld [vmem:[%s1973_s3 + $0x198] sm:$0xff]  ;;  %v840_v36 = vpack.c.bf16 %v262_v29, %v258_v28  ;;  %v257_v38 = vld [vmem:[%s1973_s3 + $0x180] sm:$0xff] }
  0x18   :  { %957 = vmatprep.subr.bf16.mxu1 %v956_v7  ;;  %v264_v37 = vld [vmem:[%s1973_s3 + $0x1b8] sm:$0xff]  ;;  %v261_v39 = vld [vmem:[%s1973_s3 + $0x1a0] sm:$0xff]  ;;  %v266_v40 = vld [vmem:[%s1973_s3 + $0x1c8] sm:$0xff]  ;;  %v966_v42 = vpack.c.bf16 %v255_v34, %v251_v33 }
  0x19   :  { %v270_v41 = vld [vmem:[%s1973_s3 + $0x1e8] sm:$0xff]  ;;  %v968_v43 = vpack.c.bf16 %v264_v37, %v260_v35  ;;  %v842_v44 = vpack.c.bf16 %v261_v39, %v257_v38  ;;  %v259_v45 = vld [vmem:[%s1973_s3 + $0x190] sm:$0xff]  ;;  %v268_v47 = vld [vmem:[%s1973_s3 + $0x1d8] sm:$0xff] }
  0x1a   :  { %831 = vmatpush1.bf16.msra.mxu0 %v830_v8  ;;  %v263_v46 = vld [vmem:[%s1973_s3 + $0x1b0] sm:$0xff]  ;;  %v844_v48 = vpack.c.bf16 %v270_v41, %v266_v40  ;;  %v272_v49 = vld [vmem:[%s1973_s3 + $0x1f8] sm:$0xff]  ;;  %v265_v50 = vld [vmem:[%s1973_s3 + $0x1c0] sm:$0xff] }
  0x1b   :  { %833 = vmatprep.subr.bf16.mxu0 %v832_v12  ;;  %959 = vmatpush1.bf16.msra.mxu1 %v958_v18  ;;  %v269_v51 = vld [vmem:[%s1973_s3 + $0x1e0] sm:$0xff]  ;;  %v274_v52 = vld [vmem:[%s1973_s3 + $0x208] sm:$0xff]  ;;  %v970_v54 = vpack.c.bf16 %v263_v46, %v259_v45  ;;  %v972_v55 = vpack.c.bf16 %v272_v49, %v268_v47  ;;  %v267_v57 = vld [vmem:[%s1973_s3 + $0x1d0] sm:$0xff] }
  0x1c   :  { %961 = vmatprep.subr.bf16.mxu1 %v960_v19  ;;  %v278_v53 = vld [vmem:[%s1973_s3 + $0x228] sm:$0xff]  ;;  %v846_v56 = vpack.c.bf16 %v269_v51, %v265_v50  ;;  %v271_v58 = vld [vmem:[%s1973_s3 + $0x1f0] sm:$0xff]  ;;  %v276_v59 = vld [vmem:[%s1973_s3 + $0x218] sm:$0xff] }
  0x1d   :  { %v848_v60 = vpack.c.bf16 %v278_v53, %v274_v52  ;;  %v280_v61 = vld [vmem:[%s1973_s3 + $0x238] sm:$0xff]  ;;  %v273_v62 = vld [vmem:[%s1973_s3 + $0x200] sm:$0xff]  ;;  %v282_v0 = vld [vmem:[%s1973_s3 + $0x248] sm:$0xff]  ;;  %v974_v2 = vpack.c.bf16 %v271_v58, %v267_v57 }
  0x1e   :  { %835 = vmatpush1.bf16.msra.mxu0 %v834_v20  ;;  %v277_v63 = vld [vmem:[%s1973_s3 + $0x220] sm:$0xff]  ;;  %v286_v1 = vld [vmem:[%s1973_s3 + $0x268] sm:$0xff]  ;;  %v976_v3 = vpack.c.bf16 %v280_v61, %v276_v59  ;;  %v275_v5 = vld [vmem:[%s1973_s3 + $0x210] sm:$0xff] }
  0x1f   :  { %837 = vmatprep.subr.bf16.mxu0 %v836_v24  ;;  %963 = vmatpush1.bf16.msra.mxu1 %v962_v30  ;;  %v850_v4 = vpack.c.bf16 %v277_v63, %v273_v62  ;;  %v279_v6 = vld [vmem:[%s1973_s3 + $0x230] sm:$0xff]  ;;  %v284_v7 = vld [vmem:[%s1973_s3 + $0x258] sm:$0xff]  ;;  %v852_v8 = vpack.c.bf16 %v286_v1, %v282_v0  ;;  %v281_v10 = vld [vmem:[%s1973_s3 + $0x240] sm:$0xff] }
  0x20   :  { %965 = vmatprep.subr.bf16.mxu1 %v964_v31  ;;  %v288_v9 = vld [vmem:[%s1973_s3 + $0x278] sm:$0xff]  ;;  %v285_v11 = vld [vmem:[%s1973_s3 + $0x260] sm:$0xff]  ;;  %v290_v12 = vld [vmem:[%s1973_s3 + $0x288] sm:$0xff]  ;;  %v978_v14 = vpack.c.bf16 %v279_v6, %v275_v5 }
  0x21   :  { %v294_v13 = vld [vmem:[%s1973_s3 + $0x2a8] sm:$0xff]  ;;  %v980_v15 = vpack.c.bf16 %v288_v9, %v284_v7  ;;  %v854_v16 = vpack.c.bf16 %v285_v11, %v281_v10  ;;  %v283_v17 = vld [vmem:[%s1973_s3 + $0x250] sm:$0xff]  ;;  %v292_v19 = vld [vmem:[%s1973_s3 + $0x298] sm:$0xff] }
  0x22   :  { %839 = vmatpush1.bf16.msra.mxu0 %v838_v32  ;;  %v287_v18 = vld [vmem:[%s1973_s3 + $0x270] sm:$0xff]  ;;  %v856_v20 = vpack.c.bf16 %v294_v13, %v290_v12  ;;  %v296_v21 = vld [vmem:[%s1973_s3 + $0x2b8] sm:$0xff]  ;;  %v289_v22 = vld [vmem:[%s1973_s3 + $0x280] sm:$0xff] }
  0x23   :  { %841 = vmatprep.subr.bf16.mxu0 %v840_v36  ;;  %967 = vmatpush1.bf16.msra.mxu1 %v966_v42  ;;  %v293_v23 = vld [vmem:[%s1973_s3 + $0x2a0] sm:$0xff]  ;;  %v298_v24 = vld [vmem:[%s1973_s3 + $0x2c8] sm:$0xff]  ;;  %v982_v26 = vpack.c.bf16 %v287_v18, %v283_v17  ;;  %v984_v27 = vpack.c.bf16 %v296_v21, %v292_v19  ;;  %v291_v29 = vld [vmem:[%s1973_s3 + $0x290] sm:$0xff] }
  0x24   :  { %969 = vmatprep.subr.bf16.mxu1 %v968_v43  ;;  %v302_v25 = vld [vmem:[%s1973_s3 + $0x2e8] sm:$0xff]  ;;  %v858_v28 = vpack.c.bf16 %v293_v23, %v289_v22  ;;  %v295_v30 = vld [vmem:[%s1973_s3 + $0x2b0] sm:$0xff]  ;;  %v300_v31 = vld [vmem:[%s1973_s3 + $0x2d8] sm:$0xff] }
  0x25   :  { %v860_v32 = vpack.c.bf16 %v302_v25, %v298_v24  ;;  %v304_v33 = vld [vmem:[%s1973_s3 + $0x2f8] sm:$0xff]  ;;  %v297_v34 = vld [vmem:[%s1973_s3 + $0x2c0] sm:$0xff]  ;;  %v306_v36 = vld [vmem:[%s1973_s3 + $0x308] sm:$0xff]  ;;  %v986_v38 = vpack.c.bf16 %v295_v30, %v291_v29 }
  0x26   :  { %843 = vmatpush1.bf16.msra.mxu0 %v842_v44  ;;  %v301_v35 = vld [vmem:[%s1973_s3 + $0x2e0] sm:$0xff]  ;;  %v310_v37 = vld [vmem:[%s1973_s3 + $0x328] sm:$0xff]  ;;  %v988_v39 = vpack.c.bf16 %v304_v33, %v300_v31  ;;  %v299_v41 = vld [vmem:[%s1973_s3 + $0x2d0] sm:$0xff] }
  0x27   :  { %845 = vmatprep.subr.bf16.mxu0 %v844_v48  ;;  %971 = vmatpush1.bf16.msra.mxu1 %v970_v54  ;;  %v862_v40 = vpack.c.bf16 %v301_v35, %v297_v34  ;;  %v303_v42 = vld [vmem:[%s1973_s3 + $0x2f0] sm:$0xff]  ;;  %v308_v43 = vld [vmem:[%s1973_s3 + $0x318] sm:$0xff]  ;;  %v864_v44 = vpack.c.bf16 %v310_v37, %v306_v36  ;;  %v305_v46 = vld [vmem:[%s1973_s3 + $0x300] sm:$0xff] }
  0x28   :  { %973 = vmatprep.subr.bf16.mxu1 %v972_v55  ;;  %v312_v45 = vld [vmem:[%s1973_s3 + $0x338] sm:$0xff]  ;;  %v309_v47 = vld [vmem:[%s1973_s3 + $0x320] sm:$0xff]  ;;  %v314_v48 = vld [vmem:[%s1973_s3 + $0x348] sm:$0xff]  ;;  %v990_v50 = vpack.c.bf16 %v303_v42, %v299_v41 }
  0x29   :  { %v318_v49 = vld [vmem:[%s1973_s3 + $0x368] sm:$0xff]  ;;  %v992_v51 = vpack.c.bf16 %v312_v45, %v308_v43  ;;  %v866_v52 = vpack.c.bf16 %v309_v47, %v305_v46  ;;  %v307_v53 = vld [vmem:[%s1973_s3 + $0x310] sm:$0xff]  ;;  %v316_v55 = vld [vmem:[%s1973_s3 + $0x358] sm:$0xff] }
  0x2a   :  { %847 = vmatpush1.bf16.msra.mxu0 %v846_v56  ;;  %v311_v54 = vld [vmem:[%s1973_s3 + $0x330] sm:$0xff]  ;;  %v868_v56 = vpack.c.bf16 %v318_v49, %v314_v48  ;;  %v320_v57 = vld [vmem:[%s1973_s3 + $0x378] sm:$0xff]  ;;  %v313_v58 = vld [vmem:[%s1973_s3 + $0x340] sm:$0xff] }
  0x2b   :  { %849 = vmatprep.subr.bf16.mxu0 %v848_v60  ;;  %975 = vmatpush1.bf16.msra.mxu1 %v974_v2  ;;  %v317_v59 = vld [vmem:[%s1973_s3 + $0x360] sm:$0xff]  ;;  %v322_v60 = vld [vmem:[%s1973_s3 + $0x388] sm:$0xff]  ;;  %v994_v62 = vpack.c.bf16 %v311_v54, %v307_v53  ;;  %v996_v63 = vpack.c.bf16 %v320_v57, %v316_v55  ;;  %v315_v1 = vld [vmem:[%s1973_s3 + $0x350] sm:$0xff] }
  0x2c   :  { %977 = vmatprep.subr.bf16.mxu1 %v976_v3  ;;  %v326_v61 = vld [vmem:[%s1973_s3 + $0x3a8] sm:$0xff]  ;;  %v870_v0 = vpack.c.bf16 %v317_v59, %v313_v58  ;;  %v319_v2 = vld [vmem:[%s1973_s3 + $0x370] sm:$0xff]  ;;  %v324_v3 = vld [vmem:[%s1973_s3 + $0x398] sm:$0xff] }
  0x2d   :  { %v328_v5 = vld [vmem:[%s1973_s3 + $0x3b8] sm:$0xff]  ;;  %v321_v6 = vld [vmem:[%s1973_s3 + $0x380] sm:$0xff]  ;;  %v323_v11 = vld [vmem:[%s1973_s3 + $0x390] sm:$0xff] }
  0x2e   :  { %851 = vmatpush1.bf16.msra.mxu0 %v850_v4  ;;  %v872_v4 = vpack.c.bf16 %v326_v61, %v322_v60  ;;  %v325_v7 = vld [vmem:[%s1973_s3 + $0x3a0] sm:$0xff]  ;;  %v1000_v9 = vpack.c.bf16 %v328_v5, %v324_v3  ;;  %v327_v12 = vld [vmem:[%s1973_s3 + $0x3b0] sm:$0xff]  ;;  %v336_v18 = vld [vmem:[%s1973_s3 + $0x3f8] sm:$0xff] }
  0x2f   :  { %853 = vmatprep.subr.bf16.mxu0 %v852_v8  ;;  %979 = vmatpush1.bf16.msra.mxu1 %v978_v14  ;;  %v998_v8 = vpack.c.bf16 %v319_v2, %v315_v1  ;;  %v874_v10 = vpack.c.bf16 %v325_v7, %v321_v6  ;;  %v1002_v13 = vpack.c.bf16 %v327_v12, %v323_v11  ;;  %v330_v14 = vld [vmem:[%s1973_s3 + $0x3c8] sm:$0xff]  ;;  %v329_v19 = vld [vmem:[%s1973_s3 + $0x3c0] sm:$0xff]  ;;  %v331_v23 = vld [vmem:[%s1973_s3 + $0x3d0] sm:$0xff] }
  0x30   :  { %981 = vmatprep.subr.bf16.mxu1 %v980_v15  ;;  %v334_v15 = vld [vmem:[%s1973_s3 + $0x3e8] sm:$0xff]  ;;  %v335_v24 = vld [vmem:[%s1973_s3 + $0x3f0] sm:$0xff]  ;;  %v344_v30 = vld [vmem:[%s1973_s3 + $0x438] sm:$0xff] }
  0x31   :  { %v876_v17 = vpack.c.bf16 %v334_v15, %v330_v14  ;;  %v1006_v25 = vpack.c.bf16 %v335_v24, %v331_v23  ;;  %v1569_v35 = vld [vmem:[%s1975_s2] sm:$0xf]  ;;  %v339_v45 = vld [vmem:[%s1973_s3 + $0x410] sm:$0xff]  ;;  %v346_v47 = vld [vmem:[%s1973_s3 + $0x448] sm:$0xff] }
  0x32   :  { %855 = vmatpush1.bf16.msra.mxu0 %v854_v16  ;;  %v332_v16 = vld [vmem:[%s1973_s3 + $0x3d8] sm:$0xff]  ;;  %v337_v41 = vld [vmem:[%s1973_s3 + $0x400] sm:$0xff]  ;;  %v343_v46 = vld [vmem:[%s1973_s3 + $0x430] sm:$0xff] }
  0x33   :  { %857 = vmatprep.subr.bf16.mxu0 %v856_v20  ;;  %983 = vmatpush1.bf16.msra.mxu1 %v982_v26  ;;  %v333_v20 = vld [vmem:[%s1973_s3 + $0x3e0] sm:$0xff]  ;;  %v1004_v21 = vpack.c.bf16 %v336_v18, %v332_v16  ;;  %v338_v26 = vld [vmem:[%s1973_s3 + $0x408] sm:$0xff]  ;;  %v360_v5 = vld [vmem:[%s1973_s3 + $0x4b8] sm:$0xff] }
  0x34   :  { %985 = vmatprep.subr.bf16.mxu1 %v984_v27  ;;  %v878_v22 = vpack.c.bf16 %v333_v20, %v329_v19  ;;  %v342_v27 = vld [vmem:[%s1973_s3 + $0x428] sm:$0xff]  ;;  %v341_v42 = vld [vmem:[%s1973_s3 + $0x420] sm:$0xff]  ;;  %v359_v14 = vld [vmem:[%s1973_s3 + $0x4b0] sm:$0xff] }
  0x35   :  { %v880_v29 = vpack.c.bf16 %v342_v27, %v338_v26  ;;  %v882_v55 = vpack.c.bf16 %v341_v42, %v337_v41  ;;  %v345_v57 = vld [vmem:[%s1973_s3 + $0x440] sm:$0xff]  ;;  %v354_v1 = vld [vmem:[%s1973_s3 + $0x488] sm:$0xff]  ;;  %v368_v18 = vld [vmem:[%s1973_s3 + $0x4f8] sm:$0xff] }
  0x36   :  { %859 = vmatpush1.bf16.msra.mxu0 %v858_v28  ;;  %v340_v28 = vld [vmem:[%s1973_s3 + $0x418] sm:$0xff]  ;;  %v349_v58 = vld [vmem:[%s1973_s3 + $0x460] sm:$0xff]  ;;  %v358_v3 = vld [vmem:[%s1973_s3 + $0x4a8] sm:$0xff] }
  0x37   :  { %861 = vmatprep.subr.bf16.mxu0 %v860_v32  ;;  %987 = vmatpush1.bf16.msra.mxu1 %v986_v38  ;;  %v1008_v31 = vpack.c.bf16 %v344_v30, %v340_v28  ;;  %v39_v32 = vlaneseq  ;;  %v886_v7 = vpack.c.bf16 %v349_v58, %v345_v57  ;;  %v888_v11 = vpack.c.bf16 %v358_v3, %v354_v1  ;;  %v362_v15 = vld [vmem:[%s1973_s3 + $0x4c8] sm:$0xff]  ;;  %v367_v26 = vld [vmem:[%s1973_s3 + $0x4f0] sm:$0xff]  ;;  %v376_v30 = vld [vmem:[%s1973_s3 + $0x538] sm:$0xff] }
  0x38   :  { %989 = vmatprep.subr.bf16.mxu1 %v988_v39  ;;  %v366_v16 = vld [vmem:[%s1973_s3 + $0x4e8] sm:$0xff]  ;;  %v371_v42 = vld [vmem:[%s1973_s3 + $0x510] sm:$0xff] }
  0x39   :  { %v1563_v33 = vshrl.u32 %v39_v32, 7  ;;  %v892_v23 = vpack.c.bf16 %v366_v16, %v362_v15  ;;  %v370_v27 = vld [vmem:[%s1973_s3 + $0x508] sm:$0xff]  ;;  %v387_v3 = vld [vmem:[%s1973_s3 + $0x590] sm:$0xff] }
  0x3a   :  { %863 = vmatpush1.bf16.msra.mxu0 %v862_v40  ;;  %v374_v28 = vld [vmem:[%s1973_s3 + $0x528] sm:$0xff]  ;;  %v395_v15 = vld [vmem:[%s1973_s3 + $0x5d0] sm:$0xff] }
  0x3b   :  { %865 = vmatprep.subr.bf16.mxu0 %v864_v44  ;;  %991 = vmatpush1.bf16.msra.mxu1 %v990_v50  ;;  %v41_v34 = vsub.s32 0, %v1563_v33  ;;  %v45_v36 = vsub.s32 1, %v1563_v33  ;;  %v53_v38 = vsub.s32 3, %v1563_v33  ;;  %v350_v50 = vld [vmem:[%s1973_s3 + $0x468] sm:$0xff]  ;;  %v399_v16 = vld [vmem:[%s1973_s3 + $0x5f0] sm:$0xff] }
  0x3c   :  { %993 = vmatprep.subr.bf16.mxu1 %v992_v51  ;;  %v348_v51 = vld [vmem:[%s1973_s3 + $0x458] sm:$0xff]  ;;  %v884_v61 = vpack.c.bf16 %v350_v50, %v346_v47  ;;  %v377_v50 = vld [vmem:[%s1973_s3 + $0x540] sm:$0xff]  ;;  %v386_v57 = vld [vmem:[%s1973_s3 + $0x588] sm:$0xff] }
  0x3d   :  { %v42_v37 = vrot.slane %v1569_v35, %v41_v34  ;;  %v46_v39 = vrot.slane %v1569_v35, %v45_v36  ;;  %v54_v48 = vrot.slane %v1569_v35, %v53_v38  ;;  %v384_v47 = vld [vmem:[%s1973_s3 + $0x578] sm:$0xff]  ;;  %v390_v58 = vld [vmem:[%s1973_s3 + $0x5a8] sm:$0xff] }
  0x3e   :  { %867 = vmatpush1.bf16.msra.mxu0 %v866_v52  ;;  %v352_v52 = vld [vmem:[%s1973_s3 + $0x478] sm:$0xff]  ;;  %v904_v1 = vpack.c.bf16 %v390_v58, %v386_v57  ;;  %v419_v57 = vld [vmem:[%s1973_s3 + $0x690] sm:$0xff] }
  0x3f   :  { %869 = vmatprep.subr.bf16.mxu0 %v868_v56  ;;  %995 = vmatpush1.bf16.msra.mxu1 %v994_v62  ;;  %v1010_v56 = vpack.c.bf16 %v343_v46, %v339_v45  ;;  %v1012_v62 = vpack.c.bf16 %v352_v52, %v348_v51  ;;  %v382_v45 = vld [vmem:[%s1973_s3 + $0x568] sm:$0xff]  ;;  %v380_v46 = vld [vmem:[%s1973_s3 + $0x558] sm:$0xff]  ;;  %v381_v51 = vld [vmem:[%s1973_s3 + $0x560] sm:$0xff] }
  0x40   :  { %997 = vmatprep.subr.bf16.mxu1 %v996_v63  ;;  %v347_v63 = vld [vmem:[%s1973_s3 + $0x450] sm:$0xff] }
  0x41   :  { %v423_v58 = vld [vmem:[%s1973_s3 + $0x6b0] sm:$0xff] }
  0x42   :  { %871 = vmatpush1.bf16.msra.mxu0 %v870_v0  ;;  %v351_v0 = vld [vmem:[%s1973_s3 + $0x470] sm:$0xff] }
  0x43   :  { %873 = vmatprep.subr.bf16.mxu0 %v872_v4  ;;  %999 = vmatpush1.bf16.msra.mxu1 %v998_v8  ;;  %v356_v4 = vld [vmem:[%s1973_s3 + $0x498] sm:$0xff]  ;;  %v1014_v8 = vpack.c.bf16 %v351_v0, %v347_v63  ;;  %v385_v63 = vld [vmem:[%s1973_s3 + $0x580] sm:$0xff] }
  0x44   :  { %1001 = vmatprep.subr.bf16.mxu1 %v1000_v9  ;;  %v353_v9 = vld [vmem:[%s1973_s3 + $0x480] sm:$0xff]  ;;  %v1016_v12 = vpack.c.bf16 %v360_v5, %v356_v4  ;;  %v391_v4 = vld [vmem:[%s1973_s3 + $0x5b0] sm:$0xff]  ;;  %v394_v5 = vld [vmem:[%s1973_s3 + $0x5c8] sm:$0xff] }
  0x45   :  { %v389_v0 = vld [vmem:[%s1973_s3 + $0x5a0] sm:$0xff] }
  0x46   :  { %875 = vmatpush1.bf16.msra.mxu0 %v874_v10  ;;  %v357_v10 = vld [vmem:[%s1973_s3 + $0x4a0] sm:$0xff] }
  0x47   :  { %1003 = vmatpush1.bf16.msra.mxu1 %v1002_v13  ;;  %877 = vmatprep.subr.bf16.mxu0 %v876_v17  ;;  %v355_v13 = vld [vmem:[%s1973_s3 + $0x490] sm:$0xff]  ;;  %v364_v17 = vld [vmem:[%s1973_s3 + $0x4d8] sm:$0xff]  ;;  %v890_v19 = vpack.c.bf16 %v357_v10, %v353_v9  ;;  %v906_v9 = vpack.c.bf16 %v389_v0, %v385_v63  ;;  %v1034_v10 = vpack.c.bf16 %v391_v4, %v387_v3 }
  0x48   :  { %1005 = vmatprep.subr.bf16.mxu1 %v1004_v21  ;;  %v1018_v20 = vpack.c.bf16 %v359_v14, %v355_v13  ;;  %v361_v21 = vld [vmem:[%s1973_s3 + $0x4c0] sm:$0xff]  ;;  %v1020_v24 = vpack.c.bf16 %v368_v18, %v364_v17  ;;  %v402_v17 = vld [vmem:[%s1973_s3 + $0x608] sm:$0xff]  ;;  %v1050_v0 = vpack.c.bf16 %v423_v58, %v419_v57 }
  0x49   :  { %v406_v18 = vld [vmem:[%s1973_s3 + $0x628] sm:$0xff] }
  0x4a   :  { %879 = vmatpush1.bf16.msra.mxu0 %v878_v22  ;;  %v365_v22 = vld [vmem:[%s1973_s3 + $0x4e0] sm:$0xff] }
  0x4b   :  { %1007 = vmatpush1.bf16.msra.mxu1 %v1006_v25  ;;  %881 = vmatprep.subr.bf16.mxu0 %v880_v29  ;;  %v363_v25 = vld [vmem:[%s1973_s3 + $0x4d0] sm:$0xff]  ;;  %v372_v29 = vld [vmem:[%s1973_s3 + $0x518] sm:$0xff] }
  0x4c   :  { %1009 = vmatprep.subr.bf16.mxu1 %v1008_v31  ;;  %v894_v31 = vpack.c.bf16 %v365_v22, %v361_v21  ;;  %v1022_v32 = vpack.c.bf16 %v367_v26, %v363_v25  ;;  %v1024_v41 = vpack.c.bf16 %v376_v30, %v372_v29  ;;  %v1038_v22 = vpack.c.bf16 %v399_v16, %v395_v15  ;;  %v410_v29 = vld [vmem:[%s1973_s3 + $0x648] sm:$0xff] }
  0x4d   :  { %v912_v25 = vpack.c.bf16 %v406_v18, %v402_v17  ;;  %v414_v30 = vld [vmem:[%s1973_s3 + $0x668] sm:$0xff]  ;;  %v435_v17 = vld [vmem:[%s1973_s3 + $0x710] sm:$0xff] }
  0x4e   :  { %v439_v18 = vld [vmem:[%s1973_s3 + $0x730] sm:$0xff] }
  0xe0   :  { %v129_v40 = vpop.f32.mrb[0].mxu0 }
  0xe1   :  { %v130_v43 = vadd.f32 %v129_v40, %v42_v37  ;;  %v131_v44 = vpop.f32.mrb[1].mxu0  ;;  %v1606_v53 = vpop.f32.mrb[0].mxu1  ;;  %v369_v37 = vld [vmem:[%s1973_s3 + $0x500] sm:$0xff]  ;;  %v896_v40 = vpack.c.bf16 %v374_v28, %v370_v27  ;;  %v403_v27 = vld [vmem:[%s1973_s3 + $0x610] sm:$0xff] }
  0xe2   :  { %v132_v49 = vadd.f32 %v131_v44, %v46_v39  ;;  %v202_v59 = vpop.f32.mrb[1].mxu1  ;;  %v373_v39 = vld [vmem:[%s1973_s3 + $0x520] sm:$0xff]  ;;  %v378_v44 = vld [vmem:[%s1973_s3 + $0x548] sm:$0xff]  ;;  %v407_v28 = vld [vmem:[%s1973_s3 + $0x630] sm:$0xff] }
  0xe3   :  { %v205_v60 = vmax.f32 %v130_v43, 0.0  ;;  %v203_v2 = vadd.f32 %v202_v59, %v54_v48  ;;  %v375_v43 = vld [vmem:[%s1973_s3 + $0x530] sm:$0xff]  ;;  %v898_v48 = vpack.c.bf16 %v373_v39, %v369_v37  ;;  %v900_v52 = vpack.c.bf16 %v382_v45, %v378_v44  ;;  %v388_v59 = vld [vmem:[%s1973_s3 + $0x598] sm:$0xff] }
  0xe4   :  { %v206_v54 = vmax.f32 %v132_v49, 0.0  ;;  %v1026_v49 = vpack.c.bf16 %v375_v43, %v371_v42  ;;  %v1042_v39 = vpack.c.bf16 %v407_v28, %v403_v27  ;;  %v916_v42 = vpack.c.bf16 %v414_v30, %v410_v29  ;;  %v411_v44 = vld [vmem:[%s1973_s3 + $0x650] sm:$0xff] }
  0xe5   :  { %v208_v6 = vmax.f32 %v203_v2, 0.0  ;;  %v415_v45 = vld [vmem:[%s1973_s3 + $0x670] sm:$0xff] }
  0xe6   :  { %551 = vmatprep.mubr.f32.mxu0 %v206_v54  ;;  %693 = vmatprep.mubr.f32.mxu1 %v206_v54  ;;  %v1028_v54 = vpack.c.bf16 %v384_v47, %v380_v46  ;;  %v418_v46 = vld [vmem:[%s1973_s3 + $0x688] sm:$0xff]  ;;  %v443_v29 = vld [vmem:[%s1973_s3 + $0x750] sm:$0xff] }
  0xe7   :  { %552 = vmatmul.mubr.f32.vlgmr.msra.gmra.mrb[2].mxu0 %v205_v60  ;;  %694 = vmatmul.mubr.f32.vlgmr.msra.gmra.mrb[2].mxu1 %v205_v60  ;;  %v392_v60 = vld [vmem:[%s1973_s3 + $0x5b8] sm:$0xff]  ;;  %v422_v47 = vld [vmem:[%s1973_s3 + $0x6a8] sm:$0xff]  ;;  %v447_v30 = vld [vmem:[%s1973_s3 + $0x770] sm:$0xff] }
  0xe8   :  { %883 = vmatpush1.bf16.msra.mxu0 %v882_v55  ;;  %1011 = vmatpush1.bf16.msra.mxu1 %v1010_v56  ;;  %v379_v55 = vld [vmem:[%s1973_s3 + $0x550] sm:$0xff]  ;;  %v1032_v2 = vpack.c.bf16 %v392_v60, %v388_v59  ;;  %v426_v59 = vld [vmem:[%s1973_s3 + $0x6c8] sm:$0xff] }
  0xe9   :  { %885 = vmatprep.subr.bf16.mxu0 %v884_v61  ;;  %1013 = vmatprep.subr.bf16.mxu1 %v1012_v62  ;;  %v383_v56 = vld [vmem:[%s1973_s3 + $0x570] sm:$0xff]  ;;  %v902_v61 = vpack.c.bf16 %v381_v51, %v377_v50  ;;  %v1046_v51 = vpack.c.bf16 %v415_v45, %v411_v44  ;;  %v430_v60 = vld [vmem:[%s1973_s3 + $0x6e8] sm:$0xff]  ;;  %v49_v44 = vsub.s32 2, %v1563_v33 }
  0xea   :  { %622 = vmatprep.mubr.f32.mxu0 %v208_v6  ;;  %764 = vmatprep.mubr.f32.mxu1 %v208_v6  ;;  %v1030_v62 = vpack.c.bf16 %v383_v56, %v379_v55  ;;  %v398_v6 = vld [vmem:[%s1973_s3 + $0x5e8] sm:$0xff]  ;;  %v920_v55 = vpack.c.bf16 %v422_v47, %v418_v46  ;;  %v924_v3 = vpack.c.bf16 %v430_v60, %v426_v59  ;;  %v451_v47 = vld [vmem:[%s1973_s3 + $0x790] sm:$0xff]  ;;  %v461_v60 = vld [vmem:[%s1973_s3 + $0x7e0] sm:$0xff] }
  0xeb   :  { %v908_v13 = vpack.c.bf16 %v398_v6, %v394_v5  ;;  %v427_v5 = vld [vmem:[%s1973_s3 + $0x6d0] sm:$0xff]  ;;  %v50_v57 = vrot.slane %v1569_v35, %v49_v44 }
  0xec   :  { %887 = vmatpush1.bf16.msra.mxu0 %v886_v7  ;;  %1015 = vmatpush1.bf16.msra.mxu1 %v1014_v8  ;;  %v396_v7 = vld [vmem:[%s1973_s3 + $0x5d8] sm:$0xff]  ;;  %v431_v6 = vld [vmem:[%s1973_s3 + $0x6f0] sm:$0xff] }
  0xed   :  { %889 = vmatprep.subr.bf16.mxu0 %v888_v11  ;;  %1017 = vmatprep.subr.bf16.mxu1 %v1016_v12  ;;  %v400_v8 = vld [vmem:[%s1973_s3 + $0x5f8] sm:$0xff]  ;;  %v393_v11 = vld [vmem:[%s1973_s3 + $0x5c0] sm:$0xff] }
  0xee   :  { %v397_v12 = vld [vmem:[%s1973_s3 + $0x5e0] sm:$0xff]  ;;  %v1036_v14 = vpack.c.bf16 %v400_v8, %v396_v7  ;;  %v434_v7 = vld [vmem:[%s1973_s3 + $0x708] sm:$0xff] }
  0xef   :  { %v910_v21 = vpack.c.bf16 %v397_v12, %v393_v11  ;;  %v438_v8 = vld [vmem:[%s1973_s3 + $0x728] sm:$0xff]  ;;  %v1054_v12 = vpack.c.bf16 %v431_v6, %v427_v5 }
  0xf0   :  { %891 = vmatpush1.bf16.msra.mxu0 %v890_v19  ;;  %1019 = vmatpush1.bf16.msra.mxu1 %v1018_v20  ;;  %v404_v19 = vld [vmem:[%s1973_s3 + $0x618] sm:$0xff]  ;;  %v928_v15 = vpack.c.bf16 %v438_v8, %v434_v7 }
  0xf1   :  { %893 = vmatprep.subr.bf16.mxu0 %v892_v23  ;;  %1021 = vmatprep.subr.bf16.mxu1 %v1020_v24  ;;  %v408_v20 = vld [vmem:[%s1973_s3 + $0x638] sm:$0xff]  ;;  %v401_v23 = vld [vmem:[%s1973_s3 + $0x600] sm:$0xff] }
  0xf2   :  { %v405_v24 = vld [vmem:[%s1973_s3 + $0x620] sm:$0xff]  ;;  %v1040_v26 = vpack.c.bf16 %v408_v20, %v404_v19  ;;  %v442_v19 = vld [vmem:[%s1973_s3 + $0x748] sm:$0xff] }
  0xf3   :  { %v914_v37 = vpack.c.bf16 %v405_v24, %v401_v23  ;;  %v446_v20 = vld [vmem:[%s1973_s3 + $0x768] sm:$0xff]  ;;  %v1058_v24 = vpack.c.bf16 %v439_v18, %v435_v17 }
  0xf4   :  { %895 = vmatpush1.bf16.msra.mxu0 %v894_v31  ;;  %1023 = vmatpush1.bf16.msra.mxu1 %v1022_v32  ;;  %v412_v31 = vld [vmem:[%s1973_s3 + $0x658] sm:$0xff]  ;;  %v932_v27 = vpack.c.bf16 %v446_v20, %v442_v19 }
  0xf5   :  { %897 = vmatprep.subr.bf16.mxu0 %v896_v40  ;;  %1025 = vmatprep.subr.bf16.mxu1 %v1024_v41  ;;  %v416_v32 = vld [vmem:[%s1973_s3 + $0x678] sm:$0xff]  ;;  %v409_v40 = vld [vmem:[%s1973_s3 + $0x640] sm:$0xff] }
  0xf6   :  { %v413_v41 = vld [vmem:[%s1973_s3 + $0x660] sm:$0xff]  ;;  %v1044_v43 = vpack.c.bf16 %v416_v32, %v412_v31  ;;  %v450_v31 = vld [vmem:[%s1973_s3 + $0x788] sm:$0xff] }
  0xf7   :  { %v918_v50 = vpack.c.bf16 %v413_v41, %v409_v40  ;;  %v454_v32 = vld [vmem:[%s1973_s3 + $0x7a8] sm:$0xff]  ;;  %v1062_v41 = vpack.c.bf16 %v447_v30, %v443_v29 }
  0xf8   :  { %899 = vmatpush1.bf16.msra.mxu0 %v898_v48  ;;  %1027 = vmatpush1.bf16.msra.mxu1 %v1026_v49  ;;  %v420_v48 = vld [vmem:[%s1973_s3 + $0x698] sm:$0xff]  ;;  %v936_v45 = vpack.c.bf16 %v454_v32, %v450_v31 }
  0xf9   :  { %901 = vmatprep.subr.bf16.mxu0 %v900_v52  ;;  %1029 = vmatprep.subr.bf16.mxu1 %v1028_v54  ;;  %v424_v49 = vld [vmem:[%s1973_s3 + $0x6b8] sm:$0xff]  ;;  %v417_v52 = vld [vmem:[%s1973_s3 + $0x680] sm:$0xff] }
  0xfa   :  { %v421_v54 = vld [vmem:[%s1973_s3 + $0x6a0] sm:$0xff]  ;;  %v1048_v56 = vpack.c.bf16 %v424_v49, %v420_v48  ;;  %v455_v48 = vld [vmem:[%s1973_s3 + $0x7b0] sm:$0xff]  ;;  %v458_v49 = vld [vmem:[%s1973_s3 + $0x7c8] sm:$0xff] }
  0xfb   :  { %v922_v63 = vpack.c.bf16 %v421_v54, %v417_v52  ;;  %v464_v52 = vld [vmem:[%s1973_s3 + $0x7f8] sm:$0xff] }
  0xfc   :  { %903 = vmatpush1.bf16.msra.mxu0 %v902_v61  ;;  %1031 = vmatpush1.bf16.msra.mxu1 %v1030_v62  ;;  %v428_v61 = vld [vmem:[%s1973_s3 + $0x6d8] sm:$0xff] }
  0xfd   :  { %905 = vmatprep.subr.bf16.mxu0 %v904_v1  ;;  %1033 = vmatprep.subr.bf16.mxu1 %v1032_v2  ;;  %v432_v62 = vld [vmem:[%s1973_s3 + $0x6f8] sm:$0xff]  ;;  %v425_v1 = vld [vmem:[%s1973_s3 + $0x6c0] sm:$0xff] }
  0xfe   :  { %v429_v2 = vld [vmem:[%s1973_s3 + $0x6e0] sm:$0xff]  ;;  %v1052_v4 = vpack.c.bf16 %v432_v62, %v428_v61  ;;  %v459_v61 = vld [vmem:[%s1973_s3 + $0x7d0] sm:$0xff] }
  0xff   :  { %v926_v11 = vpack.c.bf16 %v429_v2, %v425_v1  ;;  %v463_v62 = vld [vmem:[%s1973_s3 + $0x7f0] sm:$0xff]  ;;  %v465_v2 = vld [vmem:[%s1976_s4] sm:$0xf] }
 0x100   :  { %907 = vmatpush1.bf16.msra.mxu0 %v906_v9  ;;  %1035 = vmatpush1.bf16.msra.mxu1 %v1034_v10  ;;  %v436_v9 = vld [vmem:[%s1973_s3 + $0x718] sm:$0xff]  ;;  %v1070_v35 = vpack.c.bf16 %v463_v62, %v459_v61  ;;  %v470_v5 = vrot.slane %v465_v2, %v41_v34  ;;  %v478_v6 = vrot.slane %v465_v2, %v49_v44 }
 0x101   :  { %909 = vmatprep.subr.bf16.mxu0 %v908_v13  ;;  %1037 = vmatprep.subr.bf16.mxu1 %v1036_v14  ;;  %v440_v10 = vld [vmem:[%s1973_s3 + $0x738] sm:$0xff]  ;;  %v433_v13 = vld [vmem:[%s1973_s3 + $0x700] sm:$0xff]  ;;  %v482_v8 = vrot.slane %v465_v2, %v53_v38 }
 0x102   :  { %v437_v14 = vld [vmem:[%s1973_s3 + $0x720] sm:$0xff]  ;;  %v1056_v16 = vpack.c.bf16 %v440_v10, %v436_v9 }
 0x103   :  { %v930_v23 = vpack.c.bf16 %v437_v14, %v433_v13 }
 0x104   :  { %911 = vmatpush1.bf16.msra.mxu0 %v910_v21  ;;  %1039 = vmatpush1.bf16.msra.mxu1 %v1038_v22  ;;  %v444_v21 = vld [vmem:[%s1973_s3 + $0x758] sm:$0xff] }
 0x105   :  { %913 = vmatprep.subr.bf16.mxu0 %v912_v25  ;;  %1041 = vmatprep.subr.bf16.mxu1 %v1040_v26  ;;  %v448_v22 = vld [vmem:[%s1973_s3 + $0x778] sm:$0xff]  ;;  %v441_v25 = vld [vmem:[%s1973_s3 + $0x740] sm:$0xff] }
 0x106   :  { %v445_v26 = vld [vmem:[%s1973_s3 + $0x760] sm:$0xff]  ;;  %v1060_v28 = vpack.c.bf16 %v448_v22, %v444_v21 }
 0x107   :  { %v934_v40 = vpack.c.bf16 %v445_v26, %v441_v25 }
 0x108   :  { %915 = vmatpush1.bf16.msra.mxu0 %v914_v37  ;;  %1043 = vmatpush1.bf16.msra.mxu1 %v1042_v39  ;;  %v452_v37 = vld [vmem:[%s1973_s3 + $0x798] sm:$0xff] }
 0x109   :  { %917 = vmatprep.subr.bf16.mxu0 %v916_v42  ;;  %1045 = vmatprep.subr.bf16.mxu1 %v1044_v43  ;;  %v456_v39 = vld [vmem:[%s1973_s3 + $0x7b8] sm:$0xff]  ;;  %v449_v42 = vld [vmem:[%s1973_s3 + $0x780] sm:$0xff] }
 0x10a   :  { %v453_v43 = vld [vmem:[%s1973_s3 + $0x7a0] sm:$0xff]  ;;  %v1064_v46 = vpack.c.bf16 %v456_v39, %v452_v37 }
 0x10b   :  { %v938_v54 = vpack.c.bf16 %v453_v43, %v449_v42 }
 0x10c   :  { %919 = vmatpush1.bf16.msra.mxu0 %v918_v50  ;;  %1047 = vmatpush1.bf16.msra.mxu1 %v1046_v51  ;;  %v462_v50 = vld [vmem:[%s1973_s3 + $0x7e8] sm:$0xff]  ;;  %v460_v51 = vld [vmem:[%s1973_s3 + $0x7d8] sm:$0xff] }
 0x10d   :  { %921 = vmatprep.subr.bf16.mxu0 %v920_v55  ;;  %1049 = vmatprep.subr.bf16.mxu1 %v1048_v56  ;;  %v1066_v55 = vpack.c.bf16 %v455_v48, %v451_v47  ;;  %v457_v56 = vld [vmem:[%s1973_s3 + $0x7c0] sm:$0xff]  ;;  %v940_v58 = vpack.c.bf16 %v462_v50, %v458_v49  ;;  %v1068_v59 = vpack.c.bf16 %v464_v52, %v460_v51 }
 0x110   :  { %923 = vmatpush1.bf16.msra.mxu0 %v922_v63  ;;  %1051 = vmatpush1.bf16.msra.mxu1 %v1050_v0  ;;  %v942_v63 = vpack.c.bf16 %v461_v60, %v457_v56  ;;  %v201_v0 = vadd.f32 %v1606_v53, %v50_v57  ;;  %v474_v53 = vrot.slane %v465_v2, %v45_v36 }
 0x111   :  { %925 = vmatprep.subr.bf16.mxu0 %v924_v3  ;;  %1053 = vmatprep.subr.bf16.mxu1 %v1052_v4  ;;  %v1083_v3 = vmov 1983009808  }
 0x112   :  { %v207_v1 = vmax.f32 %v201_v0, 0.0  ;;  %v778_v4 = vunpack.c.l.s4 %v1083_v3 }
 0x114   :  { %927 = vmatpush1.bf16.msra.mxu0 %v926_v11  ;;  %1055 = vmatpush1.bf16.msra.mxu1 %v1054_v12  ;;  %v779_v7 = vunpack.c.0.s8 %v778_v4 }
 0x115   :  { %929 = vmatprep.subr.bf16.mxu0 %v928_v15  ;;  %1057 = vmatprep.subr.bf16.mxu1 %v1056_v16 }
 0x116   :  { %v782_v16 = vsub.s32 %v779_v7, %v1563_v33 }
 0x118   :  { %931 = vmatpush1.bf16.msra.mxu0 %v930_v23  ;;  %1059 = vmatpush1.bf16.msra.mxu1 %v1058_v24 }
 0x119   :  { %933 = vmatprep.subr.bf16.mxu0 %v932_v27  ;;  %1061 = vmatprep.subr.bf16.mxu1 %v1060_v28 }
 0x11c   :  { %935 = vmatpush1.bf16.msra.mxu0 %v934_v40  ;;  %1063 = vmatpush1.bf16.msra.mxu1 %v1062_v41 }
 0x11d   :  { %937 = vmatprep.subr.bf16.mxu0 %v936_v45  ;;  %1065 = vmatprep.subr.bf16.mxu1 %v1064_v46 }
 0x120   :  { %939 = vmatpush1.bf16.msra.mxu0 %v938_v54  ;;  %1067 = vmatpush1.bf16.msra.mxu1 %v1066_v55 }
 0x121   :  { %941 = vmatprep.subr.bf16.mxu0 %v940_v58  ;;  %1069 = vmatprep.subr.bf16.mxu1 %v1068_v59 }
 0x124   :  { %943 = vmatpush1.bf16.msra.mxu0 %v942_v63  ;;  %1071 = vmatpush1.bf16.msra.mxu1 %v1070_v35 }
 0x127   :  { %623 = vmatmul.mubr.f32.vlgmr.msra.gmra.mrb[2].mxu0 %v207_v1  ;;  %765 = vmatmul.mubr.f32.vlgmr.msra.gmra.mrb[2].mxu1 %v207_v1 }
 0x1fa   :  { %v624_v9 = vpop.f32.mrb[2].mxu0  ;;  %v766_v10 = vpop.f32.mrb[2].mxu1 }
 0x1fb   :  { %v1072_v11 = vadd.f32 %v624_v9, %v470_v5  ;;  %v1074_v12 = vadd.f32 %v766_v10, %v478_v6  ;;  %v626_v13 = vpop.f32.mrb[3].mxu0  ;;  %v768_v14 = vpop.f32.mrb[3].mxu1 }
 0x1fc   :  { %v1073_v15 = vadd.f32 %v626_v13, %v474_v53  ;;  %v1075_v17 = vadd.f32 %v768_v14, %v482_v8 }
 0x1fe   :  { %v775_v18 = vcombine.low %v1072_v11, %v1073_v15  ;;  %v776_v34 = vcombine.low %v1074_v12, %v1075_v17 }
 0x200   :  { %v783_v19 = vrot.slane %v775_v18, %v782_v16  ;;  %v790_v20 = vrot.slane %v776_v34, %v782_v16 }
 0x202   :  { %v791_v21 = vcombine.low %v783_v19, %v790_v20 }
 0x204   :  { %793 = vst [vmem:[%s1977_s5] sm:$0xff] %v791_v21 }

// kernel: decoder_forward.5
= control target key start
LH: loop header
LB: loop body
LE: loop exit
PB: predicated region body
PF: predicated region fallthrough
CT: control target
= control target key end

     0   :  { %vm200_vm0 = vcmask 261120   ;;  %v878_v27 = vmov 0.0|0.0   ;;  %vm879_vm1 = vmmov 0   ;;  %v880_v37 = vmov 0.0   ;;  %s1062_s1 = inlined_call_operand.vmem [shape: bf16[288,64], index: 1, kind: input, shape index: {}]   ;;  %s1063_s0 = inlined_call_operand.vmem [shape: bf16[32,288], index: 0, kind: input, shape index: {}]   ;;  %s1064_s2 = inlined_call_operand.vmem [shape: f32[64,16], index: 2, kind: input, shape index: {}]   ;;  %s1065_s3 = inlined_call_operand.vmem [shape: f32[16,64], index: 3, kind: input, shape index: {}]   ;;  %s1066_s4 = inlined_call_operand.vmem [shape: f32[32,64], index: 4, kind: output, shape index: {}]  }
   0x1   :  { %v850_v0 = vld [vmem:[%s1062_s1 + $0x40] sm:$0xff]   ;;  %v852_v2 = vld [vmem:[%s1062_s1 + $0x48] sm:$0xff]   ;;  %v854_v4 = vld [vmem:[%s1062_s1 + $0x50] sm:$0xff]   ;;  %vm315_vm2 = vcmask 523264   ;;  %vm403_vm3 = vcmask 130048  }
   0x2   :  { %v851_v1 = vld [vmem:[%s1062_s1] sm:$0xff]   ;;  %701 = vmatprep.subr.bf16.mxu0 %v850_v0  ;;  %v853_v3 = vld [vmem:[%s1062_s1 + $0x8] sm:$0xff]   ;;  %v855_v5 = vld [vmem:[%s1062_s1 + $0x10] sm:$0xff]  }
   0x3   :  { %702 = vmatpush3.bf16.msra.mxu0 %v851_v1  ;;  %v856_v6 = vld [vmem:[%s1062_s1 + $0x58] sm:$0xff]   ;;  %v858_v8 = vld [vmem:[%s1062_s1 + $0x60] sm:$0xff]   ;;  %v860_v11 = vld [vmem:[%s1062_s1 + $0x68] sm:$0xff]  }
   0x4   :  { %703 = vmatprep.subr.bf16.mxu0 %v852_v2  ;;  %v857_v7 = vld [vmem:[%s1062_s1 + $0x18] sm:$0xff]   ;;  %v864_v9 = vld [vmem:[%s1062_s1 + $0x80] sm:$0xff]   ;;  %v861_v12 = vld [vmem:[%s1062_s1 + $0x28] sm:$0xff]  }
   0x5   :  { %v859_v10 = vld [vmem:[%s1062_s1 + $0x20] sm:$0xff]   ;;  %757 = vmatprep.subr.bf16.mxu1 %v864_v9  ;;  %v867_v13 = vld [vmem:[%s1062_s1 + $0x88] sm:$0xff]   ;;  %v862_v14 = vld [vmem:[%s1062_s1 + $0x70] sm:$0xff]  }
   0x6   :  { %758 = vmatpush3.bf16.msra.mxu1 %v864_v9  ;;  %v870_v15 = vld [vmem:[%s1063_s0 + $0x4] ss:$12 sps:$4 sm:$0xff]   ;;  %v871_v16 = vld [vmem:[%s1063_s0 + $0x8] ss:$12 sps:$4 sm:$0xff]   ;;  %v872_v17 = vld [vmem:[%s1063_s0 + $0x20] ss:$12 sps:$4 sm:$0xff]  }
   0x7   :  { %704 = vmatpush3.bf16.msra.mxu0 %v853_v3  ;;  %759 = vmatprep.subr.bf16.mxu1 %v867_v13  ;;  %v863_v18 = vld [vmem:[%s1062_s1 + $0x30] sm:$0xff]   ;;  %v865_v19 = vld [vmem:[%s1062_s1 + $0x78] sm:$0xff]   ;;  %v868_v21 = vld [vmem:[%s1063_s0] ss:$12 sps:$4 sm:$0xff]  }
   0x8   :  { %705 = vmatprep.subr.bf16.mxu0 %v854_v4  ;;  %239 = vmatprep.mubr.bf16.mxu0 %v870_v15  ;;  %v866_v20 = vld [vmem:[%s1062_s1 + $0x38] sm:$0xff]   ;;  %v305_v24 = vld [vmem:[%s1064_s2] sm:$0xff]  ;;  %v306_v25 = vld [vmem:[%s1064_s2 + $0x8] sm:$0xff] }
   0x9   :  { %761 = vmatprep.mubr.msk.bf16.mxu1 %vm200_vm0, %v871_v16  ;;  %v873_v22 = vld [vmem:[%s1063_s0 + $0x1c] ss:$12 sps:$4 sm:$0xff]   ;;  %v875_v23 = vld [vmem:[%s1063_s0 + $0x18] ss:$12 sps:$4 sm:$0xff]   ;;  %v984_v26 = vpack.c.bf16 %v306_v25, %v305_v24  ;;  %v307_v28 = vld [vmem:[%s1064_s2 + $0x10] sm:$0xff] }
   0xa   :  { %760 = vmatpush3.bf16.msra.mxu1 %v867_v13  ;;  %v308_v29 = vld [vmem:[%s1064_s2 + $0x18] sm:$0xff]  ;;  %v309_v31 = vld [vmem:[%s1064_s2 + $0x20] sm:$0xff]  ;;  %v310_v32 = vld [vmem:[%s1064_s2 + $0x28] sm:$0xff]  ;;  %v477_v13 = vlaneseq }
   0xb   :  { %706 = vmatpush3.bf16.msra.mxu0 %v855_v5  ;;  %817 = vmatprep.subr.bf16.mxu1 %v878_v27  ;;  %v996_v30 = vpack.c.bf16 %v308_v29, %v307_v28  ;;  %v1006_v33 = vpack.c.bf16 %v310_v32, %v309_v31  ;;  %v311_v34 = vld [vmem:[%s1064_s2 + $0x30] sm:$0xff]  ;;  %v312_v35 = vld [vmem:[%s1064_s2 + $0x38] sm:$0xff]  ;;  %v313_v38 = vld [vmem:[%s1065_s3] sm:$0xff] }
   0xc   :  { %707 = vmatprep.subr.bf16.mxu0 %v856_v6  ;;  %v827_v36 = vpack.c.bf16 %v312_v35, %v311_v34  ;;  %v314_v39 = vld [vmem:[%s1065_s3 + $0x8] sm:$0xff] }
   0xd   :  { %762 = vmatmul.mubr.msk.bf16.vlgmr.msra.gmra.mrb[0].mxu1 %vm200_vm0, %v872_v17  ;;  %v830_v40 = vpack.c.bf16 %v314_v39, %v313_v38 }
   0xe   :  { %819 = vmatpush3.bf16.msra.mxu1 %v984_v26  ;;  %781 = vmatprep.mubr.msk.f32.mxu1 %vm879_vm1, %v880_v37 }
   0xf   :  { %708 = vmatpush3.bf16.msra.mxu0 %v857_v7  ;;  %820 = vmatprep.subr.bf16.mxu1 %v878_v27 }
  0x10   :  { %709 = vmatprep.subr.bf16.mxu0 %v858_v8 }
  0x12   :  { %822 = vmatpush3.bf16.msra.mxu1 %v996_v30 }
  0x13   :  { %710 = vmatpush3.bf16.msra.mxu0 %v859_v10  ;;  %823 = vmatprep.subr.bf16.mxu1 %v878_v27 }
  0x14   :  { %711 = vmatprep.subr.bf16.mxu0 %v860_v11 }
  0x16   :  { %825 = vmatpush3.bf16.msra.mxu1 %v1006_v33 }
  0x17   :  { %712 = vmatpush3.bf16.msra.mxu0 %v861_v12  ;;  %826 = vmatprep.subr.bf16.mxu1 %v878_v27 }
  0x18   :  { %713 = vmatprep.subr.bf16.mxu0 %v862_v14  ;;  %v478_v14 = vshrl.u32 %v477_v13, 7 }
  0x1a   :  { %828 = vmatpush3.bf16.msra.mxu1 %v827_v36  ;;  %v479_v15 = vsub.s32 0, %v478_v14 }
  0x1b   :  { %714 = vmatpush3.bf16.msra.mxu0 %v863_v18  ;;  %829 = vmatprep.subr.bf16.mxu1 %v878_v27 }
  0x1c   :  { %715 = vmatprep.subr.bf16.mxu0 %v865_v19 }
  0x1f   :  { %716 = vmatpush3.bf16.msra.mxu0 %v866_v20 }
  0x20   :  { %844 = vmatprep.subr.bf16.mxu0 %v878_v27 }
  0x22   :  { %240 = vmatmul.mubr.bf16.vlgmr.msra.gmra.mrb[0].mxu0 %v868_v21 }
  0x23   :  { %247 = vmatprep.mubr.bf16.mxu0 %v873_v22  ;;  %846 = vmatpush3.bf16.msra.mxu0 %v830_v40 }
  0x2a   :  { %248 = vmatmul.mubr.bf16.gmra.mrb[4].mxu0 %v875_v23 }
  0x2b   :  { %814 = vmatprep.mubr.msk.f32.mxu0 %vm879_vm1, %v880_v37 }
  0xe0   :  { %v763_v41 = vpop.f32.mrb[0].mxu1 }
  0xe1   :  { %v290_v42 = vpop.f32.mrb[1].mxu1 }
  0xe2   :  { %v764_v43 = vpop.f32.mrb[2].mxu1 }
  0xe3   :  { %v293_v44 = vpop.f32.mrb[3].mxu1 }
  0xf5   :  { %v717_v45 = vpop.f32.mrb[0].mxu0 }
  0xf6   :  { %v718_v46 = vpop.f32.mrb[1].mxu0 }
  0xf7   :  { %v719_v47 = vadd.f32 %v718_v46, %v717_v45  ;;  %v720_v48 = vpop.f32.mrb[2].mxu0 }
  0xf8   :  { %v721_v49 = vpop.f32.mrb[3].mxu0 }
  0xf9   :  { %v722_v50 = vadd.f32 %v721_v49, %v720_v48  ;;  %v291_v51 = vadd.f32 %v719_v47, %v290_v42 }
  0xfb   :  { %v294_v52 = vadd.f32 %v722_v50, %v293_v44  ;;  %v316_v59 = vsel %vm315_vm2, %v291_v51, 0.0 }
  0xfd   :  { %v723_v53 = vpop.f32.mrb[4].mxu0  ;;  %v317_v55 = vsel %vm315_vm2, %v294_v52, 0.0 }
  0xfe   :  { %v724_v54 = vpop.f32.mrb[5].mxu0  ;;  %v318_v62 = vadd.f32 %v317_v55, %v316_v59 }
  0xff   :  { %v725_v56 = vadd.f32 %v724_v54, %v723_v53  ;;  %v726_v57 = vpop.f32.mrb[6].mxu0 }
 0x100   :  { %v727_v58 = vpop.f32.mrb[7].mxu0 }
 0x101   :  { %v299_v60 = vadd.f32 %v763_v41, %v725_v56  ;;  %v728_v61 = vadd.f32 %v727_v58, %v726_v57 }
 0x103   :  { %v319_v63 = vsel %vm315_vm2, %v299_v60, 0.0  ;;  %v302_v0 = vadd.f32 %v764_v43, %v728_v61 }
 0x104   :  { %v320_v1 = vadd.f32 %v319_v63, %v318_v62 }
 0x105   :  { %v321_v2 = vsel %vm315_vm2, %v302_v0, 0.0 }
 0x106   :  { %v322_v3 = vadd.f32 %v321_v2, %v320_v1 }
 0x108   :  { %v323_v4 = vrot.slane %v322_v3, 4 }
 0x10a   :  { %v324_v5 = vadd.f32 %v323_v4, %v322_v3 }
 0x10c   :  { %v325_v6 = vrot.slane %v324_v5, 2 }
 0x10e   :  { %v326_v7 = vadd.f32 %v325_v6, %v324_v5 }
 0x110   :  { %v327_v8 = vrot.slane %v326_v7, 1 }
 0x112   :  { %v328_v9 = vadd.f32 %v327_v8, %v326_v7 }
 0x114   :  { %782 = vmatmul.mubr.msk.f32.vlgmr.msra.gmra.mrb[4].mxu1 %vm315_vm2, %v328_v9 }
 0x115   :  { %831 = vmatpush3.bf16.msra.mxu1 %v830_v40  ;;  %788 = vmatprep.mubr.msk.f32.mxu1 %vm879_vm1, %v880_v37 }
 0x116   :  { %832 = vmatprep.subr.bf16.mxu1 %v878_v27 }
 0x1e7   :  { %v398_v10 = vpop.f32.mrb[4].mxu1 }
 0x1e8   :  { %v402_v11 = vmul.f32 0.0078125, %v398_v10  ;;  %v783_v12 = vpop.f32.mrb[5].mxu1 }
 0x1ea   :  { %789 = vmatmul.mubr.msk.f32.vlgmr.msra.gmra.mrb[6].mxu1 %vm403_vm3, %v402_v11 }
 0x1eb   :  { %834 = vmatpush3.bf16.msra.mxu1 %v984_v26  ;;  %807 = vmatprep.mubr.msk.f32.mxu1 %vm879_vm1, %v880_v37 }
 0x1ec   :  { %835 = vmatprep.subr.bf16.mxu1 %v878_v27 }
 0x1ef   :  { %837 = vmatpush3.bf16.msra.mxu1 %v996_v30 }
 0x1f0   :  { %838 = vmatprep.subr.bf16.mxu1 %v878_v27 }
 0x1f3   :  { %840 = vmatpush3.bf16.msra.mxu1 %v1006_v33 }
 0x1f4   :  { %841 = vmatprep.subr.bf16.mxu1 %v878_v27 }
 0x1f7   :  { %843 = vmatpush3.bf16.msra.mxu1 %v827_v36 }
 0x2bd   :  { %v473_v16 = vpop.f32.mrb[6].mxu1 }
 0x2be   :  { %v480_v17 = vrot.slane %v473_v16, %v479_v15  ;;  %v790_v18 = vpop.f32.mrb[7].mxu1 }
 0x2c0   :  { %v481_v19 = vsub.f32 %v291_v51, %v480_v17  ;;  %v482_v20 = vsub.f32 %v294_v52, %v480_v17  ;;  %v483_v21 = vsub.f32 %v299_v60, %v480_v17  ;;  %v484_v22 = vsub.f32 %v302_v0, %v480_v17 }
 0x2c2   :  { %v485_v23 = vmul.f32 %v481_v19, %v481_v19  ;;  %v486_v24 = vmul.f32 %v482_v20, %v482_v20  ;;  %v487_v25 = vmul.f32 %v483_v21, %v483_v21  ;;  %v488_v26 = vmul.f32 %v484_v22, %v484_v22 }
 0x2c4   :  { %v489_v28 = vsel %vm315_vm2, %v485_v23, 0.0  ;;  %v490_v29 = vsel %vm315_vm2, %v486_v24, 0.0  ;;  %v492_v30 = vsel %vm315_vm2, %v487_v25, 0.0  ;;  %v494_v32 = vsel %vm315_vm2, %v488_v26, 0.0 }
 0x2c5   :  { %v491_v27 = vadd.f32 %v490_v29, %v489_v28 }
 0x2c7   :  { %v493_v31 = vadd.f32 %v492_v30, %v491_v27 }
 0x2c9   :  { %v495_v33 = vadd.f32 %v494_v32, %v493_v31 }
 0x2cb   :  { %v496_v34 = vrot.slane %v495_v33, 4 }
 0x2cd   :  { %v497_v35 = vadd.f32 %v496_v34, %v495_v33 }
 0x2cf   :  { %v498_v36 = vrot.slane %v497_v35, 2 }
 0x2d1   :  { %v499_v37 = vadd.f32 %v498_v36, %v497_v35 }
 0x2d3   :  { %v500_v38 = vrot.slane %v499_v37, 1 }
 0x2d5   :  { %v501_v39 = vadd.f32 %v500_v38, %v499_v37 }
 0x2d7   :  { %808 = vmatmul.mubr.msk.f32.vlgmr.msra.gmra.mrb[8].mxu1 %vm315_vm2, %v501_v39 }
 0x3aa   :  { %v571_v40 = vpop.f32.mrb[8].mxu1 }
 0x3ab   :  { %v575_v41 = vmul.f32 0.0078125, %v571_v40  ;;  %v809_v42 = vpop.f32.mrb[9].mxu1 }
 0x3ad   :  { %v576_v43 = vadd.f32 1e-05, %v575_v41 }
 0x3af   :  { %876 = vrsqrt.f32 %v576_v43 }
 0x3b9   :  { %v877_v44 = vpop.eup %876 }
 0x3ba   :  { %815 = vmatmul.mubr.msk.f32.vlgmr.msra.gmra.mrb[8].mxu0 %vm403_vm3, %v877_v44 }
 0x48d   :  { %v647_v45 = vpop.f32.mrb[8].mxu0 }
 0x48e   :  { %v654_v46 = vrot.slane %v647_v45, %v479_v15  ;;  %v816_v47 = vpop.f32.mrb[9].mxu0 }
 0x490   :  { %v655_v48 = vmul.f32 %v654_v46, %v481_v19  ;;  %v656_v49 = vmul.f32 %v654_v46, %v482_v20  ;;  %v657_v50 = vmul.f32 %v654_v46, %v483_v21  ;;  %v658_v51 = vmul.f32 %v654_v46, %v484_v22 }
 0x492   :  { %v659_v52 = vmax.f32 %v655_v48, 0.0  ;;  %v660_v53 = vmax.f32 %v656_v49, 0.0  ;;  %v661_v54 = vmax.f32 %v657_v50, 0.0  ;;  %v662_v55 = vmax.f32 %v658_v51, 0.0 }
 0x494   :  { %663 = vst.msk [vmem:[%s1066_s4] sm:$0xff] %vm315_vm2, %v659_v52  ;;  %664 = vst.msk [vmem:[%s1066_s4 + $0x8] sm:$0xff] %vm315_vm2, %v660_v53 }
 0x495   :  { %665 = vst.msk [vmem:[%s1066_s4 + $0x10] sm:$0xff] %vm315_vm2, %v661_v54  ;;  %666 = vst.msk [vmem:[%s1066_s4 + $0x18] sm:$0xff] %vm315_vm2, %v662_v55 }

// kernel: decoder_forward.6
= control target key start
LH: loop header
LB: loop body
LE: loop exit
PB: predicated region body
PF: predicated region fallthrough
CT: control target
= control target key end

     0   :  { %v921_v0 = vmov 0   ;;  %vm178_vm0 = vcmask 130048   ;;  %v922_v29 = vmov 0.0|0.0   ;;  %vm923_vm1 = vmmov 0   ;;  %s1309_s1 = inlined_call_operand.vmem [shape: bf16[144,32], index: 1, kind: input, shape index: {}]   ;;  %s1310_s0 = inlined_call_operand.vmem [shape: bf16[128,144], index: 0, kind: input, shape index: {}]   ;;  %s1311_s2 = inlined_call_operand.vmem [shape: f32[32,8], index: 2, kind: input, shape index: {}]   ;;  %s1312_s3 = inlined_call_operand.vmem [shape: f32[8,32], index: 3, kind: input, shape index: {}]   ;;  %s1313_s4 = inlined_call_operand.vmem [shape: f32[128,32], index: 4, kind: output, shape index: {}]  }
   0x1   :  { %203 = vmatprep.subr.bf16.mxu0 %v921_v0  ;;  %v886_v1 = vld [vmem:[%s1309_s1] sm:$0xff]   ;;  %864 = vmatprep.subr.bf16.mxu1 %v921_v0  ;;  %v887_v2 = vld [vmem:[%s1309_s1 + $0x8] sm:$0xff]   ;;  %v888_v3 = vld [vmem:[%s1309_s1 + $0x10] sm:$0xff]   ;;  %v924_v33 = vmov 0.0   ;;  %vm305_vm2 = vcmask 261120   ;;  %vm417_vm3 = vcmask 64512  }
   0x2   :  { %204 = vmatpush1.bf16.msra.mxu0 %v886_v1  ;;  %873 = vmatpush1.bf16.msra.mxu1 %v886_v1  ;;  %v889_v4 = vld [vmem:[%s1309_s1 + $0x18] sm:$0xff]   ;;  %v897_v5 = vld [vmem:[%s1310_s0 + $0x4] ss:$8 sps:$4 sm:$0xff]   ;;  %v892_v9 = vld [vmem:[%s1309_s1 + $0x30] sm:$0xff]  }
   0x3   :  { %205 = vmatprep.subr.bf16.mxu0 %v921_v0  ;;  %865 = vmatprep.subr.bf16.mxu1 %v921_v0  ;;  %v890_v6 = vld [vmem:[%s1309_s1 + $0x20] sm:$0xff]   ;;  %v891_v8 = vld [vmem:[%s1309_s1 + $0x28] sm:$0xff]   ;;  %v893_v10 = vld [vmem:[%s1309_s1 + $0x38] sm:$0xff]  }
   0x4   :  { %794 = vmatprep.mubr.msk.bf16.mxu0 %vm178_vm0, %v897_v5  ;;  %v912_v7 = vld [vmem:[%s1310_s0 + $0x64] ss:$8 sps:$4 sm:$0xff]   ;;  %v895_v12 = vld [vmem:[%s1310_s0] ss:$8 sps:$4 sm:$0xff]   ;;  %v898_v14 = vld [vmem:[%s1310_s0 + $0x14] ss:$8 sps:$4 sm:$0xff]  }
   0x5   :  { %800 = vmatprep.mubr.msk.bf16.mxu1 %vm178_vm0, %v912_v7  ;;  %v894_v11 = vld [vmem:[%s1309_s1 + $0x40] sm:$0xff]   ;;  %v916_v15 = vld [vmem:[%s1310_s0 + $0x74] ss:$8 sps:$4 sm:$0xff]   ;;  %v900_v16 = vld [vmem:[%s1310_s0 + $0x10] ss:$8 sps:$4 sm:$0xff]  }
   0x6   :  { %206 = vmatpush1.bf16.msra.mxu0 %v887_v2  ;;  %874 = vmatpush1.bf16.msra.mxu1 %v887_v2  ;;  %v910_v13 = vld [vmem:[%s1310_s0 + $0x60] ss:$8 sps:$4 sm:$0xff]   ;;  %v918_v17 = vld [vmem:[%s1310_s0 + $0x70] ss:$8 sps:$4 sm:$0xff]   ;;  %v901_v18 = vld [vmem:[%s1310_s0 + $0x24] ss:$8 sps:$4 sm:$0xff]  }
   0x7   :  { %207 = vmatprep.subr.bf16.mxu0 %v921_v0  ;;  %866 = vmatprep.subr.bf16.mxu1 %v921_v0  ;;  %v903_v19 = vld [vmem:[%s1310_s0 + $0x20] ss:$8 sps:$4 sm:$0xff]   ;;  %v904_v20 = vld [vmem:[%s1310_s0 + $0x34] ss:$8 sps:$4 sm:$0xff]   ;;  %v906_v21 = vld [vmem:[%s1310_s0 + $0x30] ss:$8 sps:$4 sm:$0xff]  }
   0x8   :  { %v907_v22 = vld [vmem:[%s1310_s0 + $0x44] ss:$8 sps:$4 sm:$0xff]   ;;  %v909_v23 = vld [vmem:[%s1310_s0 + $0x40] ss:$8 sps:$4 sm:$0xff]   ;;  %v913_v24 = vld [vmem:[%s1310_s0 + $0x54] ss:$8 sps:$4 sm:$0xff]  }
   0x9   :  { %v915_v25 = vld [vmem:[%s1310_s0 + $0x50] ss:$8 sps:$4 sm:$0xff]   ;;  %v300_v26 = vld [vmem:[%s1311_s2] sm:$0xff]  ;;  %v301_v27 = vld [vmem:[%s1311_s2 + $0x8] sm:$0xff] }
   0xa   :  { %208 = vmatpush1.bf16.msra.mxu0 %v888_v3  ;;  %875 = vmatpush1.bf16.msra.mxu1 %v888_v3  ;;  %v1039_v28 = vpack.c.bf16 %v301_v27, %v300_v26  ;;  %v302_v30 = vld [vmem:[%s1311_s2 + $0x10] sm:$0xff]  ;;  %v303_v31 = vld [vmem:[%s1311_s2 + $0x18] sm:$0xff] }
   0xb   :  { %209 = vmatprep.subr.bf16.mxu0 %v921_v0  ;;  %867 = vmatprep.subr.bf16.mxu1 %v921_v0  ;;  %v1050_v32 = vpack.c.bf16 %v303_v31, %v302_v30 }
   0xe   :  { %210 = vmatpush1.bf16.msra.mxu0 %v889_v4  ;;  %876 = vmatpush1.bf16.msra.mxu1 %v889_v4 }
   0xf   :  { %211 = vmatprep.subr.bf16.mxu0 %v921_v0  ;;  %868 = vmatprep.subr.bf16.mxu1 %v921_v0 }
  0x12   :  { %212 = vmatpush1.bf16.msra.mxu0 %v890_v6  ;;  %877 = vmatpush1.bf16.msra.mxu1 %v890_v6 }
  0x13   :  { %213 = vmatprep.subr.bf16.mxu0 %v921_v0  ;;  %869 = vmatprep.subr.bf16.mxu1 %v921_v0 }
  0x16   :  { %214 = vmatpush1.bf16.msra.mxu0 %v891_v8  ;;  %878 = vmatpush1.bf16.msra.mxu1 %v891_v8 }
  0x17   :  { %215 = vmatprep.subr.bf16.mxu0 %v921_v0  ;;  %870 = vmatprep.subr.bf16.mxu1 %v921_v0 }
  0x1a   :  { %216 = vmatpush1.bf16.msra.mxu0 %v892_v9  ;;  %879 = vmatpush1.bf16.msra.mxu1 %v892_v9 }
  0x1b   :  { %217 = vmatprep.subr.bf16.mxu0 %v921_v0  ;;  %871 = vmatprep.subr.bf16.mxu1 %v921_v0 }
  0x1e   :  { %218 = vmatpush1.bf16.msra.mxu0 %v893_v10  ;;  %880 = vmatpush1.bf16.msra.mxu1 %v893_v10 }
  0x1f   :  { %219 = vmatprep.subr.bf16.mxu0 %v921_v0  ;;  %872 = vmatprep.subr.bf16.mxu1 %v921_v0 }
  0x22   :  { %220 = vmatpush1.bf16.msra.mxu0 %v894_v11  ;;  %881 = vmatpush1.bf16.msra.mxu1 %v894_v11 }
  0x23   :  { %852 = vmatprep.subr.bf16.mxu1 %v922_v29 }
  0x25   :  { %236 = vmatmul.mubr.bf16.vlgmr.msra.gmra.mrb[0].mxu0 %v895_v12  ;;  %284 = vmatmul.mubr.bf16.vlgmr.msra.gmra.mrb[0].mxu1 %v910_v13 }
  0x26   :  { %795 = vmatprep.mubr.msk.bf16.mxu0 %vm178_vm0, %v898_v14  ;;  %801 = vmatprep.mubr.msk.bf16.mxu1 %vm178_vm0, %v916_v15 }
  0x27   :  { %854 = vmatpush3.bf16.msra.mxu1 %v1039_v28 }
  0x28   :  { %855 = vmatprep.subr.bf16.mxu1 %v922_v29 }
  0x2b   :  { %857 = vmatpush3.bf16.msra.mxu1 %v1050_v32 }
  0x2c   :  { %831 = vmatprep.subr.mxu1 %v924_v33 }
  0x2d   :  { %244 = vmatmul.mubr.bf16.gmra.mrb[4].mxu0 %v900_v16  ;;  %292 = vmatmul.mubr.bf16.gmra.mrb[4].mxu1 %v918_v17 }
  0x2e   :  { %796 = vmatprep.mubr.msk.bf16.mxu0 %vm178_vm0, %v901_v18  ;;  %828 = vmatprep.mubr.msk.f32.mxu1 %vm923_vm1, %v924_v33 }
  0x35   :  { %252 = vmatmul.mubr.bf16.gmra.mrb[8].mxu0 %v903_v19 }
  0x36   :  { %797 = vmatprep.mubr.msk.bf16.mxu0 %vm178_vm0, %v904_v20 }
  0x3d   :  { %260 = vmatmul.mubr.bf16.gmra.mrb[12].mxu0 %v906_v21 }
  0x3e   :  { %798 = vmatprep.mubr.msk.bf16.mxu0 %vm178_vm0, %v907_v22 }
  0x45   :  { %268 = vmatmul.mubr.bf16.gmra.mrb[16].mxu0 %v909_v23 }
  0x46   :  { %799 = vmatprep.mubr.msk.bf16.mxu0 %vm178_vm0, %v913_v24 }
  0x4d   :  { %276 = vmatmul.mubr.bf16.gmra.mrb[20].mxu0 %v915_v25 }
  0xf8   :  { %v1056_v34 = vpop.f32.mrb[0].mxu0  ;;  %v1058_v35 = vpop.f32.mrb[0].mxu1 }
  0xf9   :  { %v239_v36 = vpop.f32.mrb[1].mxu0  ;;  %v287_v37 = vpop.f32.mrb[1].mxu1  ;;  %v306_v40 = vsel %vm305_vm2, %v1056_v34, 0.0  ;;  %v329_v25 = vsel %vm305_vm2, %v1058_v35, 0.0 }
  0xfa   :  { %v1060_v38 = vpop.f32.mrb[2].mxu0  ;;  %v1062_v39 = vpop.f32.mrb[2].mxu1 }
  0xfb   :  { %v307_v41 = vsel %vm305_vm2, %v1060_v38, 0.0  ;;  %v242_v42 = vpop.f32.mrb[3].mxu0  ;;  %v290_v43 = vpop.f32.mrb[3].mxu1  ;;  %v331_v27 = vsel %vm305_vm2, %v1062_v39, 0.0 }
  0xfc   :  { %v308_v44 = vadd.f32 %v307_v41, %v306_v40 }
 0x100   :  { %v1068_v45 = vpop.f32.mrb[4].mxu0  ;;  %v1070_v46 = vpop.f32.mrb[4].mxu1 }
 0x101   :  { %v309_v47 = vsel %vm305_vm2, %v1068_v45, 0.0  ;;  %v247_v48 = vpop.f32.mrb[5].mxu0  ;;  %v295_v49 = vpop.f32.mrb[5].mxu1  ;;  %v333_v30 = vsel %vm305_vm2, %v1070_v46, 0.0 }
 0x102   :  { %v310_v50 = vadd.f32 %v309_v47, %v308_v44  ;;  %v1074_v51 = vpop.f32.mrb[6].mxu0  ;;  %v1076_v52 = vpop.f32.mrb[6].mxu1  ;;  %v1111_v49 = vld [vmem:[%s1312_s3] sm:$0xff] }
 0x103   :  { %v311_v53 = vsel %vm305_vm2, %v1074_v51, 0.0  ;;  %v250_v54 = vpop.f32.mrb[7].mxu0  ;;  %v298_v55 = vpop.f32.mrb[7].mxu1  ;;  %v335_v37 = vsel %vm305_vm2, %v1076_v52, 0.0 }
 0x104   :  { %v312_v56 = vadd.f32 %v311_v53, %v310_v50  ;;  %v491_v55 = vlaneseq }
 0x108   :  { %v1080_v57 = vpop.f32.mrb[8].mxu0 }
 0x109   :  { %v313_v58 = vsel %vm305_vm2, %v1080_v57, 0.0  ;;  %v255_v59 = vpop.f32.mrb[9].mxu0 }
 0x10a   :  { %v314_v60 = vadd.f32 %v313_v58, %v312_v56  ;;  %v1084_v61 = vpop.f32.mrb[10].mxu0  ;;  %v1125_v56 = vshrl.u32 %v491_v55, 7 }
 0x10b   :  { %v315_v62 = vsel %vm305_vm2, %v1084_v61, 0.0  ;;  %v258_v63 = vpop.f32.mrb[11].mxu0 }
 0x10c   :  { %v316_v0 = vadd.f32 %v315_v62, %v314_v60  ;;  %v493_v58 = vsub.s32 0, %v1125_v56 }
 0x110   :  { %v1088_v1 = vpop.f32.mrb[12].mxu0 }
 0x111   :  { %v317_v2 = vsel %vm305_vm2, %v1088_v1, 0.0  ;;  %v263_v3 = vpop.f32.mrb[13].mxu0 }
 0x112   :  { %v318_v4 = vadd.f32 %v317_v2, %v316_v0  ;;  %v1092_v5 = vpop.f32.mrb[14].mxu0 }
 0x113   :  { %v319_v6 = vsel %vm305_vm2, %v1092_v5, 0.0  ;;  %v266_v7 = vpop.f32.mrb[15].mxu0 }
 0x114   :  { %v320_v8 = vadd.f32 %v319_v6, %v318_v4 }
 0x118   :  { %v269_v9 = vpop.f32.mrb[16].mxu0 }
 0x119   :  { %v321_v10 = vsel %vm305_vm2, %v269_v9, 0.0  ;;  %v271_v11 = vpop.f32.mrb[17].mxu0 }
 0x11a   :  { %v322_v12 = vadd.f32 %v321_v10, %v320_v8  ;;  %v272_v13 = vpop.f32.mrb[18].mxu0 }
 0x11b   :  { %v323_v14 = vsel %vm305_vm2, %v272_v13, 0.0  ;;  %v274_v15 = vpop.f32.mrb[19].mxu0 }
 0x11c   :  { %v324_v16 = vadd.f32 %v323_v14, %v322_v12 }
 0x120   :  { %v277_v17 = vpop.f32.mrb[20].mxu0 }
 0x121   :  { %v325_v18 = vsel %vm305_vm2, %v277_v17, 0.0  ;;  %v279_v19 = vpop.f32.mrb[21].mxu0 }
 0x122   :  { %v326_v20 = vadd.f32 %v325_v18, %v324_v16  ;;  %v280_v21 = vpop.f32.mrb[22].mxu0 }
 0x123   :  { %v327_v22 = vsel %vm305_vm2, %v280_v21, 0.0  ;;  %v282_v23 = vpop.f32.mrb[23].mxu0 }
 0x124   :  { %v328_v24 = vadd.f32 %v327_v22, %v326_v20 }
 0x126   :  { %v330_v26 = vadd.f32 %v329_v25, %v328_v24 }
 0x128   :  { %v332_v31 = vadd.f32 %v331_v27, %v330_v26 }
 0x12a   :  { %v334_v36 = vadd.f32 %v333_v30, %v332_v31 }
 0x12c   :  { %v336_v40 = vadd.f32 %v335_v37, %v334_v36 }
 0x12e   :  { %v337_v41 = vrot.slane %v336_v40, 4 }
 0x130   :  { %v338_v42 = vadd.f32 %v337_v41, %v336_v40 }
 0x132   :  { %v339_v43 = vrot.slane %v338_v42, 2 }
 0x134   :  { %v340_v44 = vadd.f32 %v339_v43, %v338_v42 }
 0x136   :  { %v341_v47 = vrot.slane %v340_v44, 1 }
 0x138   :  { %v342_v48 = vadd.f32 %v341_v47, %v340_v44 }
 0x13a   :  { %829 = vmatmul.mubr.msk.f32.vlgmr.msra.gmra.mrb[8].mxu1 %vm305_vm2, %v342_v48 }
 0x13b   :  { %832 = vmatpush3.msra.mxu1 %v1111_v49  ;;  %833 = vmatprep.mubr.msk.f32.mxu1 %vm923_vm1, %v924_v33 }
 0x13c   :  { %858 = vmatprep.subr.bf16.mxu1 %v922_v29 }
 0x20d   :  { %v412_v50 = vpop.f32.mrb[8].mxu1 }
 0x20e   :  { %v416_v53 = vmul.f32 0.001953125, %v412_v50  ;;  %v830_v54 = vpop.f32.mrb[9].mxu1 }
 0x210   :  { %834 = vmatmul.mubr.msk.f32.vlgmr.msra.gmra.mrb[10].mxu1 %vm417_vm3, %v416_v53 }
 0x211   :  { %860 = vmatpush3.bf16.msra.mxu1 %v1039_v28  ;;  %844 = vmatprep.mubr.msk.f32.mxu1 %vm923_vm1, %v924_v33 }
 0x212   :  { %861 = vmatprep.subr.bf16.mxu1 %v922_v29 }
 0x215   :  { %863 = vmatpush3.bf16.msra.mxu1 %v1050_v32 }
 0x216   :  { %847 = vmatprep.subr.mxu1 %v924_v33 }
 0x2e3   :  { %v487_v59 = vpop.f32.mrb[10].mxu1 }
 0x2e4   :  { %v494_v60 = vrot.slane %v487_v59, %v493_v58  ;;  %v835_v62 = vpop.f32.mrb[11].mxu1 }
 0x2e6   :  { %v1131_v28 = vsub.f32 %v1056_v34, %v494_v60  ;;  %v1134_v63 = vsub.f32 %v1060_v38, %v494_v60  ;;  %v1137_v29 = vsub.f32 %v1068_v45, %v494_v60  ;;  %v1140_v32 = vsub.f32 %v1074_v51, %v494_v60 }
 0x2e7   :  { %v1143_v0 = vsub.f32 %v1080_v57, %v494_v60  ;;  %v1146_v2 = vsub.f32 %v1084_v61, %v494_v60  ;;  %v1149_v3 = vsub.f32 %v1088_v1, %v494_v60  ;;  %v1152_v34 = vsub.f32 %v1092_v5, %v494_v60 }
 0x2e8   :  { %v1154_v38 = vsub.f32 %v269_v9, %v494_v60  ;;  %v1156_v4 = vsub.f32 %v272_v13, %v494_v60  ;;  %v1158_v45 = vsub.f32 %v277_v17, %v494_v60  ;;  %v1160_v51 = vsub.f32 %v280_v21, %v494_v60 }
 0x2e9   :  { %v1163_v57 = vsub.f32 %v1058_v35, %v494_v60  ;;  %v1166_v61 = vsub.f32 %v1062_v39, %v494_v60  ;;  %v1169_v1 = vsub.f32 %v1070_v46, %v494_v60  ;;  %v1172_v5 = vsub.f32 %v1076_v52, %v494_v60 }
 0x2ea   :  { %v511_v6 = vmul.f32 %v1131_v28, %v1131_v28  ;;  %v512_v7 = vmul.f32 %v1134_v63, %v1134_v63  ;;  %v513_v8 = vmul.f32 %v1137_v29, %v1137_v29  ;;  %v514_v35 = vmul.f32 %v1140_v32, %v1140_v32 }
 0x2eb   :  { %v515_v52 = vmul.f32 %v1143_v0, %v1143_v0  ;;  %v516_v12 = vmul.f32 %v1146_v2, %v1146_v2  ;;  %v517_v15 = vmul.f32 %v1149_v3, %v1149_v3  ;;  %v518_v18 = vmul.f32 %v1152_v34, %v1152_v34 }
 0x2ec   :  { %v527_v39 = vsel %vm305_vm2, %v511_v6, 0.0  ;;  %v528_v46 = vsel %vm305_vm2, %v512_v7, 0.0  ;;  %v530_v10 = vsel %vm305_vm2, %v513_v8, 0.0  ;;  %v532_v13 = vsel %vm305_vm2, %v514_v35, 0.0 }
 0x2ed   :  { %v529_v9 = vadd.f32 %v528_v46, %v527_v39  ;;  %v534_v16 = vsel %vm305_vm2, %v515_v52, 0.0  ;;  %v536_v19 = vsel %vm305_vm2, %v516_v12, 0.0  ;;  %v519_v21 = vmul.f32 %v1154_v38, %v1154_v38 }
 0x2ee   :  { %v538_v22 = vsel %vm305_vm2, %v517_v15, 0.0  ;;  %v520_v24 = vmul.f32 %v1156_v4, %v1156_v4  ;;  %v540_v25 = vsel %vm305_vm2, %v518_v18, 0.0  ;;  %v521_v27 = vmul.f32 %v1158_v45, %v1158_v45 }
 0x2ef   :  { %v531_v11 = vadd.f32 %v530_v10, %v529_v9  ;;  %v542_v30 = vsel %vm305_vm2, %v519_v21, 0.0  ;;  %v522_v36 = vmul.f32 %v1160_v51, %v1160_v51  ;;  %v523_v41 = vmul.f32 %v1163_v57, %v1163_v57 }
 0x2f0   :  { %v544_v37 = vsel %vm305_vm2, %v520_v24, 0.0  ;;  %v546_v42 = vsel %vm305_vm2, %v521_v27, 0.0  ;;  %v524_v44 = vmul.f32 %v1166_v61, %v1166_v61  ;;  %v525_v50 = vmul.f32 %v1169_v1, %v1169_v1 }
 0x2f1   :  { %v533_v14 = vadd.f32 %v532_v13, %v531_v11  ;;  %v548_v47 = vsel %vm305_vm2, %v522_v36, 0.0  ;;  %v550_v53 = vsel %vm305_vm2, %v523_v41, 0.0  ;;  %v526_v55 = vmul.f32 %v1172_v5, %v1172_v5 }
 0x2f2   :  { %v552_v59 = vsel %vm305_vm2, %v524_v44, 0.0  ;;  %v554_v62 = vsel %vm305_vm2, %v525_v50, 0.0 }
 0x2f3   :  { %v535_v17 = vadd.f32 %v534_v16, %v533_v14  ;;  %v556_v7 = vsel %vm305_vm2, %v526_v55, 0.0 }
 0x2f5   :  { %v537_v20 = vadd.f32 %v536_v19, %v535_v17 }
 0x2f7   :  { %v539_v23 = vadd.f32 %v538_v22, %v537_v20 }
 0x2f9   :  { %v541_v26 = vadd.f32 %v540_v25, %v539_v23 }
 0x2fb   :  { %v543_v31 = vadd.f32 %v542_v30, %v541_v26 }
 0x2fd   :  { %v545_v40 = vadd.f32 %v544_v37, %v543_v31 }
 0x2ff   :  { %v547_v43 = vadd.f32 %v546_v42, %v545_v40 }
 0x301   :  { %v549_v48 = vadd.f32 %v548_v47, %v547_v43 }
 0x303   :  { %v551_v54 = vadd.f32 %v550_v53, %v549_v48 }
 0x305   :  { %v553_v60 = vadd.f32 %v552_v59, %v551_v54 }
 0x307   :  { %v555_v6 = vadd.f32 %v554_v62, %v553_v60 }
 0x309   :  { %v557_v8 = vadd.f32 %v556_v7, %v555_v6 }
 0x30b   :  { %v558_v35 = vrot.slane %v557_v8, 4 }
 0x30d   :  { %v559_v39 = vadd.f32 %v558_v35, %v557_v8 }
 0x30f   :  { %v560_v46 = vrot.slane %v559_v39, 2 }
 0x311   :  { %v561_v9 = vadd.f32 %v560_v46, %v559_v39 }
 0x313   :  { %v562_v52 = vrot.slane %v561_v9, 1 }
 0x315   :  { %v563_v10 = vadd.f32 %v562_v52, %v561_v9 }
 0x317   :  { %845 = vmatmul.mubr.msk.f32.vlgmr.msra.gmra.mrb[12].mxu1 %vm305_vm2, %v563_v10 }
 0x318   :  { %848 = vmatpush3.msra.mxu1 %v1111_v49  ;;  %849 = vmatprep.mubr.msk.f32.mxu1 %vm923_vm1, %v924_v33 }
 0x3ea   :  { %v633_v11 = vpop.f32.mrb[12].mxu1 }
 0x3eb   :  { %v637_v12 = vmul.f32 0.001953125, %v633_v11  ;;  %v846_v13 = vpop.f32.mrb[13].mxu1 }
 0x3ed   :  { %v638_v14 = vadd.f32 1e-05, %v637_v12 }
 0x3ef   :  { %919 = vrsqrt.f32 %v638_v14 }
 0x3f9   :  { %v920_v15 = vpop.eup %919 }
 0x3fa   :  { %850 = vmatmul.mubr.msk.f32.vlgmr.msra.gmra.mrb[14].mxu1 %vm417_vm3, %v920_v15 }
 0x4cd   :  { %v709_v16 = vpop.f32.mrb[14].mxu1 }
 0x4ce   :  { %v716_v17 = vrot.slane %v709_v16, %v493_v58  ;;  %v851_v18 = vpop.f32.mrb[15].mxu1 }
 0x4d0   :  { %v717_v19 = vmul.f32 %v716_v17, %v1131_v28  ;;  %v718_v49 = vmul.f32 %v716_v17, %v1134_v63  ;;  %v719_v20 = vmul.f32 %v716_v17, %v1137_v29  ;;  %v720_v33 = vmul.f32 %v716_v17, %v1140_v32 }
 0x4d1   :  { %v721_v21 = vmul.f32 %v716_v17, %v1143_v0  ;;  %v722_v22 = vmul.f32 %v716_v17, %v1146_v2  ;;  %v723_v23 = vmul.f32 %v716_v17, %v1149_v3  ;;  %v724_v24 = vmul.f32 %v716_v17, %v1152_v34 }
 0x4d2   :  { %v725_v56 = vmul.f32 %v716_v17, %v1154_v38  ;;  %v726_v58 = vmul.f32 %v716_v17, %v1156_v4  ;;  %v727_v28 = vmul.f32 %v716_v17, %v1158_v45  ;;  %v728_v63 = vmul.f32 %v716_v17, %v1160_v51 }
 0x4d3   :  { %v729_v29 = vmul.f32 %v716_v17, %v1163_v57  ;;  %v730_v32 = vmul.f32 %v716_v17, %v1166_v61  ;;  %v731_v0 = vmul.f32 %v716_v17, %v1169_v1  ;;  %v732_v2 = vmul.f32 %v716_v17, %v1172_v5 }
 0x4d4   :  { %v733_v25 = vmax.f32 %v717_v19, 0.0  ;;  %v734_v3 = vmax.f32 %v718_v49, 0.0  ;;  %v735_v26 = vmax.f32 %v719_v20, 0.0  ;;  %v736_v34 = vmax.f32 %v720_v33, 0.0 }
 0x4d5   :  { %v737_v27 = vmax.f32 %v721_v21, 0.0  ;;  %v738_v38 = vmax.f32 %v722_v22, 0.0  ;;  %v739_v30 = vmax.f32 %v723_v23, 0.0  ;;  %v740_v4 = vmax.f32 %v724_v24, 0.0 }
 0x4d6   :  { %v741_v31 = vmax.f32 %v725_v56, 0.0  ;;  %v742_v45 = vmax.f32 %v726_v58, 0.0  ;;  %v743_v36 = vmax.f32 %v727_v28, 0.0  ;;  %v744_v51 = vmax.f32 %v728_v63, 0.0  ;;  %749 = vst.msk [vmem:[%s1313_s4] sm:$0xff] %vm305_vm2, %v733_v25  ;;  %750 = vst.msk [vmem:[%s1313_s4 + $0x8] sm:$0xff] %vm305_vm2, %v734_v3 }
 0x4d7   :  { %751 = vst.msk [vmem:[%s1313_s4 + $0x10] sm:$0xff] %vm305_vm2, %v735_v26  ;;  %752 = vst.msk [vmem:[%s1313_s4 + $0x18] sm:$0xff] %vm305_vm2, %v736_v34  ;;  %v745_v57 = vmax.f32 %v729_v29, 0.0  ;;  %v746_v61 = vmax.f32 %v730_v32, 0.0  ;;  %v747_v1 = vmax.f32 %v731_v0, 0.0  ;;  %v748_v5 = vmax.f32 %v732_v2, 0.0 }
 0x4d8   :  { %753 = vst.msk [vmem:[%s1313_s4 + $0x20] sm:$0xff] %vm305_vm2, %v737_v27  ;;  %754 = vst.msk [vmem:[%s1313_s4 + $0x28] sm:$0xff] %vm305_vm2, %v738_v38 }
 0x4d9   :  { %755 = vst.msk [vmem:[%s1313_s4 + $0x30] sm:$0xff] %vm305_vm2, %v739_v30  ;;  %756 = vst.msk [vmem:[%s1313_s4 + $0x38] sm:$0xff] %vm305_vm2, %v740_v4 }
 0x4da   :  { %757 = vst.msk [vmem:[%s1313_s4 + $0x40] sm:$0xff] %vm305_vm2, %v741_v31  ;;  %758 = vst.msk [vmem:[%s1313_s4 + $0x48] sm:$0xff] %vm305_vm2, %v742_v45 }
 0x4db   :  { %759 = vst.msk [vmem:[%s1313_s4 + $0x50] sm:$0xff] %vm305_vm2, %v743_v36  ;;  %760 = vst.msk [vmem:[%s1313_s4 + $0x58] sm:$0xff] %vm305_vm2, %v744_v51 }
 0x4dc   :  { %761 = vst.msk [vmem:[%s1313_s4 + $0x60] sm:$0xff] %vm305_vm2, %v745_v57  ;;  %762 = vst.msk [vmem:[%s1313_s4 + $0x68] sm:$0xff] %vm305_vm2, %v746_v61 }
 0x4dd   :  { %763 = vst.msk [vmem:[%s1313_s4 + $0x70] sm:$0xff] %vm305_vm2, %v747_v1  ;;  %764 = vst.msk [vmem:[%s1313_s4 + $0x78] sm:$0xff] %vm305_vm2, %v748_v5 }

// kernel: decoder_forward.7
= control target key start
LH: loop header
LB: loop body
LE: loop exit
PB: predicated region body
PF: predicated region fallthrough
CT: control target
= control target key end

     0   :  { %vm281_vm0 = vcmask 588800   ;;  %vm378_vm1 = vcmask 1043456   ;;  %vm674_vm2 = vcmask 130048   ;;  %v4236_v49 = vmov 0.0|0.0   ;;  %s4230_s1 = inlined_call_operand.vmem [shape: bf16[72,16], index: 1, kind: input, shape index: {}]   ;;  %s4231_s0 = inlined_call_operand.vmem [shape: bf16[512,72], index: 0, kind: input, shape index: {}]   ;;  %s4232_s2 = inlined_call_operand.vmem [shape: f32[16,4], index: 2, kind: input, shape index: {}]   ;;  %s4233_s3 = inlined_call_operand.vmem [shape: f32[4,16], index: 3, kind: input, shape index: {}]   ;;  %s4234_s4 = inlined_call_operand.vmem [shape: f32[16,12], index: 4, kind: input, shape index: {}]   ;;  %s4235_s5 = inlined_call_operand.vmem [shape: f32[512,12], index: 5, kind: output, shape index: {}]  }
   0x1   :  { %v2681_v0 = vld [vmem:[%s4230_s1] sm:$0xff]   ;;  %v2682_v1 = vld [vmem:[%s4230_s1 + $0x8] sm:$0xff]   ;;  %v2683_v2 = vld [vmem:[%s4230_s1 + $0x10] sm:$0xff]   ;;  %2667 = vmatprep.subr.bf16.mxu1 %v4236_v49  ;;  %vm2849_vm3 = vmmov 0   ;;  %v4237_v52 = vmov 0.0   ;;  %vm882_vm4 = vcmask 31744  }
   0x2   :  { %2469 = vmatprep.subr.bf16.mxu0 %v2681_v0  ;;  %v2686_v3 = vld [vmem:[%s4231_s0] sm:$0xff]   ;;  %v2684_v4 = vld [vmem:[%s4230_s1 + $0x18] sm:$0xff]   ;;  %v2687_v7 = vld [vmem:[%s4231_s0 + $0x8] sm:$0xff]   ;;  %2547 = vmatprep.mubr.msk.f32.mxu1 %vm2849_vm3, %v4237_v52  ;;  %vm2148_vm5 = vcmask 97280  }
   0x3   :  { %2470 = vmatpush3.bf16.msra.mxu0 %v2681_v0  ;;  %2479 = vmatprep.mubr.msk.bf16.mxu0 %vm281_vm0, %v2686_v3  ;;  %v2685_v5 = vld [vmem:[%s4230_s1 + $0x20] ss:$0 sps:$4 sm:$0xff]   ;;  %v2688_v8 = vld [vmem:[%s4231_s0 + $0x10] sm:$0xff]   ;;  %v2689_v9 = vld [vmem:[%s4231_s0 + $0x18] sm:$0xff]  }
   0x4   :  { %2471 = vmatprep.subr.bf16.mxu0 %v2682_v1  ;;  %v380_v6 = vsel %vm378_vm1, %v2685_v5, 0  ;;  %v2690_v10 = vld [vmem:[%s4231_s0 + $0x20] sm:$0xff]   ;;  %v2691_v11 = vld [vmem:[%s4231_s0 + $0x28] sm:$0xff]   ;;  %v2692_v12 = vld [vmem:[%s4231_s0 + $0x30] sm:$0xff]  }
   0x5   :  { %v2693_v13 = vld [vmem:[%s4231_s0 + $0x38] sm:$0xff]   ;;  %v2694_v14 = vld [vmem:[%s4231_s0 + $0x40] sm:$0xff]   ;;  %v2695_v15 = vld [vmem:[%s4231_s0 + $0x48] sm:$0xff]  }
   0x6   :  { %v2696_v16 = vld [vmem:[%s4231_s0 + $0x50] sm:$0xff]   ;;  %v2697_v17 = vld [vmem:[%s4231_s0 + $0x58] sm:$0xff]   ;;  %v2698_v18 = vld [vmem:[%s4231_s0 + $0x60] sm:$0xff]  }
   0x7   :  { %2472 = vmatpush3.bf16.msra.mxu0 %v2682_v1  ;;  %v2699_v19 = vld [vmem:[%s4231_s0 + $0x68] sm:$0xff]   ;;  %v2700_v20 = vld [vmem:[%s4231_s0 + $0x70] sm:$0xff]   ;;  %v2701_v21 = vld [vmem:[%s4231_s0 + $0x78] sm:$0xff]  }
   0x8   :  { %2473 = vmatprep.subr.bf16.mxu0 %v2683_v2  ;;  %v2702_v22 = vld [vmem:[%s4231_s0 + $0x80] sm:$0xff]   ;;  %v2703_v23 = vld [vmem:[%s4231_s0 + $0x88] sm:$0xff]   ;;  %v2704_v24 = vld [vmem:[%s4231_s0 + $0x90] sm:$0xff]  }
   0x9   :  { %v2705_v25 = vld [vmem:[%s4231_s0 + $0x98] sm:$0xff]   ;;  %v2706_v26 = vld [vmem:[%s4231_s0 + $0xa0] sm:$0xff]   ;;  %v2707_v27 = vld [vmem:[%s4231_s0 + $0xa8] sm:$0xff]  }
   0xa   :  { %v2708_v28 = vld [vmem:[%s4231_s0 + $0xb0] sm:$0xff]   ;;  %v2709_v29 = vld [vmem:[%s4231_s0 + $0xb8] sm:$0xff]   ;;  %v2710_v30 = vld [vmem:[%s4231_s0 + $0xc0] sm:$0xff]  }
   0xb   :  { %2474 = vmatpush3.bf16.msra.mxu0 %v2683_v2  ;;  %v2711_v31 = vld [vmem:[%s4231_s0 + $0xc8] sm:$0xff]   ;;  %v2712_v32 = vld [vmem:[%s4231_s0 + $0xd0] sm:$0xff]   ;;  %v2713_v33 = vld [vmem:[%s4231_s0 + $0xd8] sm:$0xff]  }
   0xc   :  { %2475 = vmatprep.subr.bf16.mxu0 %v2684_v4  ;;  %v2714_v34 = vld [vmem:[%s4231_s0 + $0xe0] sm:$0xff]   ;;  %v2715_v35 = vld [vmem:[%s4231_s0 + $0xe8] sm:$0xff]   ;;  %v2716_v36 = vld [vmem:[%s4231_s0 + $0xf0] sm:$0xff]  }
   0xd   :  { %v2717_v37 = vld [vmem:[%s4231_s0 + $0xf8] sm:$0xff]   ;;  %v671_v50 = vld [vmem:[%s4232_s2] sm:$0xff]  ;;  %v672_v51 = vld [vmem:[%s4232_s2 + $0x8] sm:$0xff] }
   0xe   :  { %v3055_v55 = vpack.c.bf16 %v672_v51, %v671_v50 }
   0xf   :  { %2476 = vmatpush3.bf16.msra.mxu0 %v2684_v4 }
  0x10   :  { %2677 = vmatprep.subr.msk.bf16.mxu0 %vm378_vm1, %v2685_v5  ;;  %2669 = vmatpush3.bf16.msra.mxu1 %v3055_v55 }
  0x11   :  { %2550 = vmatprep.subr.mxu1 %v4237_v52 }
  0x13   :  { %2478 = vmatpush3.bf16.msra.mxu0 %v380_v6 }
  0x16   :  { %2480 = vmatmul.mubr.msk.bf16.vlgmr.msra.gmra.mrb[0].mxu0 %vm281_vm0, %v2687_v7 }
  0x17   :  { %2483 = vmatprep.mubr.msk.bf16.mxu0 %vm281_vm0, %v2688_v8 }
  0x1e   :  { %2484 = vmatmul.mubr.msk.bf16.gmra.mrb[4].mxu0 %vm281_vm0, %v2689_v9 }
  0x1f   :  { %2487 = vmatprep.mubr.msk.bf16.mxu0 %vm281_vm0, %v2690_v10 }
  0x26   :  { %2488 = vmatmul.mubr.msk.bf16.gmra.mrb[8].mxu0 %vm281_vm0, %v2691_v11 }
  0x27   :  { %2491 = vmatprep.mubr.msk.bf16.mxu0 %vm281_vm0, %v2692_v12 }
  0x2e   :  { %2492 = vmatmul.mubr.msk.bf16.gmra.mrb[12].mxu0 %vm281_vm0, %v2693_v13 }
  0x2f   :  { %2495 = vmatprep.mubr.msk.bf16.mxu0 %vm281_vm0, %v2694_v14 }
  0x36   :  { %2496 = vmatmul.mubr.msk.bf16.gmra.mrb[16].mxu0 %vm281_vm0, %v2695_v15 }
  0x37   :  { %2499 = vmatprep.mubr.msk.bf16.mxu0 %vm281_vm0, %v2696_v16 }
  0x3e   :  { %2500 = vmatmul.mubr.msk.bf16.gmra.mrb[20].mxu0 %vm281_vm0, %v2697_v17 }
  0x3f   :  { %2503 = vmatprep.mubr.msk.bf16.mxu0 %vm281_vm0, %v2698_v18 }
  0x46   :  { %2504 = vmatmul.mubr.msk.bf16.gmra.mrb[24].mxu0 %vm281_vm0, %v2699_v19 }
  0x47   :  { %2507 = vmatprep.mubr.msk.bf16.mxu0 %vm281_vm0, %v2700_v20 }
  0x4e   :  { %2508 = vmatmul.mubr.msk.bf16.gmra.mrb[28].mxu0 %vm281_vm0, %v2701_v21 }
  0x4f   :  { %2511 = vmatprep.mubr.msk.bf16.mxu0 %vm281_vm0, %v2702_v22 }
  0x56   :  { %2512 = vmatmul.mubr.msk.bf16.gmra.mrb[32].mxu0 %vm281_vm0, %v2703_v23 }
  0x57   :  { %2515 = vmatprep.mubr.msk.bf16.mxu0 %vm281_vm0, %v2704_v24 }
  0x5e   :  { %2516 = vmatmul.mubr.msk.bf16.gmra.mrb[36].mxu0 %vm281_vm0, %v2705_v25 }
  0x5f   :  { %2519 = vmatprep.mubr.msk.bf16.mxu0 %vm281_vm0, %v2706_v26 }
  0x66   :  { %2520 = vmatmul.mubr.msk.bf16.gmra.mrb[40].mxu0 %vm281_vm0, %v2707_v27 }
  0x67   :  { %2523 = vmatprep.mubr.msk.bf16.mxu0 %vm281_vm0, %v2708_v28 }
  0x6e   :  { %2524 = vmatmul.mubr.msk.bf16.gmra.mrb[44].mxu0 %vm281_vm0, %v2709_v29 }
  0x6f   :  { %2527 = vmatprep.mubr.msk.bf16.mxu0 %vm281_vm0, %v2710_v30 }
  0x76   :  { %2528 = vmatmul.mubr.msk.bf16.gmra.mrb[48].mxu0 %vm281_vm0, %v2711_v31 }
  0x77   :  { %2531 = vmatprep.mubr.msk.bf16.mxu0 %vm281_vm0, %v2712_v32 }
  0x7e   :  { %2532 = vmatmul.mubr.msk.bf16.gmra.mrb[52].mxu0 %vm281_vm0, %v2713_v33 }
  0x7f   :  { %2535 = vmatprep.mubr.msk.bf16.mxu0 %vm281_vm0, %v2714_v34 }
  0x86   :  { %2536 = vmatmul.mubr.msk.bf16.gmra.mrb[56].mxu0 %vm281_vm0, %v2715_v35 }
  0x87   :  { %2539 = vmatprep.mubr.msk.bf16.mxu0 %vm281_vm0, %v2716_v36 }
  0x8e   :  { %2540 = vmatmul.mubr.msk.bf16.gmra.mrb[60].mxu0 %vm281_vm0, %v2717_v37 }
  0xe9   :  { %v3026_v38 = vpop.f32.mrb[0].mxu0 }
  0xea   :  { %v3028_v39 = vpop.f32.mrb[1].mxu0  ;;  %v678_v45 = vsel %vm674_vm2, %v3026_v38, 0.0 }
  0xeb   :  { %v3030_v40 = vpop.f32.mrb[2].mxu0  ;;  %v675_v42 = vsel %vm674_vm2, %v3028_v39, 0.0 }
  0xec   :  { %v3032_v41 = vpop.f32.mrb[3].mxu0  ;;  %v680_v47 = vsel %vm674_vm2, %v3030_v40, 0.0 }
  0xed   :  { %v676_v43 = vsel %vm674_vm2, %v3032_v41, 0.0 }
  0xee   :  { %v677_v44 = vadd.f32 %v676_v43, %v675_v42 }
  0xf0   :  { %v679_v46 = vadd.f32 %v678_v45, %v677_v44 }
  0xf1   :  { %v3042_v48 = vpop.f32.mrb[4].mxu0 }
  0xf2   :  { %v3053_v53 = vpop.f32.mrb[5].mxu0  ;;  %v681_v54 = vadd.f32 %v680_v47, %v679_v46  ;;  %v686_v62 = vsel %vm674_vm2, %v3042_v48, 0.0 }
  0xf3   :  { %v682_v56 = vsel %vm674_vm2, %v3053_v53, 0.0  ;;  %v3059_v57 = vpop.f32.mrb[6].mxu0 }
  0xf4   :  { %v683_v58 = vadd.f32 %v682_v56, %v681_v54  ;;  %v3061_v59 = vpop.f32.mrb[7].mxu0  ;;  %v688_v0 = vsel %vm674_vm2, %v3059_v57, 0.0 }
  0xf5   :  { %v684_v60 = vsel %vm674_vm2, %v3061_v59, 0.0 }
  0xf6   :  { %v685_v61 = vadd.f32 %v684_v60, %v683_v58 }
  0xf8   :  { %v687_v63 = vadd.f32 %v686_v62, %v685_v61 }
  0xf9   :  { %v3071_v1 = vpop.f32.mrb[8].mxu0 }
  0xfa   :  { %v3073_v2 = vpop.f32.mrb[9].mxu0  ;;  %v689_v3 = vadd.f32 %v688_v0, %v687_v63  ;;  %v694_v10 = vsel %vm674_vm2, %v3071_v1, 0.0 }
  0xfb   :  { %v690_v4 = vsel %vm674_vm2, %v3073_v2, 0.0  ;;  %v3077_v5 = vpop.f32.mrb[10].mxu0 }
  0xfc   :  { %v691_v6 = vadd.f32 %v690_v4, %v689_v3  ;;  %v3079_v7 = vpop.f32.mrb[11].mxu0  ;;  %v696_v12 = vsel %vm674_vm2, %v3077_v5, 0.0 }
  0xfd   :  { %v692_v8 = vsel %vm674_vm2, %v3079_v7, 0.0 }
  0xfe   :  { %v693_v9 = vadd.f32 %v692_v8, %v691_v6 }
 0x100   :  { %v695_v11 = vadd.f32 %v694_v10, %v693_v9 }
 0x101   :  { %v3087_v13 = vpop.f32.mrb[12].mxu0 }
 0x102   :  { %v3089_v14 = vpop.f32.mrb[13].mxu0  ;;  %v697_v15 = vadd.f32 %v696_v12, %v695_v11  ;;  %v702_v22 = vsel %vm674_vm2, %v3087_v13, 0.0 }
 0x103   :  { %v698_v16 = vsel %vm674_vm2, %v3089_v14, 0.0  ;;  %v3093_v17 = vpop.f32.mrb[14].mxu0 }
 0x104   :  { %v699_v18 = vadd.f32 %v698_v16, %v697_v15  ;;  %v3095_v19 = vpop.f32.mrb[15].mxu0  ;;  %v704_v24 = vsel %vm674_vm2, %v3093_v17, 0.0 }
 0x105   :  { %v700_v20 = vsel %vm674_vm2, %v3095_v19, 0.0 }
 0x106   :  { %v701_v21 = vadd.f32 %v700_v20, %v699_v18 }
 0x108   :  { %v703_v23 = vadd.f32 %v702_v22, %v701_v21 }
 0x109   :  { %v3103_v25 = vpop.f32.mrb[16].mxu0 }
 0x10a   :  { %v3105_v26 = vpop.f32.mrb[17].mxu0  ;;  %v705_v27 = vadd.f32 %v704_v24, %v703_v23  ;;  %v710_v34 = vsel %vm674_vm2, %v3103_v25, 0.0 }
 0x10b   :  { %v706_v28 = vsel %vm674_vm2, %v3105_v26, 0.0  ;;  %v3109_v29 = vpop.f32.mrb[18].mxu0 }
 0x10c   :  { %v707_v30 = vadd.f32 %v706_v28, %v705_v27  ;;  %v3111_v31 = vpop.f32.mrb[19].mxu0  ;;  %v712_v36 = vsel %vm674_vm2, %v3109_v29, 0.0 }
 0x10d   :  { %v708_v32 = vsel %vm674_vm2, %v3111_v31, 0.0 }
 0x10e   :  { %v709_v33 = vadd.f32 %v708_v32, %v707_v30 }
 0x110   :  { %v711_v35 = vadd.f32 %v710_v34, %v709_v33 }
 0x111   :  { %v3119_v37 = vpop.f32.mrb[20].mxu0 }
 0x112   :  { %v3121_v42 = vpop.f32.mrb[21].mxu0  ;;  %v713_v43 = vadd.f32 %v712_v36, %v711_v35  ;;  %v718_v54 = vsel %vm674_vm2, %v3119_v37, 0.0 }
 0x113   :  { %v714_v44 = vsel %vm674_vm2, %v3121_v42, 0.0  ;;  %v3125_v45 = vpop.f32.mrb[22].mxu0 }
 0x114   :  { %v715_v46 = vadd.f32 %v714_v44, %v713_v43  ;;  %v3127_v47 = vpop.f32.mrb[23].mxu0  ;;  %v720_v58 = vsel %vm674_vm2, %v3125_v45, 0.0 }
 0x115   :  { %v716_v50 = vsel %vm674_vm2, %v3127_v47, 0.0 }
 0x116   :  { %v717_v51 = vadd.f32 %v716_v50, %v715_v46 }
 0x118   :  { %v719_v56 = vadd.f32 %v718_v54, %v717_v51 }
 0x119   :  { %v3135_v60 = vpop.f32.mrb[24].mxu0 }
 0x11a   :  { %v3137_v61 = vpop.f32.mrb[25].mxu0  ;;  %v721_v62 = vadd.f32 %v720_v58, %v719_v56  ;;  %v726_v9 = vsel %vm674_vm2, %v3135_v60, 0.0 }
 0x11b   :  { %v722_v63 = vsel %vm674_vm2, %v3137_v61, 0.0  ;;  %v3141_v0 = vpop.f32.mrb[26].mxu0 }
 0x11c   :  { %v723_v3 = vadd.f32 %v722_v63, %v721_v62  ;;  %v3143_v4 = vpop.f32.mrb[27].mxu0  ;;  %v728_v11 = vsel %vm674_vm2, %v3141_v0, 0.0 }
 0x11d   :  { %v724_v6 = vsel %vm674_vm2, %v3143_v4, 0.0 }
 0x11e   :  { %v725_v8 = vadd.f32 %v724_v6, %v723_v3 }
 0x120   :  { %v727_v10 = vadd.f32 %v726_v9, %v725_v8 }
 0x121   :  { %v3151_v12 = vpop.f32.mrb[28].mxu0 }
 0x122   :  { %v3153_v15 = vpop.f32.mrb[29].mxu0  ;;  %v729_v16 = vadd.f32 %v728_v11, %v727_v10  ;;  %v734_v27 = vsel %vm674_vm2, %v3151_v12, 0.0 }
 0x123   :  { %v730_v18 = vsel %vm674_vm2, %v3153_v15, 0.0  ;;  %v3157_v20 = vpop.f32.mrb[30].mxu0 }
 0x124   :  { %v731_v21 = vadd.f32 %v730_v18, %v729_v16  ;;  %v3159_v22 = vpop.f32.mrb[31].mxu0  ;;  %v736_v30 = vsel %vm674_vm2, %v3157_v20, 0.0 }
 0x125   :  { %v732_v23 = vsel %vm674_vm2, %v3159_v22, 0.0 }
 0x126   :  { %v733_v24 = vadd.f32 %v732_v23, %v731_v21 }
 0x128   :  { %v735_v28 = vadd.f32 %v734_v27, %v733_v24 }
 0x129   :  { %v3167_v32 = vpop.f32.mrb[32].mxu0 }
 0x12a   :  { %v3169_v33 = vpop.f32.mrb[33].mxu0  ;;  %v737_v34 = vadd.f32 %v736_v30, %v735_v28  ;;  %v742_v51 = vsel %vm674_vm2, %v3167_v32, 0.0 }
 0x12b   :  { %v738_v35 = vsel %vm674_vm2, %v3169_v33, 0.0  ;;  %v3173_v36 = vpop.f32.mrb[34].mxu0 }
 0x12c   :  { %v739_v43 = vadd.f32 %v738_v35, %v737_v34  ;;  %v3175_v44 = vpop.f32.mrb[35].mxu0  ;;  %v744_v56 = vsel %vm674_vm2, %v3173_v36, 0.0 }
 0x12d   :  { %v740_v46 = vsel %vm674_vm2, %v3175_v44, 0.0 }
 0x12e   :  { %v741_v50 = vadd.f32 %v740_v46, %v739_v43 }
 0x130   :  { %v743_v54 = vadd.f32 %v742_v51, %v741_v50 }
 0x131   :  { %v3183_v58 = vpop.f32.mrb[36].mxu0 }
 0x132   :  { %v3185_v62 = vpop.f32.mrb[37].mxu0  ;;  %v745_v63 = vadd.f32 %v744_v56, %v743_v54  ;;  %v750_v16 = vsel %vm674_vm2, %v3183_v58, 0.0 }
 0x133   :  { %v746_v3 = vsel %vm674_vm2, %v3185_v62, 0.0  ;;  %v3189_v6 = vpop.f32.mrb[38].mxu0 }
 0x134   :  { %v747_v8 = vadd.f32 %v746_v3, %v745_v63  ;;  %v3191_v9 = vpop.f32.mrb[39].mxu0  ;;  %v752_v21 = vsel %vm674_vm2, %v3189_v6, 0.0 }
 0x135   :  { %v748_v10 = vsel %vm674_vm2, %v3191_v9, 0.0 }
 0x136   :  { %v749_v11 = vadd.f32 %v748_v10, %v747_v8 }
 0x138   :  { %v751_v18 = vadd.f32 %v750_v16, %v749_v11 }
 0x139   :  { %v3199_v23 = vpop.f32.mrb[40].mxu0 }
 0x13a   :  { %v3201_v24 = vpop.f32.mrb[41].mxu0  ;;  %v753_v27 = vadd.f32 %v752_v21, %v751_v18  ;;  %v758_v50 = vsel %vm674_vm2, %v3199_v23, 0.0 }
 0x13b   :  { %v754_v28 = vsel %vm674_vm2, %v3201_v24, 0.0  ;;  %v3205_v30 = vpop.f32.mrb[42].mxu0 }
 0x13c   :  { %v755_v34 = vadd.f32 %v754_v28, %v753_v27  ;;  %v3207_v35 = vpop.f32.mrb[43].mxu0  ;;  %v760_v54 = vsel %vm674_vm2, %v3205_v30, 0.0 }
 0x13d   :  { %v756_v43 = vsel %vm674_vm2, %v3207_v35, 0.0 }
 0x13e   :  { %v757_v46 = vadd.f32 %v756_v43, %v755_v34 }
 0x140   :  { %v759_v51 = vadd.f32 %v758_v50, %v757_v46 }
 0x141   :  { %v3215_v56 = vpop.f32.mrb[44].mxu0 }
 0x142   :  { %4280 = vst [vmem:[#allocation2_spill] sm:$0xff] %v3215_v56  ;;  %v3217_v63 = vpop.f32.mrb[45].mxu0  ;;  %v761_v3 = vadd.f32 %v760_v54, %v759_v51  ;;  %v766_v27 = vsel %vm674_vm2, %v3215_v56, 0.0 }
 0x143   :  { %v762_v8 = vsel %vm674_vm2, %v3217_v63, 0.0  ;;  %v3221_v10 = vpop.f32.mrb[46].mxu0 }
 0x144   :  { %4281 = vst [vmem:[#allocation3_spill] sm:$0xff] %v3221_v10  ;;  %v763_v11 = vadd.f32 %v762_v8, %v761_v3  ;;  %v3223_v16 = vpop.f32.mrb[47].mxu0  ;;  %v768_v34 = vsel %vm674_vm2, %v3221_v10, 0.0 }
 0x145   :  { %v764_v18 = vsel %vm674_vm2, %v3223_v16, 0.0 }
 0x146   :  { %v765_v21 = vadd.f32 %v764_v18, %v763_v11 }
 0x148   :  { %v767_v28 = vadd.f32 %v766_v27, %v765_v21 }
 0x149   :  { %v3231_v43 = vpop.f32.mrb[48].mxu0 }
 0x14a   :  { %4282 = vst [vmem:[#allocation4_spill] sm:$0xff] %v3231_v43  ;;  %v3233_v46 = vpop.f32.mrb[49].mxu0  ;;  %v769_v50 = vadd.f32 %v768_v34, %v767_v28  ;;  %v774_v21 = vsel %vm674_vm2, %v3231_v43, 0.0 }
 0x14b   :  { %4283 = vst [vmem:[#allocation5_spill] sm:$0xff] %v3233_v46  ;;  %v770_v51 = vsel %vm674_vm2, %v3233_v46, 0.0  ;;  %v3237_v54 = vpop.f32.mrb[50].mxu0 }
 0x14c   :  { %4284 = vst [vmem:[#allocation6_spill] sm:$0xff] %v3237_v54  ;;  %v771_v3 = vadd.f32 %v770_v51, %v769_v50  ;;  %v3239_v8 = vpop.f32.mrb[51].mxu0  ;;  %v776_v49 = vsel %vm674_vm2, %v3237_v54, 0.0 }
 0x14d   :  { %4285 = vst [vmem:[#allocation7_spill] sm:$0xff] %v3239_v8  ;;  %v772_v11 = vsel %vm674_vm2, %v3239_v8, 0.0 }
 0x14e   :  { %v773_v18 = vadd.f32 %v772_v11, %v771_v3 }
 0x150   :  { %v775_v27 = vadd.f32 %v774_v21, %v773_v18 }
 0x151   :  { %v3247_v28 = vpop.f32.mrb[52].mxu0 }
 0x152   :  { %4286 = vst [vmem:[#allocation8_spill] sm:$0xff] %v3247_v28  ;;  %v3249_v34 = vpop.f32.mrb[53].mxu0  ;;  %v777_v52 = vadd.f32 %v776_v49, %v775_v27  ;;  %v782_v18 = vsel %vm674_vm2, %v3247_v28, 0.0 }
 0x153   :  { %4287 = vst [vmem:[#allocation9_spill] sm:$0xff] %v3249_v34  ;;  %v778_v50 = vsel %vm674_vm2, %v3249_v34, 0.0  ;;  %v3253_v51 = vpop.f32.mrb[54].mxu0 }
 0x154   :  { %4288 = vst [vmem:[#allocation10_spill] sm:$0xff] %v3253_v51  ;;  %v779_v46 = vadd.f32 %v778_v50, %v777_v52  ;;  %v3255_v8 = vpop.f32.mrb[55].mxu0  ;;  %v784_v54 = vsel %vm674_vm2, %v3253_v51, 0.0 }
 0x155   :  { %4289 = vst [vmem:[#allocation11_spill] sm:$0xff] %v3255_v8  ;;  %v780_v3 = vsel %vm674_vm2, %v3255_v8, 0.0 }
 0x156   :  { %v781_v11 = vadd.f32 %v780_v3, %v779_v46 }
 0x158   :  { %v783_v21 = vadd.f32 %v782_v18, %v781_v11 }
 0x159   :  { %v3263_v49 = vpop.f32.mrb[56].mxu0 }
 0x15a   :  { %4290 = vst [vmem:[#allocation12_spill] sm:$0xff] %v3263_v49  ;;  %v3265_v27 = vpop.f32.mrb[57].mxu0  ;;  %v785_v34 = vadd.f32 %v784_v54, %v783_v21  ;;  %v790_v11 = vsel %vm674_vm2, %v3263_v49, 0.0 }
 0x15b   :  { %4291 = vst [vmem:[#allocation13_spill] sm:$0xff] %v3265_v27  ;;  %v786_v52 = vsel %vm674_vm2, %v3265_v27, 0.0  ;;  %v3269_v50 = vpop.f32.mrb[58].mxu0 }
 0x15c   :  { %4292 = vst [vmem:[#allocation14_spill] sm:$0xff] %v3269_v50  ;;  %v787_v43 = vadd.f32 %v786_v52, %v785_v34  ;;  %v3271_v8 = vpop.f32.mrb[59].mxu0  ;;  %v792_v51 = vsel %vm674_vm2, %v3269_v50, 0.0 }
 0x15d   :  { %4293 = vst [vmem:[#allocation15_spill] sm:$0xff] %v3271_v8  ;;  %v788_v46 = vsel %vm674_vm2, %v3271_v8, 0.0 }
 0x15e   :  { %v789_v3 = vadd.f32 %v788_v46, %v787_v43 }
 0x160   :  { %v791_v18 = vadd.f32 %v790_v11, %v789_v3 }
 0x161   :  { %v3279_v54 = vpop.f32.mrb[60].mxu0 }
 0x162   :  { %v3281_v21 = vpop.f32.mrb[61].mxu0  ;;  %v793_v27 = vadd.f32 %v792_v51, %v791_v18  ;;  %v798_v3 = vsel %vm674_vm2, %v3279_v54, 0.0 }
 0x163   :  { %4294 = vst [vmem:[#allocation16_spill] sm:$0xff] %v3281_v21  ;;  %v794_v34 = vsel %vm674_vm2, %v3281_v21, 0.0  ;;  %v3285_v52 = vpop.f32.mrb[62].mxu0 }
 0x164   :  { %v795_v28 = vadd.f32 %v794_v34, %v793_v27  ;;  %v3287_v8 = vpop.f32.mrb[63].mxu0  ;;  %v800_v50 = vsel %vm674_vm2, %v3285_v52, 0.0  ;;  %v3298_v34 = vld [vmem:[%s4233_s3] sm:$0xf] }
 0x165   :  { %v796_v43 = vsel %vm674_vm2, %v3287_v8, 0.0  ;;  %4295 = vst [vmem:[#allocation17_spill] sm:$0xff] %v3298_v34 }
 0x166   :  { %v797_v46 = vadd.f32 %v796_v43, %v795_v28  ;;  %v4296_v28 = vmov 0.0  }
 0x168   :  { %v799_v11 = vadd.f32 %v798_v3, %v797_v46 }
 0x16a   :  { %v801_v51 = vadd.f32 %v800_v50, %v799_v11  ;;  %v4297_v50 = vmov 0.0|0.0  }
 0x16c   :  { %v802_v18 = vrot.slane %v801_v51, 4 }
 0x16e   :  { %v803_v49 = vadd.f32 %v802_v18, %v801_v51 }
 0x170   :  { %v804_v21 = vrot.slane %v803_v49, 2 }
 0x172   :  { %v805_v10 = vadd.f32 %v804_v21, %v803_v49 }
 0x174   :  { %v806_v56 = vrot.slane %v805_v10, 1 }
 0x176   :  { %v807_v27 = vadd.f32 %v806_v56, %v805_v10  ;;  %v959_v56 = vlaneseq }
 0x178   :  { %2548 = vmatmul.mubr.msk.f32.vlgmr.msra.gmra.mrb[0].mxu1 %vm674_vm2, %v807_v27  ;;  %v3311_v10 = vshrl.u32 %v959_v56, 7  ;;  %v4307_v56 = vld [vmem:[#allocation5_spill] sm:$0xff] }
 0x179   :  { %2551 = vmatpush3.msk.msra.mxu1 %vm378_vm1, %v3298_v34  ;;  %2552 = vmatprep.mubr.msk.f32.mxu1 %vm2849_vm3, %v4296_v28  ;;  %v4319_v34 = vld [vmem:[#allocation8_spill] sm:$0xff] }
 0x17a   :  { %2670 = vmatprep.subr.bf16.mxu1 %v4297_v50  ;;  %4298 = vst [vmem:[#allocation18_spill] sm:$0xff] %v3311_v10  ;;  %v4254_v46 = vsub.s32 0, %v3311_v10  ;;  %v4315_v10 = vld [vmem:[#allocation9_spill] sm:$0xff] }
 0x24b   :  { %v877_v43 = vpop.f32.mrb[0].mxu1 }
 0x24c   :  { %v881_v49 = vmul.f32 0.00048828125, %v877_v43  ;;  %v2549_v21 = vpop.f32.mrb[1].mxu1 }
 0x24d   :  { %v4305_v21 = vld [vmem:[#allocation3_spill] sm:$0xff] }
 0x24e   :  { %2553 = vmatmul.mubr.msk.f32.vlgmr.msra.gmra.mrb[2].mxu1 %vm882_vm4, %v881_v49  ;;  %v4303_v49 = vld [vmem:[#allocation2_spill] sm:$0xff] }
 0x24f   :  { %2672 = vmatpush3.bf16.msra.mxu1 %v3055_v55  ;;  %2559 = vmatprep.mubr.msk.f32.mxu1 %vm2849_vm3, %v4296_v28 }
 0x250   :  { %2562 = vmatprep.subr.mxu1 %v4296_v28  ;;  %v4317_v28 = vld [vmem:[#allocation11_spill] sm:$0xff] }
 0x321   :  { %v955_v3 = vpop.f32.mrb[2].mxu1 }
 0x322   :  { %v3316_v11 = vrot.slane %v955_v3, %v4254_v46  ;;  %v2554_v51 = vpop.f32.mrb[3].mxu1  ;;  %v4309_v3 = vld [vmem:[#allocation7_spill] sm:$0xff]  ;;  %v4313_v46 = vld [vmem:[#allocation6_spill] sm:$0xff] }
 0x323   :  { %v4311_v51 = vld [vmem:[#allocation4_spill] sm:$0xff] }
 0x324   :  { %v3320_v18 = vsub.f32 %v3028_v39, %v3316_v11  ;;  %v3324_v55 = vsub.f32 %v3032_v41, %v3316_v11  ;;  %v3328_v27 = vsub.f32 %v3026_v38, %v3316_v11  ;;  %v3332_v50 = vsub.f32 %v3030_v40, %v3316_v11 }
 0x325   :  { %v3336_v43 = vsub.f32 %v3053_v53, %v3316_v11  ;;  %v3340_v39 = vsub.f32 %v3061_v59, %v3316_v11  ;;  %v3344_v41 = vsub.f32 %v3042_v48, %v3316_v11  ;;  %v3348_v38 = vsub.f32 %v3059_v57, %v3316_v11 }
 0x326   :  { %4299 = vst [vmem:[#allocation19_spill] sm:$0xff] %v3320_v18  ;;  %4300 = vst [vmem:[#allocation20_spill] sm:$0xff] %v3324_v55  ;;  %v3352_v40 = vsub.f32 %v3073_v2, %v3316_v11  ;;  %v3356_v53 = vsub.f32 %v3079_v7, %v3316_v11  ;;  %v3360_v59 = vsub.f32 %v3071_v1, %v3316_v11 }
 0x327   :  { %4301 = vst [vmem:[#allocation21_spill] sm:$0xff] %v3328_v27  ;;  %4302 = vst [vmem:[#allocation22_spill] sm:$0xff] %v3332_v50  ;;  %v3364_v48 = vsub.f32 %v3077_v5, %v3316_v11  ;;  %v3368_v57 = vsub.f32 %v3089_v14, %v3316_v11  ;;  %v3372_v2 = vsub.f32 %v3095_v19, %v3316_v11 }
 0x328   :  { %v3376_v7 = vsub.f32 %v3087_v13, %v3316_v11  ;;  %v3380_v1 = vsub.f32 %v3093_v17, %v3316_v11  ;;  %v3384_v5 = vsub.f32 %v3105_v26, %v3316_v11  ;;  %v3388_v14 = vsub.f32 %v3111_v31, %v3316_v11 }
 0x329   :  { %v3392_v19 = vsub.f32 %v3103_v25, %v3316_v11  ;;  %v3396_v13 = vsub.f32 %v3109_v29, %v3316_v11  ;;  %v3400_v17 = vsub.f32 %v3121_v42, %v3316_v11  ;;  %v3404_v26 = vsub.f32 %v3127_v47, %v3316_v11 }
 0x32a   :  { %v3408_v31 = vsub.f32 %v3119_v37, %v3316_v11  ;;  %v3412_v25 = vsub.f32 %v3125_v45, %v3316_v11  ;;  %v3416_v29 = vsub.f32 %v3137_v61, %v3316_v11  ;;  %v3420_v42 = vsub.f32 %v3143_v4, %v3316_v11 }
 0x32b   :  { %v3424_v47 = vsub.f32 %v3135_v60, %v3316_v11  ;;  %v3428_v37 = vsub.f32 %v3141_v0, %v3316_v11  ;;  %v3432_v45 = vsub.f32 %v3153_v15, %v3316_v11  ;;  %v3436_v61 = vsub.f32 %v3159_v22, %v3316_v11 }
 0x32c   :  { %v3440_v4 = vsub.f32 %v3151_v12, %v3316_v11  ;;  %v3444_v60 = vsub.f32 %v3157_v20, %v3316_v11  ;;  %v3448_v0 = vsub.f32 %v3169_v33, %v3316_v11  ;;  %v3452_v15 = vsub.f32 %v3175_v44, %v3316_v11 }
 0x32d   :  { %v3456_v22 = vsub.f32 %v3167_v32, %v3316_v11  ;;  %v3460_v12 = vsub.f32 %v3173_v36, %v3316_v11  ;;  %v3464_v20 = vsub.f32 %v3185_v62, %v3316_v11  ;;  %v3468_v33 = vsub.f32 %v3191_v9, %v3316_v11 }
 0x32e   :  { %v3472_v44 = vsub.f32 %v3183_v58, %v3316_v11  ;;  %v3476_v32 = vsub.f32 %v3189_v6, %v3316_v11  ;;  %v3480_v36 = vsub.f32 %v3201_v24, %v3316_v11  ;;  %v3484_v62 = vsub.f32 %v3207_v35, %v3316_v11 }
 0x32f   :  { %v3488_v9 = vsub.f32 %v3199_v23, %v3316_v11  ;;  %v3492_v58 = vsub.f32 %v3205_v30, %v3316_v11  ;;  %v3496_v6 = vsub.f32 %v3217_v63, %v3316_v11  ;;  %v3500_v24 = vsub.f32 %v3223_v16, %v3316_v11 }
 0x330   :  { %v3504_v35 = vsub.f32 %v4303_v49, %v3316_v11  ;;  %v3508_v23 = vsub.f32 %v4305_v21, %v3316_v11  ;;  %v3512_v30 = vsub.f32 %v4307_v56, %v3316_v11  ;;  %v3516_v63 = vsub.f32 %v4309_v3, %v3316_v11 }
 0x331   :  { %v3520_v16 = vsub.f32 %v4311_v51, %v3316_v11  ;;  %v3524_v49 = vsub.f32 %v4313_v46, %v3316_v11  ;;  %v3528_v21 = vsub.f32 %v4315_v10, %v3316_v11  ;;  %v3532_v56 = vsub.f32 %v4317_v28, %v3316_v11 }
 0x332   :  { %4304 = vst [vmem:[#allocation2_spill] sm:$0xff] %v3504_v35  ;;  %4306 = vst [vmem:[#allocation3_spill] sm:$0xff] %v3508_v23  ;;  %v3536_v3 = vsub.f32 %v4319_v34, %v3316_v11 }
 0x333   :  { %4308 = vst [vmem:[#allocation5_spill] sm:$0xff] %v3512_v30  ;;  %4310 = vst [vmem:[#allocation7_spill] sm:$0xff] %v3516_v63  ;;  %v4321_v63 = vld [vmem:[#allocation10_spill] sm:$0xff] }
 0x334   :  { %4312 = vst [vmem:[#allocation4_spill] sm:$0xff] %v3520_v16  ;;  %4314 = vst [vmem:[#allocation6_spill] sm:$0xff] %v3524_v49  ;;  %v3540_v51 = vsub.f32 %v4321_v63, %v3316_v11  ;;  %v4323_v16 = vld [vmem:[#allocation13_spill] sm:$0xff]  ;;  %v4325_v49 = vld [vmem:[#allocation15_spill] sm:$0xff] }
 0x335   :  { %4316 = vst [vmem:[#allocation9_spill] sm:$0xff] %v3528_v21  ;;  %4318 = vst [vmem:[#allocation11_spill] sm:$0xff] %v3532_v56  ;;  %v3544_v46 = vsub.f32 %v4323_v16, %v3316_v11  ;;  %v3548_v10 = vsub.f32 %v4325_v49, %v3316_v11  ;;  %v4327_v21 = vld [vmem:[#allocation12_spill] sm:$0xff]  ;;  %v4329_v56 = vld [vmem:[#allocation14_spill] sm:$0xff]  ;;  %v3564_v16 = vsub.f32 %v3287_v8, %v3316_v11 }
 0x336   :  { %4320 = vst [vmem:[#allocation8_spill] sm:$0xff] %v3536_v3  ;;  %4322 = vst [vmem:[#allocation10_spill] sm:$0xff] %v3540_v51  ;;  %v3552_v28 = vsub.f32 %v4327_v21, %v3316_v11  ;;  %v3556_v34 = vsub.f32 %v4329_v56, %v3316_v11  ;;  %v4331_v3 = vld [vmem:[#allocation16_spill] sm:$0xff]  ;;  %v3568_v49 = vsub.f32 %v3279_v54, %v3316_v11 }
 0x337   :  { %4324 = vst [vmem:[#allocation13_spill] sm:$0xff] %v3544_v46  ;;  %4326 = vst [vmem:[#allocation15_spill] sm:$0xff] %v3548_v10  ;;  %v3560_v63 = vsub.f32 %v4331_v3, %v3316_v11  ;;  %v3572_v21 = vsub.f32 %v3285_v52, %v3316_v11  ;;  %v1027_v56 = vmul.f32 %v3320_v18, %v3320_v18 }
 0x338   :  { %4328 = vst [vmem:[#allocation12_spill] sm:$0xff] %v3552_v28  ;;  %4330 = vst [vmem:[#allocation14_spill] sm:$0xff] %v3556_v34  ;;  %v1028_v34 = vmul.f32 %v3324_v55, %v3324_v55  ;;  %v1029_v3 = vmul.f32 %v3328_v27, %v3328_v27  ;;  %v1030_v8 = vmul.f32 %v3332_v50, %v3332_v50 }
 0x339   :  { %4332 = vst [vmem:[#allocation16_spill] sm:$0xff] %v3560_v63  ;;  %4333 = vst [vmem:[#allocation23_spill] sm:$0xff] %v3564_v16  ;;  %v1091_v16 = vsel %vm674_vm2, %v1027_v56, 0.0  ;;  %v1031_v52 = vmul.f32 %v3336_v43, %v3336_v43  ;;  %v1032_v55 = vmul.f32 %v3340_v39, %v3340_v39  ;;  %v1033_v50 = vmul.f32 %v3344_v41, %v3344_v41 }
 0x33a   :  { %4334 = vst [vmem:[#allocation24_spill] sm:$0xff] %v3568_v49  ;;  %4335 = vst [vmem:[#allocation25_spill] sm:$0xff] %v3572_v21  ;;  %v1092_v54 = vsel %vm674_vm2, %v1028_v34, 0.0  ;;  %v1094_v11 = vsel %vm674_vm2, %v1029_v3, 0.0  ;;  %v1096_v21 = vsel %vm674_vm2, %v1030_v8, 0.0  ;;  %v1034_v34 = vmul.f32 %v3348_v38, %v3348_v38 }
 0x33b   :  { %v1093_v49 = vadd.f32 %v1092_v54, %v1091_v16  ;;  %v1098_v56 = vsel %vm674_vm2, %v1031_v52, 0.0  ;;  %v1100_v16 = vsel %vm674_vm2, %v1032_v55, 0.0  ;;  %v1102_v3 = vsel %vm674_vm2, %v1033_v50, 0.0 }
 0x33c   :  { %v1038_v55 = vmul.f32 %v3364_v48, %v3364_v48  ;;  %v1039_v50 = vmul.f32 %v3368_v57, %v3368_v57 }
 0x33d   :  { %v1095_v18 = vadd.f32 %v1094_v11, %v1093_v49  ;;  %v1035_v49 = vmul.f32 %v3352_v40, %v3352_v40 }
 0x33f   :  { %v1097_v27 = vadd.f32 %v1096_v21, %v1095_v18  ;;  %v1036_v18 = vmul.f32 %v3356_v53, %v3356_v53  ;;  %v1104_v21 = vsel %vm674_vm2, %v1034_v34, 0.0  ;;  %v1106_v52 = vsel %vm674_vm2, %v1035_v49, 0.0 }
 0x340   :  { %v1040_v34 = vmul.f32 %v3372_v2, %v3372_v2  ;;  %v1041_v49 = vmul.f32 %v3376_v7, %v3376_v7 }
 0x341   :  { %v1099_v63 = vadd.f32 %v1098_v56, %v1097_v27  ;;  %v1037_v27 = vmul.f32 %v3360_v59, %v3360_v59 }
 0x343   :  { %v1101_v54 = vadd.f32 %v1100_v16, %v1099_v63  ;;  %v1108_v63 = vsel %vm674_vm2, %v1036_v18, 0.0  ;;  %v1042_v18 = vmul.f32 %v3380_v1, %v3380_v1 }
 0x345   :  { %v1103_v11 = vadd.f32 %v1102_v3, %v1101_v54  ;;  %v1110_v54 = vsel %vm674_vm2, %v1037_v27, 0.0  ;;  %v1043_v27 = vmul.f32 %v3384_v5, %v3384_v5 }
 0x347   :  { %v1105_v8 = vadd.f32 %v1104_v21, %v1103_v11  ;;  %v1112_v11 = vsel %vm674_vm2, %v1038_v55, 0.0  ;;  %v1044_v55 = vmul.f32 %v3388_v14, %v3388_v14 }
 0x349   :  { %v1107_v56 = vadd.f32 %v1106_v52, %v1105_v8  ;;  %v1114_v8 = vsel %vm674_vm2, %v1039_v50, 0.0  ;;  %v1045_v50 = vmul.f32 %v3392_v19, %v3392_v19 }
 0x34b   :  { %v1109_v16 = vadd.f32 %v1108_v63, %v1107_v56  ;;  %v1116_v56 = vsel %vm674_vm2, %v1040_v34, 0.0  ;;  %v1046_v34 = vmul.f32 %v3396_v13, %v3396_v13 }
 0x34d   :  { %v1111_v3 = vadd.f32 %v1110_v54, %v1109_v16  ;;  %v1118_v16 = vsel %vm674_vm2, %v1041_v49, 0.0  ;;  %v1047_v49 = vmul.f32 %v3400_v17, %v3400_v17 }
 0x34f   :  { %v1113_v21 = vadd.f32 %v1112_v11, %v1111_v3  ;;  %v1120_v3 = vsel %vm674_vm2, %v1042_v18, 0.0  ;;  %v1048_v18 = vmul.f32 %v3404_v26, %v3404_v26 }
 0x351   :  { %v1115_v52 = vadd.f32 %v1114_v8, %v1113_v21  ;;  %v1122_v21 = vsel %vm674_vm2, %v1043_v27, 0.0  ;;  %v1049_v27 = vmul.f32 %v3408_v31, %v3408_v31 }
 0x353   :  { %v1117_v63 = vadd.f32 %v1116_v56, %v1115_v52  ;;  %v1124_v52 = vsel %vm674_vm2, %v1044_v55, 0.0  ;;  %v1050_v55 = vmul.f32 %v3412_v25, %v3412_v25 }
 0x355   :  { %v1119_v54 = vadd.f32 %v1118_v16, %v1117_v63  ;;  %v1126_v63 = vsel %vm674_vm2, %v1045_v50, 0.0  ;;  %v1051_v50 = vmul.f32 %v3416_v29, %v3416_v29 }
 0x357   :  { %v1121_v11 = vadd.f32 %v1120_v3, %v1119_v54  ;;  %v1128_v54 = vsel %vm674_vm2, %v1046_v34, 0.0  ;;  %v1052_v34 = vmul.f32 %v3420_v42, %v3420_v42 }
 0x359   :  { %v1123_v8 = vadd.f32 %v1122_v21, %v1121_v11  ;;  %v1130_v11 = vsel %vm674_vm2, %v1047_v49, 0.0  ;;  %v1053_v49 = vmul.f32 %v3424_v47, %v3424_v47 }
 0x35b   :  { %v1125_v56 = vadd.f32 %v1124_v52, %v1123_v8  ;;  %v1132_v8 = vsel %vm674_vm2, %v1048_v18, 0.0  ;;  %v1054_v18 = vmul.f32 %v3428_v37, %v3428_v37 }
 0x35d   :  { %v1127_v16 = vadd.f32 %v1126_v63, %v1125_v56  ;;  %v1134_v56 = vsel %vm674_vm2, %v1049_v27, 0.0  ;;  %v1055_v27 = vmul.f32 %v3432_v45, %v3432_v45 }
 0x35f   :  { %v1129_v3 = vadd.f32 %v1128_v54, %v1127_v16  ;;  %v1136_v16 = vsel %vm674_vm2, %v1050_v55, 0.0  ;;  %v1056_v55 = vmul.f32 %v3436_v61, %v3436_v61 }
 0x361   :  { %v1131_v21 = vadd.f32 %v1130_v11, %v1129_v3  ;;  %v1138_v3 = vsel %vm674_vm2, %v1051_v50, 0.0  ;;  %v1057_v50 = vmul.f32 %v3440_v4, %v3440_v4 }
 0x363   :  { %v1133_v52 = vadd.f32 %v1132_v8, %v1131_v21  ;;  %v1140_v21 = vsel %vm674_vm2, %v1052_v34, 0.0  ;;  %v1058_v34 = vmul.f32 %v3444_v60, %v3444_v60 }
 0x365   :  { %v1135_v63 = vadd.f32 %v1134_v56, %v1133_v52  ;;  %v1142_v52 = vsel %vm674_vm2, %v1053_v49, 0.0  ;;  %v1059_v49 = vmul.f32 %v3448_v0, %v3448_v0 }
 0x367   :  { %v1137_v54 = vadd.f32 %v1136_v16, %v1135_v63  ;;  %v1144_v63 = vsel %vm674_vm2, %v1054_v18, 0.0  ;;  %v1060_v18 = vmul.f32 %v3452_v15, %v3452_v15 }
 0x369   :  { %v1139_v11 = vadd.f32 %v1138_v3, %v1137_v54  ;;  %v1146_v54 = vsel %vm674_vm2, %v1055_v27, 0.0  ;;  %v1061_v27 = vmul.f32 %v3456_v22, %v3456_v22 }
 0x36b   :  { %v1141_v8 = vadd.f32 %v1140_v21, %v1139_v11  ;;  %v1148_v11 = vsel %vm674_vm2, %v1056_v55, 0.0  ;;  %v1062_v55 = vmul.f32 %v3460_v12, %v3460_v12 }
 0x36d   :  { %v1143_v56 = vadd.f32 %v1142_v52, %v1141_v8  ;;  %v1150_v8 = vsel %vm674_vm2, %v1057_v50, 0.0  ;;  %v1063_v50 = vmul.f32 %v3464_v20, %v3464_v20 }
 0x36f   :  { %v1145_v16 = vadd.f32 %v1144_v63, %v1143_v56  ;;  %v1152_v56 = vsel %vm674_vm2, %v1058_v34, 0.0  ;;  %v1064_v34 = vmul.f32 %v3468_v33, %v3468_v33 }
 0x371   :  { %v1147_v3 = vadd.f32 %v1146_v54, %v1145_v16  ;;  %v1154_v16 = vsel %vm674_vm2, %v1059_v49, 0.0  ;;  %v1065_v49 = vmul.f32 %v3472_v44, %v3472_v44 }
 0x373   :  { %v1149_v21 = vadd.f32 %v1148_v11, %v1147_v3  ;;  %v1156_v3 = vsel %vm674_vm2, %v1060_v18, 0.0  ;;  %v1066_v18 = vmul.f32 %v3476_v32, %v3476_v32 }
 0x375   :  { %v1151_v52 = vadd.f32 %v1150_v8, %v1149_v21  ;;  %v1158_v21 = vsel %vm674_vm2, %v1061_v27, 0.0  ;;  %v1067_v27 = vmul.f32 %v3480_v36, %v3480_v36 }
 0x377   :  { %v1153_v63 = vadd.f32 %v1152_v56, %v1151_v52  ;;  %v1160_v52 = vsel %vm674_vm2, %v1062_v55, 0.0  ;;  %v1068_v55 = vmul.f32 %v3484_v62, %v3484_v62 }
 0x379   :  { %v1155_v54 = vadd.f32 %v1154_v16, %v1153_v63  ;;  %v1162_v63 = vsel %vm674_vm2, %v1063_v50, 0.0  ;;  %v1069_v50 = vmul.f32 %v3488_v9, %v3488_v9 }
 0x37b   :  { %v1157_v11 = vadd.f32 %v1156_v3, %v1155_v54  ;;  %v1164_v54 = vsel %vm674_vm2, %v1064_v34, 0.0  ;;  %v1070_v34 = vmul.f32 %v3492_v58, %v3492_v58 }
 0x37d   :  { %v1159_v8 = vadd.f32 %v1158_v21, %v1157_v11  ;;  %v1166_v11 = vsel %vm674_vm2, %v1065_v49, 0.0  ;;  %v1071_v49 = vmul.f32 %v3496_v6, %v3496_v6 }
 0x37f   :  { %v1161_v56 = vadd.f32 %v1160_v52, %v1159_v8  ;;  %v1168_v8 = vsel %vm674_vm2, %v1066_v18, 0.0  ;;  %v1072_v18 = vmul.f32 %v3500_v24, %v3500_v24 }
 0x381   :  { %v1163_v16 = vadd.f32 %v1162_v63, %v1161_v56  ;;  %v1170_v56 = vsel %vm674_vm2, %v1067_v27, 0.0  ;;  %v1073_v27 = vmul.f32 %v3504_v35, %v3504_v35 }
 0x383   :  { %v1165_v3 = vadd.f32 %v1164_v54, %v1163_v16  ;;  %v1172_v16 = vsel %vm674_vm2, %v1068_v55, 0.0  ;;  %v1074_v55 = vmul.f32 %v3508_v23, %v3508_v23 }
 0x385   :  { %v1167_v21 = vadd.f32 %v1166_v11, %v1165_v3  ;;  %v1174_v3 = vsel %vm674_vm2, %v1069_v50, 0.0  ;;  %v1075_v50 = vmul.f32 %v3512_v30, %v3512_v30 }
 0x387   :  { %v1169_v52 = vadd.f32 %v1168_v8, %v1167_v21  ;;  %v1176_v21 = vsel %vm674_vm2, %v1070_v34, 0.0  ;;  %v4336_v34 = vld [vmem:[#allocation7_spill] sm:$0xff] }
 0x389   :  { %v1171_v63 = vadd.f32 %v1170_v56, %v1169_v52  ;;  %v1178_v52 = vsel %vm674_vm2, %v1071_v49, 0.0  ;;  %v4337_v49 = vld [vmem:[#allocation4_spill] sm:$0xff] }
 0x38b   :  { %v1173_v54 = vadd.f32 %v1172_v16, %v1171_v63  ;;  %v1180_v63 = vsel %vm674_vm2, %v1072_v18, 0.0  ;;  %v4338_v18 = vld [vmem:[#allocation6_spill] sm:$0xff] }
 0x38d   :  { %v1175_v11 = vadd.f32 %v1174_v3, %v1173_v54  ;;  %v1182_v54 = vsel %vm674_vm2, %v1073_v27, 0.0  ;;  %v4339_v27 = vld [vmem:[#allocation9_spill] sm:$0xff] }
 0x38f   :  { %v1177_v8 = vadd.f32 %v1176_v21, %v1175_v11  ;;  %v1076_v11 = vmul.f32 %v4336_v34, %v4336_v34  ;;  %v1184_v21 = vsel %vm674_vm2, %v1074_v55, 0.0  ;;  %v4340_v55 = vld [vmem:[#allocation11_spill] sm:$0xff] }
 0x391   :  { %v1179_v56 = vadd.f32 %v1178_v52, %v1177_v8  ;;  %v1077_v8 = vmul.f32 %v4337_v49, %v4337_v49  ;;  %v1186_v52 = vsel %vm674_vm2, %v1075_v50, 0.0  ;;  %v4341_v50 = vld [vmem:[#allocation8_spill] sm:$0xff] }
 0x393   :  { %v1181_v16 = vadd.f32 %v1180_v63, %v1179_v56  ;;  %v1078_v56 = vmul.f32 %v4338_v18, %v4338_v18  ;;  %v1188_v63 = vsel %vm674_vm2, %v1076_v11, 0.0 }
 0x395   :  { %v1183_v3 = vadd.f32 %v1182_v54, %v1181_v16  ;;  %v1079_v16 = vmul.f32 %v4339_v27, %v4339_v27  ;;  %v1190_v54 = vsel %vm674_vm2, %v1077_v8, 0.0 }
 0x397   :  { %v1185_v35 = vadd.f32 %v1184_v21, %v1183_v3  ;;  %v1080_v3 = vmul.f32 %v4340_v55, %v4340_v55  ;;  %v1192_v21 = vsel %vm674_vm2, %v1078_v56, 0.0 }
 0x399   :  { %v1187_v23 = vadd.f32 %v1186_v52, %v1185_v35  ;;  %v1081_v35 = vmul.f32 %v4341_v50, %v4341_v50  ;;  %v1194_v52 = vsel %vm674_vm2, %v1079_v16, 0.0  ;;  %v1196_v11 = vsel %vm674_vm2, %v1080_v3, 0.0  ;;  %v4342_v3 = vld [vmem:[#allocation14_spill] sm:$0xff] }
 0x39b   :  { %v1189_v30 = vadd.f32 %v1188_v63, %v1187_v23  ;;  %v1082_v23 = vmul.f32 %v3540_v51, %v3540_v51  ;;  %v1198_v8 = vsel %vm674_vm2, %v1081_v35, 0.0  ;;  %v4343_v35 = vld [vmem:[#allocation16_spill] sm:$0xff] }
 0x39d   :  { %v1191_v34 = vadd.f32 %v1190_v54, %v1189_v30  ;;  %v1083_v30 = vmul.f32 %v3544_v46, %v3544_v46  ;;  %v1200_v56 = vsel %vm674_vm2, %v1082_v23, 0.0  ;;  %v4344_v23 = vld [vmem:[#allocation23_spill] sm:$0xff] }
 0x39f   :  { %v1193_v49 = vadd.f32 %v1192_v21, %v1191_v34  ;;  %v1084_v34 = vmul.f32 %v3548_v10, %v3548_v10  ;;  %v1202_v16 = vsel %vm674_vm2, %v1083_v30, 0.0  ;;  %v4345_v30 = vld [vmem:[#allocation24_spill] sm:$0xff] }
 0x3a1   :  { %v1195_v18 = vadd.f32 %v1194_v52, %v1193_v49  ;;  %v1085_v49 = vmul.f32 %v3552_v28, %v3552_v28 }
 0x3a3   :  { %v1197_v63 = vadd.f32 %v1196_v11, %v1195_v18  ;;  %v1086_v18 = vmul.f32 %v4342_v3, %v4342_v3  ;;  %v1204_v11 = vsel %vm674_vm2, %v1084_v34, 0.0  ;;  %v4346_v34 = vld [vmem:[#allocation25_spill] sm:$0xff] }
 0x3a5   :  { %v1199_v54 = vadd.f32 %v1198_v8, %v1197_v63  ;;  %v1087_v63 = vmul.f32 %v4343_v35, %v4343_v35  ;;  %v1206_v8 = vsel %vm674_vm2, %v1085_v49, 0.0 }
 0x3a7   :  { %v1201_v21 = vadd.f32 %v1200_v56, %v1199_v54  ;;  %v1088_v54 = vmul.f32 %v4344_v23, %v4344_v23  ;;  %v1208_v56 = vsel %vm674_vm2, %v1086_v18, 0.0 }
 0x3a9   :  { %v1203_v52 = vadd.f32 %v1202_v16, %v1201_v21  ;;  %v1089_v21 = vmul.f32 %v4345_v30, %v4345_v30  ;;  %v1210_v16 = vsel %vm674_vm2, %v1087_v63, 0.0  ;;  %v4348_v63 = vmov 0.0  }
 0x3ab   :  { %v1205_v46 = vadd.f32 %v1204_v11, %v1203_v52  ;;  %v1090_v52 = vmul.f32 %v4346_v34, %v4346_v34  ;;  %v1212_v11 = vsel %vm674_vm2, %v1088_v54, 0.0 }
 0x3ad   :  { %v1207_v10 = vadd.f32 %v1206_v8, %v1205_v46  ;;  %v1214_v46 = vsel %vm674_vm2, %v1089_v21, 0.0  ;;  %v1216_v8 = vsel %vm674_vm2, %v1090_v52, 0.0 }
 0x3af   :  { %v1209_v28 = vadd.f32 %v1208_v56, %v1207_v10 }
 0x3b1   :  { %v1211_v3 = vadd.f32 %v1210_v16, %v1209_v28  ;;  %v4347_v28 = vld [vmem:[#allocation17_spill] sm:$0xff] }
 0x3b3   :  { %v1213_v35 = vadd.f32 %v1212_v11, %v1211_v3  ;;  %v4349_v11 = vld [vmem:[#allocation18_spill] sm:$0xff] }
 0x3b5   :  { %v1215_v49 = vadd.f32 %v1214_v46, %v1213_v35  ;;  %v4350_v46 = vsub.s32 0, %v4349_v11 }
 0x3b7   :  { %v1217_v23 = vadd.f32 %v1216_v8, %v1215_v49  ;;  %v4351_v8 = vld [vmem:[#allocation19_spill] sm:$0xff] }
 0x3b9   :  { %v1218_v18 = vrot.slane %v1217_v23, 4 }
 0x3bb   :  { %v1219_v10 = vadd.f32 %v1218_v18, %v1217_v23 }
 0x3bd   :  { %v1220_v56 = vrot.slane %v1219_v10, 2 }
 0x3bf   :  { %v1221_v51 = vadd.f32 %v1220_v56, %v1219_v10  ;;  %v4352_v10 = vld [vmem:[#allocation20_spill] sm:$0xff] }
 0x3c1   :  { %v1222_v30 = vrot.slane %v1221_v51, 1 }
 0x3c3   :  { %v1223_v50 = vadd.f32 %v1222_v30, %v1221_v51  ;;  %v1505_v51 = vld [vmem:[%s4234_s4] sm:$0xff] }
 0x3c5   :  { %2560 = vmatmul.mubr.msk.f32.vlgmr.msra.gmra.mrb[4].mxu1 %vm674_vm2, %v1223_v50  ;;  %v1506_v50 = vld [vmem:[%s4234_s4 + $0x8] sm:$0xff] }
 0x3c6   :  { %2563 = vmatpush3.msk.msra.mxu1 %vm378_vm1, %v4347_v28  ;;  %2564 = vmatprep.mubr.msk.f32.mxu1 %vm2849_vm3, %v4348_v63  ;;  %v2673_v23 = vpack.c.bf16 %v1506_v50, %v1505_v51  ;;  %v4353_v28 = vld [vmem:[#allocation21_spill] sm:$0xff] }
 0x3c8   :  { %2674 = vmatprep.subr.bf16.mxu1 %v2673_v23 }
 0x498   :  { %v1293_v3 = vpop.f32.mrb[4].mxu1 }
 0x499   :  { %v1297_v54 = vmul.f32 0.00048828125, %v1293_v3  ;;  %v2561_v35 = vpop.f32.mrb[5].mxu1 }
 0x49a   :  { %v4354_v35 = vld [vmem:[#allocation22_spill] sm:$0xff] }
 0x49b   :  { %v1298_v21 = vadd.f32 1e-05, %v1297_v54 }
 0x49d   :  { %2718 = vrsqrt.f32 %v1298_v21 }
 0x4a7   :  { %v2719_v16 = vpop.eup %2718 }
 0x4a8   :  { %2565 = vmatmul.mubr.msk.f32.vlgmr.msra.gmra.mrb[6].mxu1 %vm882_vm4, %v2719_v16 }
 0x4a9   :  { %2676 = vmatpush3.bf16.msra.mxu1 %v2673_v23 }
 0x57b   :  { %v1369_v30 = vpop.f32.mrb[6].mxu1 }
 0x57c   :  { %v2566_v52 = vpop.f32.mrb[7].mxu1  ;;  %v3780_v49 = vrot.slane %v1369_v30, %v4350_v46 }
 0x57e   :  { %v1377_v18 = vmul.f32 %v3780_v49, %v4351_v8  ;;  %v1378_v56 = vmul.f32 %v3780_v49, %v4352_v10  ;;  %v1379_v63 = vmul.f32 %v3780_v49, %v4353_v28  ;;  %v1380_v21 = vmul.f32 %v3780_v49, %v4354_v35 }
 0x57f   :  { %v1381_v16 = vmul.f32 %v3780_v49, %v3336_v43  ;;  %v1382_v50 = vmul.f32 %v3780_v49, %v3340_v39  ;;  %v1383_v30 = vmul.f32 %v3780_v49, %v3344_v41  ;;  %v1384_v43 = vmul.f32 %v3780_v49, %v3348_v38 }
 0x580   :  { %v1441_v3 = vmax.f32 %v1377_v18, 0.0  ;;  %v1442_v54 = vmax.f32 %v1378_v56, 0.0  ;;  %v1443_v51 = vmax.f32 %v1379_v63, 0.0  ;;  %v1444_v23 = vmax.f32 %v1380_v21, 0.0 }
 0x581   :  { %v1445_v52 = vmax.f32 %v1381_v16, 0.0  ;;  %v1446_v11 = vmax.f32 %v1382_v50, 0.0  ;;  %v1385_v46 = vmul.f32 %v3780_v49, %v3352_v40  ;;  %v1447_v8 = vmax.f32 %v1383_v30, 0.0 }
 0x582   :  { %2571 = vmatprep.mubr.msk.f32.mxu1 %vm674_vm2, %v1441_v3  ;;  %v1386_v39 = vmul.f32 %v3780_v49, %v3356_v53  ;;  %v1448_v41 = vmax.f32 %v1384_v43, 0.0  ;;  %v1387_v18 = vmul.f32 %v3780_v49, %v3360_v59  ;;  %v1388_v38 = vmul.f32 %v3780_v49, %v3364_v48 }
 0x583   :  { %2572 = vmatmul.mubr.msk.f32.vlgmr.msra.gmra.mrb[8].mxu1 %vm674_vm2, %v1442_v54  ;;  %v1449_v10 = vmax.f32 %v1385_v46, 0.0  ;;  %v1389_v56 = vmul.f32 %v3780_v49, %v3368_v57  ;;  %v1390_v53 = vmul.f32 %v3780_v49, %v3372_v2  ;;  %v1391_v63 = vmul.f32 %v3780_v49, %v3376_v7 }
 0x584   :  { %2574 = vmatprep.mubr.msk.f32.mxu1 %vm674_vm2, %v1443_v51  ;;  %v1450_v40 = vmax.f32 %v1386_v39, 0.0  ;;  %v1451_v28 = vmax.f32 %v1387_v18, 0.0  ;;  %v1452_v59 = vmax.f32 %v1388_v38, 0.0  ;;  %v1392_v48 = vmul.f32 %v3780_v49, %v3380_v1 }
 0x585   :  { %v1453_v3 = vmax.f32 %v1389_v56, 0.0  ;;  %v1454_v57 = vmax.f32 %v1390_v53, 0.0  ;;  %v1393_v54 = vmul.f32 %v3780_v49, %v3384_v5  ;;  %v1455_v35 = vmax.f32 %v1391_v63, 0.0 }
 0x586   :  { %v1394_v2 = vmul.f32 %v3780_v49, %v3388_v14  ;;  %v1456_v7 = vmax.f32 %v1392_v48, 0.0  ;;  %v1395_v21 = vmul.f32 %v3780_v49, %v3392_v19  ;;  %v1396_v1 = vmul.f32 %v3780_v49, %v3396_v13 }
 0x587   :  { %2575 = vmatmul.mubr.msk.f32.gmra.mrb[10].mxu1 %vm674_vm2, %v1444_v23  ;;  %v1457_v16 = vmax.f32 %v1393_v54, 0.0  ;;  %v1397_v51 = vmul.f32 %v3780_v49, %v3400_v17  ;;  %v1398_v14 = vmul.f32 %v3780_v49, %v3404_v26  ;;  %v1399_v23 = vmul.f32 %v3780_v49, %v3408_v31 }
 0x588   :  { %2577 = vmatprep.mubr.msk.f32.mxu1 %vm674_vm2, %v1445_v52  ;;  %v1458_v5 = vmax.f32 %v1394_v2, 0.0  ;;  %v1459_v50 = vmax.f32 %v1395_v21, 0.0  ;;  %v1460_v19 = vmax.f32 %v1396_v1, 0.0  ;;  %v1400_v13 = vmul.f32 %v3780_v49, %v3412_v25 }
 0x589   :  { %v1461_v30 = vmax.f32 %v1397_v51, 0.0  ;;  %v1462_v17 = vmax.f32 %v1398_v14, 0.0  ;;  %v1401_v52 = vmul.f32 %v3780_v49, %v3416_v29  ;;  %v1463_v43 = vmax.f32 %v1399_v23, 0.0  ;;  %v4359_v23 = vld [vmem:[#allocation4_spill] sm:$0xff] }
 0x58a   :  { %v1402_v26 = vmul.f32 %v3780_v49, %v3420_v42  ;;  %v1464_v31 = vmax.f32 %v1400_v13, 0.0  ;;  %v1404_v25 = vmul.f32 %v3780_v49, %v3428_v37  ;;  %v1406_v42 = vmul.f32 %v3780_v49, %v3436_v61 }
 0x58b   :  { %2578 = vmatmul.mubr.msk.f32.gmra.mrb[12].mxu1 %vm674_vm2, %v1446_v11  ;;  %v1403_v11 = vmul.f32 %v3780_v49, %v3424_v47  ;;  %v1465_v46 = vmax.f32 %v1401_v52, 0.0  ;;  %v1408_v37 = vmul.f32 %v3780_v49, %v3444_v60  ;;  %v1410_v61 = vmul.f32 %v3780_v49, %v3452_v15 }
 0x58c   :  { %2580 = vmatprep.mubr.msk.f32.mxu1 %vm674_vm2, %v1447_v8  ;;  %v1466_v29 = vmax.f32 %v1402_v26, 0.0  ;;  %v1405_v8 = vmul.f32 %v3780_v49, %v3432_v45  ;;  %v1468_v47 = vmax.f32 %v1404_v25, 0.0  ;;  %v1470_v45 = vmax.f32 %v1406_v42, 0.0  ;;  %v4361_v25 = vld [vmem:[#allocation8_spill] sm:$0xff] }
 0x58d   :  { %v1467_v39 = vmax.f32 %v1403_v11, 0.0  ;;  %v1412_v60 = vmul.f32 %v3780_v49, %v3460_v12  ;;  %v1414_v15 = vmul.f32 %v3780_v49, %v3468_v33  ;;  %v1416_v12 = vmul.f32 %v3780_v49, %v3476_v32 }
 0x58e   :  { %v1469_v18 = vmax.f32 %v1405_v8, 0.0  ;;  %v1418_v33 = vmul.f32 %v3780_v49, %v3484_v62  ;;  %v1420_v32 = vmul.f32 %v3780_v49, %v3492_v58  ;;  %v1422_v62 = vmul.f32 %v3780_v49, %v3500_v24  ;;  %v4356_v58 = vld [vmem:[#allocation3_spill] sm:$0xff] }
 0x58f   :  { %2581 = vmatmul.mubr.msk.f32.gmra.mrb[14].mxu1 %vm674_vm2, %v1448_v41  ;;  %v1407_v41 = vmul.f32 %v3780_v49, %v3440_v4  ;;  %v1472_v4 = vmax.f32 %v1408_v37, 0.0  ;;  %v4358_v24 = vld [vmem:[#allocation7_spill] sm:$0xff]  ;;  %v1429_v26 = vmul.f32 %v3780_v49, %v4339_v27  ;;  %v1430_v11 = vmul.f32 %v3780_v49, %v4340_v55 }
 0x590   :  { %2583 = vmatprep.mubr.msk.f32.mxu1 %vm674_vm2, %v1449_v10  ;;  %v1409_v10 = vmul.f32 %v3780_v49, %v3448_v0  ;;  %v1474_v0 = vmax.f32 %v1410_v61, 0.0  ;;  %v1486_v1 = vmax.f32 %v1422_v62, 0.0  ;;  %v1426_v14 = vmul.f32 %v3780_v49, %v4358_v24  ;;  %v4364_v55 = vld [vmem:[#allocation15_spill] sm:$0xff] }
 0x591   :  { %v1471_v38 = vmax.f32 %v1407_v41, 0.0  ;;  %v1493_v8 = vmax.f32 %v1429_v26, 0.0  ;;  %v1494_v42 = vmax.f32 %v1430_v11, 0.0  ;;  %v1434_v37 = vmul.f32 %v3780_v49, %v4364_v55 }
 0x592   :  { %v1473_v56 = vmax.f32 %v1409_v10, 0.0  ;;  %v4365_v10 = vld [vmem:[#allocation12_spill] sm:$0xff] }
 0x593   :  { %2584 = vmatmul.mubr.msk.f32.gmra.mrb[16].mxu1 %vm674_vm2, %v1450_v40  ;;  %v1411_v40 = vmul.f32 %v3780_v49, %v3456_v22  ;;  %v1476_v22 = vmax.f32 %v1412_v60, 0.0  ;;  %v4367_v60 = vld [vmem:[#allocation16_spill] sm:$0xff] }
 0x594   :  { %2586 = vmatprep.mubr.msk.f32.mxu1 %vm674_vm2, %v1451_v28  ;;  %v1413_v28 = vmul.f32 %v3780_v49, %v3464_v20  ;;  %v1478_v20 = vmax.f32 %v1414_v15, 0.0 }
 0x595   :  { %v1475_v53 = vmax.f32 %v1411_v40, 0.0 }
 0x596   :  { %v1477_v63 = vmax.f32 %v1413_v28, 0.0 }
 0x597   :  { %2587 = vmatmul.mubr.msk.f32.gmra.mrb[18].mxu1 %vm674_vm2, %v1452_v59  ;;  %v1415_v59 = vmul.f32 %v3780_v49, %v3472_v44  ;;  %v1480_v44 = vmax.f32 %v1416_v12, 0.0 }
 0x598   :  { %2589 = vmatprep.mubr.msk.f32.mxu1 %vm674_vm2, %v1453_v3  ;;  %v1417_v3 = vmul.f32 %v3780_v49, %v3480_v36  ;;  %v1482_v36 = vmax.f32 %v1418_v33, 0.0 }
 0x599   :  { %v1479_v48 = vmax.f32 %v1415_v59, 0.0  ;;  %v4369_v59 = vld [vmem:[#allocation24_spill] sm:$0xff] }
 0x59a   :  { %v1481_v54 = vmax.f32 %v1417_v3, 0.0 }
 0x59b   :  { %2590 = vmatmul.mubr.msk.f32.gmra.mrb[20].mxu1 %vm674_vm2, %v1454_v57  ;;  %v1419_v57 = vmul.f32 %v3780_v49, %v3488_v9  ;;  %v1484_v9 = vmax.f32 %v1420_v32, 0.0 }
 0x59c   :  { %2592 = vmatprep.mubr.msk.f32.mxu1 %vm674_vm2, %v1455_v35  ;;  %v1421_v35 = vmul.f32 %v3780_v49, %v3496_v6  ;;  %v1424_v6 = vmul.f32 %v3780_v49, %v4356_v58 }
 0x59d   :  { %v1483_v2 = vmax.f32 %v1419_v57, 0.0 }
 0x59f   :  { %2593 = vmatmul.mubr.msk.f32.gmra.mrb[22].mxu1 %vm674_vm2, %v1456_v7  ;;  %v4355_v7 = vld [vmem:[#allocation2_spill] sm:$0xff] }
 0x5a0   :  { %2595 = vmatprep.mubr.msk.f32.mxu1 %vm674_vm2, %v1457_v16  ;;  %v1423_v21 = vmul.f32 %v3780_v49, %v4355_v7  ;;  %v1485_v16 = vmax.f32 %v1421_v35, 0.0 }
 0x5a3   :  { %2596 = vmatmul.mubr.msk.f32.gmra.mrb[24].mxu1 %vm674_vm2, %v1458_v5  ;;  %v4357_v5 = vld [vmem:[#allocation5_spill] sm:$0xff] }
 0x5a4   :  { %2598 = vmatprep.mubr.msk.f32.mxu1 %vm674_vm2, %v1459_v50  ;;  %v1425_v51 = vmul.f32 %v3780_v49, %v4357_v5  ;;  %v1487_v50 = vmax.f32 %v1423_v21, 0.0 }
 0x5a6   :  { %v1489_v13 = vmax.f32 %v1425_v51, 0.0 }
 0x5a7   :  { %2599 = vmatmul.mubr.msk.f32.gmra.mrb[26].mxu1 %vm674_vm2, %v1460_v19  ;;  %v1488_v19 = vmax.f32 %v1424_v6, 0.0 }
 0x5a8   :  { %2601 = vmatprep.mubr.msk.f32.mxu1 %vm674_vm2, %v1461_v30  ;;  %v1427_v30 = vmul.f32 %v3780_v49, %v4359_v23 }
 0x5ab   :  { %2602 = vmatmul.mubr.msk.f32.gmra.mrb[28].mxu1 %vm674_vm2, %v1462_v17  ;;  %v4360_v17 = vld [vmem:[#allocation6_spill] sm:$0xff] }
 0x5ac   :  { %2604 = vmatprep.mubr.msk.f32.mxu1 %vm674_vm2, %v1463_v43  ;;  %v1428_v52 = vmul.f32 %v3780_v49, %v4360_v17  ;;  %v1490_v43 = vmax.f32 %v1426_v14, 0.0 }
 0x5af   :  { %2605 = vmatmul.mubr.msk.f32.gmra.mrb[30].mxu1 %vm674_vm2, %v1464_v31  ;;  %v1491_v31 = vmax.f32 %v1427_v30, 0.0 }
 0x5b0   :  { %2607 = vmatprep.mubr.msk.f32.mxu1 %vm674_vm2, %v1465_v46  ;;  %v1492_v46 = vmax.f32 %v1428_v52, 0.0 }
 0x5b3   :  { %2608 = vmatmul.mubr.msk.f32.gmra.mrb[32].mxu1 %vm674_vm2, %v1466_v29  ;;  %v1431_v29 = vmul.f32 %v3780_v49, %v4361_v25 }
 0x5b4   :  { %2610 = vmatprep.mubr.msk.f32.mxu1 %vm674_vm2, %v1467_v39  ;;  %v4362_v39 = vld [vmem:[#allocation10_spill] sm:$0xff] }
 0x5b5   :  { %v1432_v27 = vmul.f32 %v3780_v49, %v4362_v39 }
 0x5b7   :  { %2611 = vmatmul.mubr.msk.f32.gmra.mrb[34].mxu1 %vm674_vm2, %v1468_v47  ;;  %v4363_v47 = vld [vmem:[#allocation13_spill] sm:$0xff] }
 0x5b8   :  { %2613 = vmatprep.mubr.msk.f32.mxu1 %vm674_vm2, %v1469_v18  ;;  %v1433_v41 = vmul.f32 %v3780_v49, %v4363_v47  ;;  %v1495_v18 = vmax.f32 %v1431_v29, 0.0 }
 0x5ba   :  { %v1497_v61 = vmax.f32 %v1433_v41, 0.0 }
 0x5bb   :  { %2614 = vmatmul.mubr.msk.f32.gmra.mrb[36].mxu1 %vm674_vm2, %v1470_v45  ;;  %v1496_v45 = vmax.f32 %v1432_v27, 0.0 }
 0x5bc   :  { %2616 = vmatprep.mubr.msk.f32.mxu1 %vm674_vm2, %v1471_v38  ;;  %v1435_v38 = vmul.f32 %v3780_v49, %v4365_v10 }
 0x5be   :  { %v1499_v28 = vmax.f32 %v1435_v38, 0.0 }
 0x5bf   :  { %2617 = vmatmul.mubr.msk.f32.gmra.mrb[38].mxu1 %vm674_vm2, %v1472_v4  ;;  %v4366_v4 = vld [vmem:[#allocation14_spill] sm:$0xff] }
 0x5c0   :  { %2619 = vmatprep.mubr.msk.f32.mxu1 %vm674_vm2, %v1473_v56  ;;  %v1436_v40 = vmul.f32 %v3780_v49, %v4366_v4  ;;  %v1498_v56 = vmax.f32 %v1434_v37, 0.0 }
 0x5c3   :  { %2620 = vmatmul.mubr.msk.f32.gmra.mrb[40].mxu1 %vm674_vm2, %v1474_v0  ;;  %v1437_v0 = vmul.f32 %v3780_v49, %v4367_v60 }
 0x5c4   :  { %2622 = vmatprep.mubr.msk.f32.mxu1 %vm674_vm2, %v1475_v53  ;;  %v4368_v53 = vld [vmem:[#allocation23_spill] sm:$0xff] }
 0x5c5   :  { %v1438_v15 = vmul.f32 %v3780_v49, %v4368_v53  ;;  %v1501_v12 = vmax.f32 %v1437_v0, 0.0 }
 0x5c7   :  { %2623 = vmatmul.mubr.msk.f32.gmra.mrb[42].mxu1 %vm674_vm2, %v1476_v22  ;;  %v1500_v22 = vmax.f32 %v1436_v40, 0.0  ;;  %v1502_v3 = vmax.f32 %v1438_v15, 0.0 }
 0x5c8   :  { %2625 = vmatprep.mubr.msk.f32.mxu1 %vm674_vm2, %v1477_v63  ;;  %v1439_v63 = vmul.f32 %v3780_v49, %v4369_v59 }
 0x5cb   :  { %2626 = vmatmul.mubr.msk.f32.gmra.mrb[44].mxu1 %vm674_vm2, %v1478_v20  ;;  %v1440_v20 = vmul.f32 %v3780_v49, %v4346_v34 }
 0x5cc   :  { %2628 = vmatprep.mubr.msk.f32.mxu1 %vm674_vm2, %v1479_v48  ;;  %v1503_v48 = vmax.f32 %v1439_v63, 0.0 }
 0x5cd   :  { %v1504_v33 = vmax.f32 %v1440_v20, 0.0 }
 0x5cf   :  { %2629 = vmatmul.mubr.msk.f32.gmra.mrb[46].mxu1 %vm674_vm2, %v1480_v44 }
 0x5d0   :  { %2631 = vmatprep.mubr.msk.f32.mxu1 %vm674_vm2, %v1481_v54 }
 0x5d3   :  { %2632 = vmatmul.mubr.msk.f32.gmra.mrb[48].mxu1 %vm674_vm2, %v1482_v36 }
 0x5d4   :  { %2634 = vmatprep.mubr.msk.f32.mxu1 %vm674_vm2, %v1483_v2 }
 0x5d7   :  { %2635 = vmatmul.mubr.msk.f32.gmra.mrb[50].mxu1 %vm674_vm2, %v1484_v9 }
 0x5d8   :  { %2637 = vmatprep.mubr.msk.f32.mxu1 %vm674_vm2, %v1485_v16 }
 0x5db   :  { %2638 = vmatmul.mubr.msk.f32.gmra.mrb[52].mxu1 %vm674_vm2, %v1486_v1 }
 0x5dc   :  { %2640 = vmatprep.mubr.msk.f32.mxu1 %vm674_vm2, %v1487_v50 }
 0x5df   :  { %2641 = vmatmul.mubr.msk.f32.gmra.mrb[54].mxu1 %vm674_vm2, %v1488_v19 }
 0x5e0   :  { %2643 = vmatprep.mubr.msk.f32.mxu1 %vm674_vm2, %v1489_v13 }
 0x5e3   :  { %2644 = vmatmul.mubr.msk.f32.gmra.mrb[56].mxu1 %vm674_vm2, %v1490_v43 }
 0x5e4   :  { %2646 = vmatprep.mubr.msk.f32.mxu1 %vm674_vm2, %v1491_v31 }
 0x5e7   :  { %2647 = vmatmul.mubr.msk.f32.gmra.mrb[58].mxu1 %vm674_vm2, %v1492_v46 }
 0x5e8   :  { %2649 = vmatprep.mubr.msk.f32.mxu1 %vm674_vm2, %v1493_v8 }
 0x5eb   :  { %2650 = vmatmul.mubr.msk.f32.gmra.mrb[60].mxu1 %vm674_vm2, %v1494_v42 }
 0x5ec   :  { %2652 = vmatprep.mubr.msk.f32.mxu1 %vm674_vm2, %v1495_v18 }
 0x5ef   :  { %2653 = vmatmul.mubr.msk.f32.gmra.mrb[62].mxu1 %vm674_vm2, %v1496_v45 }
 0x5f0   :  { %2655 = vmatprep.mubr.msk.f32.mxu1 %vm674_vm2, %v1497_v61 }
 0x5f3   :  { %2656 = vmatmul.mubr.msk.f32.gmra.mrb[64].mxu1 %vm674_vm2, %v1498_v56 }
 0x5f4   :  { %2658 = vmatprep.mubr.msk.f32.mxu1 %vm674_vm2, %v1499_v28 }
 0x5f7   :  { %2659 = vmatmul.mubr.msk.f32.gmra.mrb[66].mxu1 %vm674_vm2, %v1500_v22 }
 0x5f8   :  { %2661 = vmatprep.mubr.msk.f32.mxu1 %vm674_vm2, %v1501_v12 }
 0x5fb   :  { %2662 = vmatmul.mubr.msk.f32.gmra.mrb[68].mxu1 %vm674_vm2, %v1502_v3 }
 0x5fc   :  { %2664 = vmatprep.mubr.msk.f32.mxu1 %vm674_vm2, %v1503_v48 }
 0x5ff   :  { %2665 = vmatmul.mubr.msk.f32.gmra.mrb[70].mxu1 %vm674_vm2, %v1504_v33 }
 0x656   :  { %v2573_v44 = vpop.f32.mrb[8].mxu1 }
 0x657   :  { %2720 = vtanh.f32 %v2573_v44  ;;  %v1765_v57 = vpop.f32.mrb[9].mxu1 }
 0x658   :  { %2722 = vtanh.f32 %v1765_v57 }
 0x65a   :  { %v2576_v54 = vpop.f32.mrb[10].mxu1 }
 0x65b   :  { %2724 = vtanh.f32 %v2576_v54  ;;  %v1775_v32 = vpop.f32.mrb[11].mxu1 }
 0x65c   :  { %2726 = vtanh.f32 %v1775_v32 }
 0x65e   :  { %v2579_v36 = vpop.f32.mrb[12].mxu1 }
 0x65f   :  { %2728 = vtanh.f32 %v2579_v36  ;;  %v1785_v34 = vpop.f32.mrb[13].mxu1 }
 0x660   :  { %2730 = vtanh.f32 %v1785_v34 }
 0x661   :  { %v2721_v49 = vpop.eup %2720 }
 0x662   :  { %v2723_v35 = vpop.eup %2722  ;;  %2150 = vst.msk [vmem:[%s4235_s5 + $0x8] sm:$0xff] %vm2148_vm5, %v2721_v49  ;;  %v2582_v2 = vpop.f32.mrb[14].mxu1 }
 0x663   :  { %2149 = vst.msk [vmem:[%s4235_s5] sm:$0xff] %vm2148_vm5, %v2723_v35  ;;  %2732 = vtanh.f32 %v2582_v2  ;;  %v1795_v62 = vpop.f32.mrb[15].mxu1 }
 0x664   :  { %2734 = vtanh.f32 %v1795_v62 }
 0x665   :  { %v2725_v9 = vpop.eup %2724 }
 0x666   :  { %v2727_v7 = vpop.eup %2726  ;;  %2152 = vst.msk [vmem:[%s4235_s5 + $0x18] sm:$0xff] %vm2148_vm5, %v2725_v9  ;;  %v2585_v21 = vpop.f32.mrb[16].mxu1 }
 0x667   :  { %2151 = vst.msk [vmem:[%s4235_s5 + $0x10] sm:$0xff] %vm2148_vm5, %v2727_v7  ;;  %2736 = vtanh.f32 %v2585_v21  ;;  %v1805_v16 = vpop.f32.mrb[17].mxu1 }
 0x668   :  { %2738 = vtanh.f32 %v1805_v16 }
 0x669   :  { %v2729_v58 = vpop.eup %2728 }
 0x66a   :  { %v2731_v6 = vpop.eup %2730  ;;  %2154 = vst.msk [vmem:[%s4235_s5 + $0x28] sm:$0xff] %vm2148_vm5, %v2729_v58  ;;  %v2588_v1 = vpop.f32.mrb[18].mxu1 }
 0x66b   :  { %2153 = vst.msk [vmem:[%s4235_s5 + $0x20] sm:$0xff] %vm2148_vm5, %v2731_v6  ;;  %2740 = vtanh.f32 %v2588_v1  ;;  %v1815_v5 = vpop.f32.mrb[19].mxu1 }
 0x66c   :  { %2742 = vtanh.f32 %v1815_v5 }
 0x66d   :  { %v2733_v51 = vpop.eup %2732 }
 0x66e   :  { %v2735_v50 = vpop.eup %2734  ;;  %2156 = vst.msk [vmem:[%s4235_s5 + $0x38] sm:$0xff] %vm2148_vm5, %v2733_v51  ;;  %v2591_v24 = vpop.f32.mrb[20].mxu1 }
 0x66f   :  { %2155 = vst.msk [vmem:[%s4235_s5 + $0x30] sm:$0xff] %vm2148_vm5, %v2735_v50  ;;  %2744 = vtanh.f32 %v2591_v24  ;;  %v1825_v14 = vpop.f32.mrb[21].mxu1 }
 0x670   :  { %2746 = vtanh.f32 %v1825_v14 }
 0x671   :  { %v2737_v19 = vpop.eup %2736 }
 0x672   :  { %v2739_v23 = vpop.eup %2738  ;;  %2158 = vst.msk [vmem:[%s4235_s5 + $0x48] sm:$0xff] %vm2148_vm5, %v2737_v19  ;;  %v2594_v30 = vpop.f32.mrb[22].mxu1 }
 0x673   :  { %2157 = vst.msk [vmem:[%s4235_s5 + $0x40] sm:$0xff] %vm2148_vm5, %v2739_v23  ;;  %2748 = vtanh.f32 %v2594_v30  ;;  %v1835_v13 = vpop.f32.mrb[23].mxu1 }
 0x674   :  { %2750 = vtanh.f32 %v1835_v13 }
 0x675   :  { %v2741_v17 = vpop.eup %2740 }
 0x676   :  { %v2743_v52 = vpop.eup %2742  ;;  %2160 = vst.msk [vmem:[%s4235_s5 + $0x58] sm:$0xff] %vm2148_vm5, %v2741_v17  ;;  %v2597_v43 = vpop.f32.mrb[24].mxu1 }
 0x677   :  { %2159 = vst.msk [vmem:[%s4235_s5 + $0x50] sm:$0xff] %vm2148_vm5, %v2743_v52  ;;  %2752 = vtanh.f32 %v2597_v43  ;;  %v1845_v26 = vpop.f32.mrb[25].mxu1 }
 0x678   :  { %2754 = vtanh.f32 %v1845_v26 }
 0x679   :  { %v2745_v31 = vpop.eup %2744 }
 0x67a   :  { %v2747_v11 = vpop.eup %2746  ;;  %2162 = vst.msk [vmem:[%s4235_s5 + $0x68] sm:$0xff] %vm2148_vm5, %v2745_v31  ;;  %v2600_v46 = vpop.f32.mrb[26].mxu1 }
 0x67b   :  { %2161 = vst.msk [vmem:[%s4235_s5 + $0x60] sm:$0xff] %vm2148_vm5, %v2747_v11  ;;  %2756 = vtanh.f32 %v2600_v46  ;;  %v1855_v25 = vpop.f32.mrb[27].mxu1 }
 0x67c   :  { %2758 = vtanh.f32 %v1855_v25 }
 0x67d   :  { %v2749_v29 = vpop.eup %2748 }
 0x67e   :  { %v2751_v8 = vpop.eup %2750  ;;  %2164 = vst.msk [vmem:[%s4235_s5 + $0x78] sm:$0xff] %vm2148_vm5, %v2749_v29  ;;  %v2603_v39 = vpop.f32.mrb[28].mxu1 }
 0x67f   :  { %2163 = vst.msk [vmem:[%s4235_s5 + $0x70] sm:$0xff] %vm2148_vm5, %v2751_v8  ;;  %2760 = vtanh.f32 %v2603_v39  ;;  %v1865_v27 = vpop.f32.mrb[29].mxu1 }
 0x680   :  { %2762 = vtanh.f32 %v1865_v27 }
 0x681   :  { %v2753_v42 = vpop.eup %2752 }
 0x682   :  { %v2755_v47 = vpop.eup %2754  ;;  %2166 = vst.msk [vmem:[%s4235_s5 + $0x88] sm:$0xff] %vm2148_vm5, %v2753_v42  ;;  %v2606_v41 = vpop.f32.mrb[30].mxu1 }
 0x683   :  { %2165 = vst.msk [vmem:[%s4235_s5 + $0x80] sm:$0xff] %vm2148_vm5, %v2755_v47  ;;  %2764 = vtanh.f32 %v2606_v41  ;;  %v1875_v18 = vpop.f32.mrb[31].mxu1 }
 0x684   :  { %2766 = vtanh.f32 %v1875_v18 }
 0x685   :  { %v2757_v55 = vpop.eup %2756 }
 0x686   :  { %v2759_v37 = vpop.eup %2758  ;;  %2168 = vst.msk [vmem:[%s4235_s5 + $0x98] sm:$0xff] %vm2148_vm5, %v2757_v55  ;;  %v2609_v45 = vpop.f32.mrb[32].mxu1 }
 0x687   :  { %2167 = vst.msk [vmem:[%s4235_s5 + $0x90] sm:$0xff] %vm2148_vm5, %v2759_v37  ;;  %2768 = vtanh.f32 %v2609_v45  ;;  %v1885_v10 = vpop.f32.mrb[33].mxu1 }
 0x688   :  { %2770 = vtanh.f32 %v1885_v10 }
 0x689   :  { %v2761_v38 = vpop.eup %2760 }
 0x68a   :  { %v2763_v61 = vpop.eup %2762  ;;  %2170 = vst.msk [vmem:[%s4235_s5 + $0xa8] sm:$0xff] %vm2148_vm5, %v2761_v38  ;;  %v2612_v4 = vpop.f32.mrb[34].mxu1 }
 0x68b   :  { %2169 = vst.msk [vmem:[%s4235_s5 + $0xa0] sm:$0xff] %vm2148_vm5, %v2763_v61  ;;  %2772 = vtanh.f32 %v2612_v4  ;;  %v1895_v40 = vpop.f32.mrb[35].mxu1 }
 0x68c   :  { %2774 = vtanh.f32 %v1895_v40 }
 0x68d   :  { %v2765_v56 = vpop.eup %2764 }
 0x68e   :  { %v2767_v60 = vpop.eup %2766  ;;  %2172 = vst.msk [vmem:[%s4235_s5 + $0xb8] sm:$0xff] %vm2148_vm5, %v2765_v56  ;;  %v2615_v0 = vpop.f32.mrb[36].mxu1 }
 0x68f   :  { %2171 = vst.msk [vmem:[%s4235_s5 + $0xb0] sm:$0xff] %vm2148_vm5, %v2767_v60  ;;  %2776 = vtanh.f32 %v2615_v0  ;;  %v1905_v28 = vpop.f32.mrb[37].mxu1 }
 0x690   :  { %2778 = vtanh.f32 %v1905_v28 }
 0x691   :  { %v2769_v53 = vpop.eup %2768 }
 0x692   :  { %v2771_v15 = vpop.eup %2770  ;;  %2174 = vst.msk [vmem:[%s4235_s5 + $0xc8] sm:$0xff] %vm2148_vm5, %v2769_v53  ;;  %v2618_v22 = vpop.f32.mrb[38].mxu1 }
 0x693   :  { %2173 = vst.msk [vmem:[%s4235_s5 + $0xc0] sm:$0xff] %vm2148_vm5, %v2771_v15  ;;  %2780 = vtanh.f32 %v2618_v22  ;;  %v1915_v59 = vpop.f32.mrb[39].mxu1 }
 0x694   :  { %2782 = vtanh.f32 %v1915_v59 }
 0x695   :  { %v2773_v63 = vpop.eup %2772 }
 0x696   :  { %v2775_v12 = vpop.eup %2774  ;;  %2176 = vst.msk [vmem:[%s4235_s5 + $0xd8] sm:$0xff] %vm2148_vm5, %v2773_v63  ;;  %v2621_v20 = vpop.f32.mrb[40].mxu1 }
 0x697   :  { %2175 = vst.msk [vmem:[%s4235_s5 + $0xd0] sm:$0xff] %vm2148_vm5, %v2775_v12  ;;  %2784 = vtanh.f32 %v2621_v20  ;;  %v1925_v3 = vpop.f32.mrb[41].mxu1 }
 0x698   :  { %2786 = vtanh.f32 %v1925_v3 }
 0x699   :  { %v2777_v48 = vpop.eup %2776 }
 0x69a   :  { %v2779_v33 = vpop.eup %2778  ;;  %2178 = vst.msk [vmem:[%s4235_s5 + $0xe8] sm:$0xff] %vm2148_vm5, %v2777_v48  ;;  %v2624_v44 = vpop.f32.mrb[42].mxu1 }
 0x69b   :  { %2177 = vst.msk [vmem:[%s4235_s5 + $0xe0] sm:$0xff] %vm2148_vm5, %v2779_v33  ;;  %2788 = vtanh.f32 %v2624_v44  ;;  %v1935_v57 = vpop.f32.mrb[43].mxu1 }
 0x69c   :  { %2790 = vtanh.f32 %v1935_v57 }
 0x69d   :  { %v2781_v54 = vpop.eup %2780 }
 0x69e   :  { %v2783_v32 = vpop.eup %2782  ;;  %2180 = vst.msk [vmem:[%s4235_s5 + $0xf8] sm:$0xff] %vm2148_vm5, %v2781_v54  ;;  %v2627_v36 = vpop.f32.mrb[44].mxu1 }
 0x69f   :  { %2179 = vst.msk [vmem:[%s4235_s5 + $0xf0] sm:$0xff] %vm2148_vm5, %v2783_v32  ;;  %2792 = vtanh.f32 %v2627_v36  ;;  %v1945_v34 = vpop.f32.mrb[45].mxu1 }
 0x6a0   :  { %2794 = vtanh.f32 %v1945_v34 }
 0x6a1   :  { %v2785_v49 = vpop.eup %2784 }
 0x6a2   :  { %v2787_v35 = vpop.eup %2786  ;;  %2182 = vst.msk [vmem:[%s4235_s5 + $0x108] sm:$0xff] %vm2148_vm5, %v2785_v49  ;;  %v2630_v2 = vpop.f32.mrb[46].mxu1 }
 0x6a3   :  { %2181 = vst.msk [vmem:[%s4235_s5 + $0x100] sm:$0xff] %vm2148_vm5, %v2787_v35  ;;  %2796 = vtanh.f32 %v2630_v2  ;;  %v1955_v62 = vpop.f32.mrb[47].mxu1 }
 0x6a4   :  { %2798 = vtanh.f32 %v1955_v62 }
 0x6a5   :  { %v2789_v9 = vpop.eup %2788 }
 0x6a6   :  { %v2791_v7 = vpop.eup %2790  ;;  %2184 = vst.msk [vmem:[%s4235_s5 + $0x118] sm:$0xff] %vm2148_vm5, %v2789_v9  ;;  %v2633_v21 = vpop.f32.mrb[48].mxu1 }
 0x6a7   :  { %2183 = vst.msk [vmem:[%s4235_s5 + $0x110] sm:$0xff] %vm2148_vm5, %v2791_v7  ;;  %2800 = vtanh.f32 %v2633_v21  ;;  %v1965_v16 = vpop.f32.mrb[49].mxu1 }
 0x6a8   :  { %2802 = vtanh.f32 %v1965_v16 }
 0x6a9   :  { %v2793_v58 = vpop.eup %2792 }
 0x6aa   :  { %v2795_v6 = vpop.eup %2794  ;;  %2186 = vst.msk [vmem:[%s4235_s5 + $0x128] sm:$0xff] %vm2148_vm5, %v2793_v58  ;;  %v2636_v1 = vpop.f32.mrb[50].mxu1 }
 0x6ab   :  { %2185 = vst.msk [vmem:[%s4235_s5 + $0x120] sm:$0xff] %vm2148_vm5, %v2795_v6  ;;  %2804 = vtanh.f32 %v2636_v1  ;;  %v1975_v5 = vpop.f32.mrb[51].mxu1 }
 0x6ac   :  { %2806 = vtanh.f32 %v1975_v5 }
 0x6ad   :  { %v2797_v51 = vpop.eup %2796 }
 0x6ae   :  { %v2799_v50 = vpop.eup %2798  ;;  %2188 = vst.msk [vmem:[%s4235_s5 + $0x138] sm:$0xff] %vm2148_vm5, %v2797_v51  ;;  %v2639_v24 = vpop.f32.mrb[52].mxu1 }
 0x6af   :  { %2187 = vst.msk [vmem:[%s4235_s5 + $0x130] sm:$0xff] %vm2148_vm5, %v2799_v50  ;;  %2808 = vtanh.f32 %v2639_v24  ;;  %v1985_v14 = vpop.f32.mrb[53].mxu1 }
 0x6b0   :  { %2810 = vtanh.f32 %v1985_v14 }
 0x6b1   :  { %v2801_v19 = vpop.eup %2800 }
 0x6b2   :  { %v2803_v23 = vpop.eup %2802  ;;  %2190 = vst.msk [vmem:[%s4235_s5 + $0x148] sm:$0xff] %vm2148_vm5, %v2801_v19  ;;  %v2642_v30 = vpop.f32.mrb[54].mxu1 }
 0x6b3   :  { %2189 = vst.msk [vmem:[%s4235_s5 + $0x140] sm:$0xff] %vm2148_vm5, %v2803_v23  ;;  %2812 = vtanh.f32 %v2642_v30  ;;  %v1995_v13 = vpop.f32.mrb[55].mxu1 }
 0x6b4   :  { %2814 = vtanh.f32 %v1995_v13 }
 0x6b5   :  { %v2805_v17 = vpop.eup %2804 }
 0x6b6   :  { %v2807_v52 = vpop.eup %2806  ;;  %2192 = vst.msk [vmem:[%s4235_s5 + $0x158] sm:$0xff] %vm2148_vm5, %v2805_v17  ;;  %v2645_v43 = vpop.f32.mrb[56].mxu1 }
 0x6b7   :  { %2191 = vst.msk [vmem:[%s4235_s5 + $0x150] sm:$0xff] %vm2148_vm5, %v2807_v52  ;;  %2816 = vtanh.f32 %v2645_v43  ;;  %v2005_v26 = vpop.f32.mrb[57].mxu1 }
 0x6b8   :  { %2818 = vtanh.f32 %v2005_v26 }
 0x6b9   :  { %v2809_v31 = vpop.eup %2808 }
 0x6ba   :  { %v2811_v11 = vpop.eup %2810  ;;  %2194 = vst.msk [vmem:[%s4235_s5 + $0x168] sm:$0xff] %vm2148_vm5, %v2809_v31  ;;  %v2648_v46 = vpop.f32.mrb[58].mxu1 }
 0x6bb   :  { %2193 = vst.msk [vmem:[%s4235_s5 + $0x160] sm:$0xff] %vm2148_vm5, %v2811_v11  ;;  %2820 = vtanh.f32 %v2648_v46  ;;  %v2015_v25 = vpop.f32.mrb[59].mxu1 }
 0x6bc   :  { %2822 = vtanh.f32 %v2015_v25 }
 0x6bd   :  { %v2813_v29 = vpop.eup %2812 }
 0x6be   :  { %v2815_v8 = vpop.eup %2814  ;;  %2196 = vst.msk [vmem:[%s4235_s5 + $0x178] sm:$0xff] %vm2148_vm5, %v2813_v29  ;;  %v2651_v39 = vpop.f32.mrb[60].mxu1 }
 0x6bf   :  { %2195 = vst.msk [vmem:[%s4235_s5 + $0x170] sm:$0xff] %vm2148_vm5, %v2815_v8  ;;  %2824 = vtanh.f32 %v2651_v39  ;;  %v2025_v27 = vpop.f32.mrb[61].mxu1 }
 0x6c0   :  { %2826 = vtanh.f32 %v2025_v27 }
 0x6c1   :  { %v2817_v42 = vpop.eup %2816 }
 0x6c2   :  { %v2819_v47 = vpop.eup %2818  ;;  %2198 = vst.msk [vmem:[%s4235_s5 + $0x188] sm:$0xff] %vm2148_vm5, %v2817_v42  ;;  %v2654_v41 = vpop.f32.mrb[62].mxu1 }
 0x6c3   :  { %2197 = vst.msk [vmem:[%s4235_s5 + $0x180] sm:$0xff] %vm2148_vm5, %v2819_v47  ;;  %2828 = vtanh.f32 %v2654_v41  ;;  %v2035_v18 = vpop.f32.mrb[63].mxu1 }
 0x6c4   :  { %2830 = vtanh.f32 %v2035_v18 }
 0x6c5   :  { %v2821_v55 = vpop.eup %2820 }
 0x6c6   :  { %v2823_v37 = vpop.eup %2822  ;;  %2200 = vst.msk [vmem:[%s4235_s5 + $0x198] sm:$0xff] %vm2148_vm5, %v2821_v55  ;;  %v2657_v45 = vpop.f32.mrb[64].mxu1 }
 0x6c7   :  { %2199 = vst.msk [vmem:[%s4235_s5 + $0x190] sm:$0xff] %vm2148_vm5, %v2823_v37  ;;  %2832 = vtanh.f32 %v2657_v45  ;;  %v2045_v10 = vpop.f32.mrb[65].mxu1 }
 0x6c8   :  { %2834 = vtanh.f32 %v2045_v10 }
 0x6c9   :  { %v2825_v38 = vpop.eup %2824 }
 0x6ca   :  { %v2827_v61 = vpop.eup %2826  ;;  %2202 = vst.msk [vmem:[%s4235_s5 + $0x1a8] sm:$0xff] %vm2148_vm5, %v2825_v38  ;;  %v2660_v4 = vpop.f32.mrb[66].mxu1 }
 0x6cb   :  { %2201 = vst.msk [vmem:[%s4235_s5 + $0x1a0] sm:$0xff] %vm2148_vm5, %v2827_v61  ;;  %2836 = vtanh.f32 %v2660_v4  ;;  %v2055_v40 = vpop.f32.mrb[67].mxu1 }
 0x6cc   :  { %2838 = vtanh.f32 %v2055_v40 }
 0x6cd   :  { %v2829_v56 = vpop.eup %2828 }
 0x6ce   :  { %v2831_v60 = vpop.eup %2830  ;;  %2204 = vst.msk [vmem:[%s4235_s5 + $0x1b8] sm:$0xff] %vm2148_vm5, %v2829_v56  ;;  %v2663_v0 = vpop.f32.mrb[68].mxu1 }
 0x6cf   :  { %2203 = vst.msk [vmem:[%s4235_s5 + $0x1b0] sm:$0xff] %vm2148_vm5, %v2831_v60  ;;  %2840 = vtanh.f32 %v2663_v0  ;;  %v2065_v28 = vpop.f32.mrb[69].mxu1 }
 0x6d0   :  { %2842 = vtanh.f32 %v2065_v28 }
 0x6d1   :  { %v2833_v53 = vpop.eup %2832 }
 0x6d2   :  { %v2835_v15 = vpop.eup %2834  ;;  %2206 = vst.msk [vmem:[%s4235_s5 + $0x1c8] sm:$0xff] %vm2148_vm5, %v2833_v53  ;;  %v2666_v22 = vpop.f32.mrb[70].mxu1 }
 0x6d3   :  { %2205 = vst.msk [vmem:[%s4235_s5 + $0x1c0] sm:$0xff] %vm2148_vm5, %v2835_v15  ;;  %2844 = vtanh.f32 %v2666_v22  ;;  %v2075_v59 = vpop.f32.mrb[71].mxu1 }
 0x6d4   :  { %2846 = vtanh.f32 %v2075_v59 }
 0x6d5   :  { %v2837_v63 = vpop.eup %2836 }
 0x6d6   :  { %v2839_v12 = vpop.eup %2838  ;;  %2208 = vst.msk [vmem:[%s4235_s5 + $0x1d8] sm:$0xff] %vm2148_vm5, %v2837_v63 }
 0x6d7   :  { %2207 = vst.msk [vmem:[%s4235_s5 + $0x1d0] sm:$0xff] %vm2148_vm5, %v2839_v12 }
 0x6d9   :  { %v2841_v20 = vpop.eup %2840 }
 0x6da   :  { %v2843_v3 = vpop.eup %2842  ;;  %2210 = vst.msk [vmem:[%s4235_s5 + $0x1e8] sm:$0xff] %vm2148_vm5, %v2841_v20 }
 0x6db   :  { %2209 = vst.msk [vmem:[%s4235_s5 + $0x1e0] sm:$0xff] %vm2148_vm5, %v2843_v3 }
 0x6dd   :  { %v2845_v48 = vpop.eup %2844 }
 0x6de   :  { %v2847_v33 = vpop.eup %2846  ;;  %2212 = vst.msk [vmem:[%s4235_s5 + $0x1f8] sm:$0xff] %vm2148_vm5, %v2845_v48 }
 0x6df   :  { %2211 = vst.msk [vmem:[%s4235_s5 + $0x1f0] sm:$0xff] %vm2148_vm5, %v2847_v33 }

</bundles_post_ra>
